<compile_context>
chip_gen: v5e
topology: v5e:2x2
jax: 0.10.0
libtpu: 0.0.40
codegen_flags: <defaults>
</compile_context>

<pallas_src>
import functools

import jax
import jax.numpy as jnp
from jax.experimental import pallas as pl
from jax.experimental.pallas import tpu as pltpu

D_MODEL = 64
N_CLUSTERS = 16
D_INPUT = 3          # use_rri=False
D_INPUT_PAD = 8      # first-layer K padded to 8 for MXU alignment (zero rows)
BN_EPS = 1e-5
VMEM_LIMIT_BYTES = 48 * 1024 * 1024


def pointnet_kernel(x_ref,
                    we1, be1, we2, be2, we3, be3, we4, be4,
                    wd1_loc, wd1_glob, bd1, wd2, bd2, wd3, bd3, wd4, bd4,
                    out_ref, *, b_tile, n_pts):
    """Processes b_tile batch elements flattened to M = b_tile * n_pts rows."""
    x = x_ref[...]                                            # (M, 8) bf16

    def mm(h_bf16, w_ref):
        # bf16 operands, f32 accumulation (native MXU path).
        return jnp.dot(h_bf16, w_ref[...], preferred_element_type=jnp.float32)

    def cbr(h_bf16, w_ref, b_ref):
        # folded Conv1d(k=1) + BN (eval) + ReLU; bias/ReLU in f32, epilogue
        # cast to bf16 so the next layer reads the narrow activation directly.
        return jnp.maximum(mm(h_bf16, w_ref) + b_ref[...], 0.0).astype(jnp.bfloat16)

    # ----- encoder: 8 (padded 3) -> 64 -> 128 -> 256 -> d_model -----
    h = cbr(x, we1, be1)
    h = cbr(h, we2, be2)
    h = cbr(h, we3, be3)
    f_loc = cbr(h, we4, be4)                                  # (M, d_model) bf16

    # ----- per-batch-element global max over points ---------------------------
    # Leading-dim reshape only (n_pts % 16 == 0 keeps bf16 (16,128) tiles inside
    # one batch element), so this is a layout no-op; max over the point axis.
    # bf16 max commutes with bf16 rounding, so this matches the f32 reference.
    f3 = f_loc.reshape(b_tile, n_pts, D_MODEL)
    f_glob = jnp.max(f3, axis=1)                              # (b_tile, d_model) bf16

    # ----- decoder layer 1: Conv1d(2*d_model -> 512) on cat([f_loc, f_glob]) --
    # cat @ wd1 == f_loc @ wd1[:d] + f_glob @ wd1[d:]; wd1 was split host-side.
    # The global contribution is added as a natural (b_tile, 1, 512) broadcast —
    # no per-segment broadcast temps, no concatenation.
    g = jnp.dot(f_glob, wd1_glob[...],
                preferred_element_type=jnp.float32)           # (b_tile, 512) f32
    h_loc = mm(f_loc, wd1_loc)                                # (M, 512) f32
    h3 = h_loc.reshape(b_tile, n_pts, 512) + g[:, None, :] + bd1[...]
    h = jnp.maximum(h3, 0.0).astype(jnp.bfloat16).reshape(b_tile * n_pts, 512)

    # ----- decoder: 512 -> 256 -> 128 -> n_clusters -----
    h = cbr(h, wd2, bd2)
    h = cbr(h, wd3, bd3)
    y = mm(h, wd4) + bd4[...]                                 # (M, n_clusters) f32

    # NOTE: output is (M, 16) f32 (16 of 128 lanes used). Lane-packing to a
    # dense 128-lane slab would need a risky in-kernel relayout for a write-path
    # win that is negligible at these sizes — intentionally skipped.
    out_ref[...] = y.astype(out_ref.dtype)


def prepare_kernel_params(params):
    """Fold host-side layout work: pad we1 to K=8, split wd1, cast W to bf16."""
    (we1, be1, we2, be2, we3, be3, we4, be4,
     wd1, bd1, wd2, bd2, wd3, bd3, wd4, bd4) = params
    we1_p = jnp.pad(we1, ((0, D_INPUT_PAD - D_INPUT), (0, 0)))   # zero rows: exact
    wd1_loc, wd1_glob = wd1[:D_MODEL, :], wd1[D_MODEL:, :]
    bf = lambda w: w.astype(jnp.bfloat16)
    return [bf(we1_p), be1, bf(we2), be2, bf(we3), be3, bf(we4), be4,
            bf(wd1_loc), bf(wd1_glob), bd1,
            bf(wd2), bd2, bf(wd3), bd3, bf(wd4), bd4]


def _pick_b_tile(batch, n_pts):
    """Rows per step ~2048 (MXU/step-overhead amortization), but keep the
    'parallel' batch grid extent >= 2 so v7x's two TensorCores both work."""
    target = max(1, -(-2048 // n_pts))             # ceil(2048 / n_pts)
    cap = batch // 2 if batch >= 2 else batch      # grid extent >= 2 when possible
    cap = max(1, min(cap, target))
    b_tile = 1
    for cand in range(1, cap + 1):
        if batch % cand == 0:
            b_tile = cand
    return b_tile


def pointnet_forward(x_nlc, params, b_tile=None):
    """x_nlc: (B, N, 3) channels-last f32. Returns (B, N, n_clusters) f32."""
    B, N, Cin = x_nlc.shape
    assert Cin == D_INPUT
    assert N % 16 == 0, "N must be a multiple of 16 (bf16 sublane tiling)"

    if b_tile is None:
        b_tile = _pick_b_tile(B, N)
    assert B % b_tile == 0
    M = b_tile * N

    kparams = prepare_kernel_params(params)

    # Pad 3 -> 8 channels (padded weight rows are zero, so this is exact), cast
    # to bf16 on the host (kernel rounded to bf16 before the first matmul
    # anyway: bit-identical, half the input DMA / VMEM), and flatten to 2-D so
    # every in-kernel matmul is a clean (M, K) @ (K, C).
    x_pad = jnp.pad(x_nlc.astype(jnp.float32),
                    ((0, 0), (0, 0), (0, D_INPUT_PAD - D_INPUT)))
    x_flat = x_pad.reshape(B * N, D_INPUT_PAD).astype(jnp.bfloat16)

    x_spec = pl.BlockSpec((M, D_INPUT_PAD), lambda i: (i, 0))
    weight_specs = [pl.BlockSpec(p.shape, lambda i: (0, 0)) for p in kparams]
    out_spec = pl.BlockSpec((M, N_CLUSTERS), lambda i: (i, 0))

    flops = 2 * B * N * (
        D_INPUT_PAD * 64 + 64 * 128 + 128 * 256 + 256 * D_MODEL
        + D_MODEL * 512 + 512 * 256 + 256 * 128 + 128 * N_CLUSTERS)
    bytes_accessed = int(
        x_flat.size * x_flat.dtype.itemsize
        + sum(int(p.size) * p.dtype.itemsize for p in kparams)
        + B * N * N_CLUSTERS * 4)

    kernel = functools.partial(pointnet_kernel, b_tile=b_tile, n_pts=N)

    out_flat = pl.pallas_call(
        kernel,
        out_shape=jax.ShapeDtypeStruct((B * N, N_CLUSTERS), jnp.float32),
        grid=(B // b_tile,),
        in_specs=[x_spec] + weight_specs,
        out_specs=out_spec,
        compiler_params=pltpu.CompilerParams(
            dimension_semantics=("parallel",),
            vmem_limit_bytes=VMEM_LIMIT_BYTES),
        cost_estimate=pl.CostEstimate(
            flops=flops, transcendentals=0, bytes_accessed=bytes_accessed),
    )(x_flat, *kparams)

    return out_flat.reshape(B, N, N_CLUSTERS)


# ---------------- deterministic parameter construction ----------------

def make_cbr_params(key, cin, cout):
    """Conv1d(k=1, bias=False) + BatchNorm1d (eval) folded into (W, b)."""
    k_w, k_g, k_b, k_m, k_v = jax.random.split(key, 5)
    w = jax.random.normal(k_w, (cin, cout), jnp.float32) / jnp.sqrt(float(cin))
    gamma = 1.0 + 0.1 * jax.random.normal(k_g, (cout,), jnp.float32)
    beta = 0.1 * jax.random.normal(k_b, (cout,), jnp.float32)
    mean = 0.1 * jax.random.normal(k_m, (cout,), jnp.float32)
    var = jnp.abs(jax.random.normal(k_v, (cout,), jnp.float32)) + 0.5
    scale = gamma / jnp.sqrt(var + BN_EPS)
    w_fold = w * scale[None, :]
    b_fold = (beta - mean * scale).reshape(1, cout)
    return w_fold, b_fold


def make_final_conv_params(key, cin, cout):
    """nn.Conv1d(128, n_clusters, k=1) with bias (no BN/ReLU)."""
    k_w, k_b = jax.random.split(key, 2)
    w = jax.random.normal(k_w, (cin, cout), jnp.float32) / jnp.sqrt(float(cin))
    b = 0.1 * jax.random.normal(k_b, (1, cout), jnp.float32)
    return w, b


def build_params(key):
    keys = jax.random.split(key, 8)
    enc_dims = [(D_INPUT, 64), (64, 128), (128, 256), (256, D_MODEL)]
    dec_dims = [(2 * D_MODEL, 512), (512, 256), (256, 128)]
    params = []
    for k, (ci, co) in zip(keys[:4], enc_dims):
        params.extend(make_cbr_params(k, ci, co))
    for k, (ci, co) in zip(keys[4:7], dec_dims):
        params.extend(make_cbr_params(k, ci, co))
    params.extend(make_final_conv_params(keys[7], 128, N_CLUSTERS))
    return params


# ------------- pure-JAX reference (matches kernel precision: bf16 x bf16) ----

def pointnet_reference(x_nlc, params):
    (we1, be1, we2, be2, we3, be3, we4, be4,
     wd1, bd1, wd2, bd2, wd3, bd3, wd4, bd4) = params

    def mm(h, w):
        return jnp.dot(h.astype(jnp.bfloat16), w.astype(jnp.bfloat16),
                       preferred_element_type=jnp.float32)

    def cbr(h, w, b):
        return jnp.maximum(mm(h, w) + b, 0.0)

    h = cbr(x_nlc, we1, be1)
    h = cbr(h, we2, be2)
    h = cbr(h, we3, be3)
    f_loc = cbr(h, we4, be4)                         # (B, N, d_model)
    f_glob = jnp.max(f_loc, axis=1, keepdims=True)   # (B, 1, d_model)
    f_glob = jnp.broadcast_to(f_glob, f_loc.shape)
    h = cbr(jnp.concatenate([f_loc, f_glob], axis=-1), wd1, bd1)
    h = cbr(h, wd2, bd2)
    h = cbr(h, wd3, bd3)
    return mm(h, wd4) + bd4                          # (B, N, n_clusters)


if __name__ == "__main__":
    key = jax.random.PRNGKey(0)
    k_x, k_p = jax.random.split(key)

    B, N = 2, 128
    # PyTorch layout: pts is (B, d_input, N); convert to channels-last (B, N, d_input).
    pts_ncl = jax.random.normal(k_x, (B, D_INPUT, N), jnp.float32)
    x_nlc = jnp.transpose(pts_ncl, (0, 2, 1))

    params = build_params(k_p)

    out = pointnet_forward(x_nlc, params)
    out = jax.block_until_ready(out)

    ref = pointnet_reference(x_nlc, params)
    assert out.shape == (B, N, N_CLUSTERS), out.shape
    max_err = float(jnp.max(jnp.abs(out - ref)))
    assert jnp.allclose(out, ref, atol=5e-3, rtol=5e-3), f"mismatch vs reference (max abs err {max_err})"

    print("KERNEL_OK")
</pallas_src>

<mosaic_0001>
module attributes {stable_mosaic.version = 11 : i64} {
  func.func @pointnet_kernel(%arg0: i32, %arg1: memref<128x8xbf16, #tpu.memory_space<vmem>>, %arg2: memref<8x64xbf16, #tpu.memory_space<vmem>>, %arg3: memref<1x64xf32, #tpu.memory_space<vmem>>, %arg4: memref<64x128xbf16, #tpu.memory_space<vmem>>, %arg5: memref<1x128xf32, #tpu.memory_space<vmem>>, %arg6: memref<128x256xbf16, #tpu.memory_space<vmem>>, %arg7: memref<1x256xf32, #tpu.memory_space<vmem>>, %arg8: memref<256x64xbf16, #tpu.memory_space<vmem>>, %arg9: memref<1x64xf32, #tpu.memory_space<vmem>>, %arg10: memref<64x512xbf16, #tpu.memory_space<vmem>>, %arg11: memref<64x512xbf16, #tpu.memory_space<vmem>>, %arg12: memref<1x512xf32, #tpu.memory_space<vmem>>, %arg13: memref<512x256xbf16, #tpu.memory_space<vmem>>, %arg14: memref<1x256xf32, #tpu.memory_space<vmem>>, %arg15: memref<256x128xbf16, #tpu.memory_space<vmem>>, %arg16: memref<1x128xf32, #tpu.memory_space<vmem>>, %arg17: memref<128x16xbf16, #tpu.memory_space<vmem>>, %arg18: memref<1x16xf32, #tpu.memory_space<vmem>>, %arg19: memref<128x16xf32, #tpu.memory_space<vmem>>) attributes {dimension_semantics = [#tpu.dimension_semantics<parallel>], iteration_bounds = array<i64: 2>, scalar_prefetch = 0 : i64, scratch_operands = 0 : i64, tpu.core_type = #tpu.core_type<tc>, window_params = [{transform_indices = @transform_0, window_bounds = array<i64: 128, 8>}, {pipeline_mode = #tpu.pipeline_mode<synchronous>, transform_indices = @transform_1, window_bounds = array<i64: 8, 64>}, {pipeline_mode = #tpu.pipeline_mode<synchronous>, transform_indices = @transform_2, window_bounds = array<i64: 1, 64>}, {pipeline_mode = #tpu.pipeline_mode<synchronous>, transform_indices = @transform_3, window_bounds = array<i64: 64, 128>}, {pipeline_mode = #tpu.pipeline_mode<synchronous>, transform_indices = @transform_4, window_bounds = array<i64: 1, 128>}, {pipeline_mode = #tpu.pipeline_mode<synchronous>, transform_indices = @transform_5, window_bounds = array<i64: 128, 256>}, {pipeline_mode = #tpu.pipeline_mode<synchronous>, transform_indices = @transform_6, window_bounds = array<i64: 1, 256>}, {pipeline_mode = #tpu.pipeline_mode<synchronous>, transform_indices = @transform_7, window_bounds = array<i64: 256, 64>}, {pipeline_mode = #tpu.pipeline_mode<synchronous>, transform_indices = @transform_8, window_bounds = array<i64: 1, 64>}, {pipeline_mode = #tpu.pipeline_mode<synchronous>, transform_indices = @transform_9, window_bounds = array<i64: 64, 512>}, {pipeline_mode = #tpu.pipeline_mode<synchronous>, transform_indices = @transform_10, window_bounds = array<i64: 64, 512>}, {pipeline_mode = #tpu.pipeline_mode<synchronous>, transform_indices = @transform_11, window_bounds = array<i64: 1, 512>}, {pipeline_mode = #tpu.pipeline_mode<synchronous>, transform_indices = @transform_12, window_bounds = array<i64: 512, 256>}, {pipeline_mode = #tpu.pipeline_mode<synchronous>, transform_indices = @transform_13, window_bounds = array<i64: 1, 256>}, {pipeline_mode = #tpu.pipeline_mode<synchronous>, transform_indices = @transform_14, window_bounds = array<i64: 256, 128>}, {pipeline_mode = #tpu.pipeline_mode<synchronous>, transform_indices = @transform_15, window_bounds = array<i64: 1, 128>}, {pipeline_mode = #tpu.pipeline_mode<synchronous>, transform_indices = @transform_16, window_bounds = array<i64: 128, 16>}, {pipeline_mode = #tpu.pipeline_mode<synchronous>, transform_indices = @transform_17, window_bounds = array<i64: 1, 16>}, {transform_indices = @transform_18, window_bounds = array<i64: 128, 16>}]} {
    %c0 = arith.constant 0 : index
    %c0_0 = arith.constant 0 : index
    %0 = vector.load %arg1[%c0, %c0_0] : memref<128x8xbf16, #tpu.memory_space<vmem>>, vector<128x8xbf16>
    %c0_1 = arith.constant 0 : index
    %c0_2 = arith.constant 0 : index
    %1 = vector.load %arg2[%c0_1, %c0_2] : memref<8x64xbf16, #tpu.memory_space<vmem>>, vector<8x64xbf16>
    %cst = arith.constant dense<0.000000e+00> : vector<128x64xf32>
    %2 = tpu.matmul %0, %1, %cst {dimension_numbers = #tpu.dot_dimension_numbers<[1], [0], [0], [1], [0, 0, 1, 1], [], []>} : vector<128x8xbf16>, vector<8x64xbf16>, vector<128x64xf32> -> vector<128x64xf32>
    %c0_3 = arith.constant 0 : index
    %c0_4 = arith.constant 0 : index
    %3 = vector.load %arg3[%c0_3, %c0_4] : memref<1x64xf32, #tpu.memory_space<vmem>>, vector<1x64xf32>
    %4 = vector.broadcast %3 : vector<1x64xf32> to vector<128x64xf32>
    %5 = arith.addf %2, %4 : vector<128x64xf32>
    %cst_5 = arith.constant 0.000000e+00 : f32
    %6 = vector.broadcast %cst_5 : f32 to vector<128x64xf32>
    %7 = arith.maximumf %5, %6 : vector<128x64xf32>
    %8 = arith.truncf %7 : vector<128x64xf32> to vector<128x64xbf16>
    %c0_6 = arith.constant 0 : index
    %c0_7 = arith.constant 0 : index
    %9 = vector.load %arg4[%c0_6, %c0_7] : memref<64x128xbf16, #tpu.memory_space<vmem>>, vector<64x128xbf16>
    %cst_8 = arith.constant dense<0.000000e+00> : vector<128x128xf32>
    %10 = tpu.matmul %8, %9, %cst_8 {dimension_numbers = #tpu.dot_dimension_numbers<[1], [0], [0], [1], [0, 0, 1, 1], [], []>} : vector<128x64xbf16>, vector<64x128xbf16>, vector<128x128xf32> -> vector<128x128xf32>
    %c0_9 = arith.constant 0 : index
    %c0_10 = arith.constant 0 : index
    %11 = vector.load %arg5[%c0_9, %c0_10] : memref<1x128xf32, #tpu.memory_space<vmem>>, vector<1x128xf32>
    %12 = vector.broadcast %11 : vector<1x128xf32> to vector<128x128xf32>
    %13 = arith.addf %10, %12 : vector<128x128xf32>
    %cst_11 = arith.constant 0.000000e+00 : f32
    %14 = vector.broadcast %cst_11 : f32 to vector<128x128xf32>
    %15 = arith.maximumf %13, %14 : vector<128x128xf32>
    %16 = arith.truncf %15 : vector<128x128xf32> to vector<128x128xbf16>
    %c0_12 = arith.constant 0 : index
    %c0_13 = arith.constant 0 : index
    %17 = vector.load %arg6[%c0_12, %c0_13] : memref<128x256xbf16, #tpu.memory_space<vmem>>, vector<128x256xbf16>
    %cst_14 = arith.constant dense<0.000000e+00> : vector<128x256xf32>
    %18 = tpu.matmul %16, %17, %cst_14 {dimension_numbers = #tpu.dot_dimension_numbers<[1], [0], [0], [1], [0, 0, 1, 1], [], []>} : vector<128x128xbf16>, vector<128x256xbf16>, vector<128x256xf32> -> vector<128x256xf32>
    %c0_15 = arith.constant 0 : index
    %c0_16 = arith.constant 0 : index
    %19 = vector.load %arg7[%c0_15, %c0_16] : memref<1x256xf32, #tpu.memory_space<vmem>>, vector<1x256xf32>
    %20 = vector.broadcast %19 : vector<1x256xf32> to vector<128x256xf32>
    %21 = arith.addf %18, %20 : vector<128x256xf32>
    %cst_17 = arith.constant 0.000000e+00 : f32
    %22 = vector.broadcast %cst_17 : f32 to vector<128x256xf32>
    %23 = arith.maximumf %21, %22 : vector<128x256xf32>
    %24 = arith.truncf %23 : vector<128x256xf32> to vector<128x256xbf16>
    %c0_18 = arith.constant 0 : index
    %c0_19 = arith.constant 0 : index
    %25 = vector.load %arg8[%c0_18, %c0_19] : memref<256x64xbf16, #tpu.memory_space<vmem>>, vector<256x64xbf16>
    %cst_20 = arith.constant dense<0.000000e+00> : vector<128x64xf32>
    %26 = tpu.matmul %24, %25, %cst_20 {dimension_numbers = #tpu.dot_dimension_numbers<[1], [0], [0], [1], [0, 0, 1, 1], [], []>} : vector<128x256xbf16>, vector<256x64xbf16>, vector<128x64xf32> -> vector<128x64xf32>
    %c0_21 = arith.constant 0 : index
    %c0_22 = arith.constant 0 : index
    %27 = vector.load %arg9[%c0_21, %c0_22] : memref<1x64xf32, #tpu.memory_space<vmem>>, vector<1x64xf32>
    %28 = vector.broadcast %27 : vector<1x64xf32> to vector<128x64xf32>
    %29 = arith.addf %26, %28 : vector<128x64xf32>
    %cst_23 = arith.constant 0.000000e+00 : f32
    %30 = vector.broadcast %cst_23 : f32 to vector<128x64xf32>
    %31 = arith.maximumf %29, %30 : vector<128x64xf32>
    %32 = arith.truncf %31 : vector<128x64xf32> to vector<128x64xbf16>
    %33 = vector.shape_cast %32 : vector<128x64xbf16> to vector<1x128x64xbf16>
    %cst_24 = arith.constant dense<0xFF80> : vector<1x64xbf16>
    %34 = vector.multi_reduction <maximumf>, %33, %cst_24 [1] : vector<1x128x64xbf16> to vector<1x64xbf16>
    %c0_25 = arith.constant 0 : index
    %c0_26 = arith.constant 0 : index
    %35 = vector.load %arg11[%c0_25, %c0_26] : memref<64x512xbf16, #tpu.memory_space<vmem>>, vector<64x512xbf16>
    %cst_27 = arith.constant dense<0.000000e+00> : vector<1x512xf32>
    %36 = tpu.matmul %34, %35, %cst_27 {dimension_numbers = #tpu.dot_dimension_numbers<[1], [0], [0], [1], [0, 0, 1, 1], [], []>} : vector<1x64xbf16>, vector<64x512xbf16>, vector<1x512xf32> -> vector<1x512xf32>
    %c0_28 = arith.constant 0 : index
    %c0_29 = arith.constant 0 : index
    %37 = vector.load %arg10[%c0_28, %c0_29] : memref<64x512xbf16, #tpu.memory_space<vmem>>, vector<64x512xbf16>
    %cst_30 = arith.constant dense<0.000000e+00> : vector<128x512xf32>
    %38 = tpu.matmul %32, %37, %cst_30 {dimension_numbers = #tpu.dot_dimension_numbers<[1], [0], [0], [1], [0, 0, 1, 1], [], []>} : vector<128x64xbf16>, vector<64x512xbf16>, vector<128x512xf32> -> vector<128x512xf32>
    %39 = vector.shape_cast %38 : vector<128x512xf32> to vector<1x128x512xf32>
    %40 = vector.shape_cast %36 : vector<1x512xf32> to vector<1x1x512xf32>
    %41 = vector.broadcast %40 : vector<1x1x512xf32> to vector<1x128x512xf32>
    %42 = arith.addf %39, %41 : vector<1x128x512xf32>
    %c0_31 = arith.constant 0 : index
    %c0_32 = arith.constant 0 : index
    %43 = vector.load %arg12[%c0_31, %c0_32] : memref<1x512xf32, #tpu.memory_space<vmem>>, vector<1x512xf32>
    %44 = vector.shape_cast %43 : vector<1x512xf32> to vector<1x1x512xf32>
    %45 = vector.broadcast %44 : vector<1x1x512xf32> to vector<1x128x512xf32>
    %46 = arith.addf %42, %45 : vector<1x128x512xf32>
    %cst_33 = arith.constant 0.000000e+00 : f32
    %47 = vector.broadcast %cst_33 : f32 to vector<1x128x512xf32>
    %48 = arith.maximumf %46, %47 : vector<1x128x512xf32>
    %49 = arith.truncf %48 : vector<1x128x512xf32> to vector<1x128x512xbf16>
    %50 = vector.shape_cast %49 : vector<1x128x512xbf16> to vector<128x512xbf16>
    %c0_34 = arith.constant 0 : index
    %c0_35 = arith.constant 0 : index
    %51 = vector.load %arg13[%c0_34, %c0_35] : memref<512x256xbf16, #tpu.memory_space<vmem>>, vector<512x256xbf16>
    %cst_36 = arith.constant dense<0.000000e+00> : vector<128x256xf32>
    %52 = tpu.matmul %50, %51, %cst_36 {dimension_numbers = #tpu.dot_dimension_numbers<[1], [0], [0], [1], [0, 0, 1, 1], [], []>} : vector<128x512xbf16>, vector<512x256xbf16>, vector<128x256xf32> -> vector<128x256xf32>
    %c0_37 = arith.constant 0 : index
    %c0_38 = arith.constant 0 : index
    %53 = vector.load %arg14[%c0_37, %c0_38] : memref<1x256xf32, #tpu.memory_space<vmem>>, vector<1x256xf32>
    %54 = vector.broadcast %53 : vector<1x256xf32> to vector<128x256xf32>
    %55 = arith.addf %52, %54 : vector<128x256xf32>
    %cst_39 = arith.constant 0.000000e+00 : f32
    %56 = vector.broadcast %cst_39 : f32 to vector<128x256xf32>
    %57 = arith.maximumf %55, %56 : vector<128x256xf32>
    %58 = arith.truncf %57 : vector<128x256xf32> to vector<128x256xbf16>
    %c0_40 = arith.constant 0 : index
    %c0_41 = arith.constant 0 : index
    %59 = vector.load %arg15[%c0_40, %c0_41] : memref<256x128xbf16, #tpu.memory_space<vmem>>, vector<256x128xbf16>
    %cst_42 = arith.constant dense<0.000000e+00> : vector<128x128xf32>
    %60 = tpu.matmul %58, %59, %cst_42 {dimension_numbers = #tpu.dot_dimension_numbers<[1], [0], [0], [1], [0, 0, 1, 1], [], []>} : vector<128x256xbf16>, vector<256x128xbf16>, vector<128x128xf32> -> vector<128x128xf32>
    %c0_43 = arith.constant 0 : index
    %c0_44 = arith.constant 0 : index
    %61 = vector.load %arg16[%c0_43, %c0_44] : memref<1x128xf32, #tpu.memory_space<vmem>>, vector<1x128xf32>
    %62 = vector.broadcast %61 : vector<1x128xf32> to vector<128x128xf32>
    %63 = arith.addf %60, %62 : vector<128x128xf32>
    %cst_45 = arith.constant 0.000000e+00 : f32
    %64 = vector.broadcast %cst_45 : f32 to vector<128x128xf32>
    %65 = arith.maximumf %63, %64 : vector<128x128xf32>
    %66 = arith.truncf %65 : vector<128x128xf32> to vector<128x128xbf16>
    %c0_46 = arith.constant 0 : index
    %c0_47 = arith.constant 0 : index
    %67 = vector.load %arg17[%c0_46, %c0_47] : memref<128x16xbf16, #tpu.memory_space<vmem>>, vector<128x16xbf16>
    %cst_48 = arith.constant dense<0.000000e+00> : vector<128x16xf32>
    %68 = tpu.matmul %66, %67, %cst_48 {dimension_numbers = #tpu.dot_dimension_numbers<[1], [0], [0], [1], [0, 0, 1, 1], [], []>} : vector<128x128xbf16>, vector<128x16xbf16>, vector<128x16xf32> -> vector<128x16xf32>
    %c0_49 = arith.constant 0 : index
    %c0_50 = arith.constant 0 : index
    %69 = vector.load %arg18[%c0_49, %c0_50] : memref<1x16xf32, #tpu.memory_space<vmem>>, vector<1x16xf32>
    %70 = vector.broadcast %69 : vector<1x16xf32> to vector<128x16xf32>
    %71 = arith.addf %68, %70 : vector<128x16xf32>
    %c0_51 = arith.constant 0 : index
    %c0_52 = arith.constant 0 : index
    %72 = vector.load %arg19[%c0_51, %c0_52] : memref<128x16xf32, #tpu.memory_space<vmem>>, vector<128x16xf32>
    tpu.vector_store %arg19[%c0_51, %c0_52], %71 {strides = array<i32>} : memref<128x16xf32, #tpu.memory_space<vmem>>, vector<128x16xf32>,
    return
  }
  func.func @transform_0(%arg0: i32) -> (i32, i32) {
    %c0_i32 = arith.constant 0 : i32
    %c0_i32_0 = arith.constant 0 : i32
    return %arg0, %c0_i32 : i32, i32
  }
  func.func @transform_1(%arg0: i32) -> (i32, i32) {
    %c0_i32 = arith.constant 0 : i32
    %c0_i32_0 = arith.constant 0 : i32
    %c0_i32_1 = arith.constant 0 : i32
    return %c0_i32, %c0_i32_0 : i32, i32
  }
  func.func @transform_2(%arg0: i32) -> (i32, i32) {
    %c0_i32 = arith.constant 0 : i32
    %c0_i32_0 = arith.constant 0 : i32
    %c0_i32_1 = arith.constant 0 : i32
    return %c0_i32, %c0_i32_0 : i32, i32
  }
  func.func @transform_3(%arg0: i32) -> (i32, i32) {
    %c0_i32 = arith.constant 0 : i32
    %c0_i32_0 = arith.constant 0 : i32
    %c0_i32_1 = arith.constant 0 : i32
    return %c0_i32, %c0_i32_0 : i32, i32
  }
  func.func @transform_4(%arg0: i32) -> (i32, i32) {
    %c0_i32 = arith.constant 0 : i32
    %c0_i32_0 = arith.constant 0 : i32
    %c0_i32_1 = arith.constant 0 : i32
    return %c0_i32, %c0_i32_0 : i32, i32
  }
  func.func @transform_5(%arg0: i32) -> (i32, i32) {
    %c0_i32 = arith.constant 0 : i32
    %c0_i32_0 = arith.constant 0 : i32
    %c0_i32_1 = arith.constant 0 : i32
    return %c0_i32, %c0_i32_0 : i32, i32
  }
  func.func @transform_6(%arg0: i32) -> (i32, i32) {
    %c0_i32 = arith.constant 0 : i32
    %c0_i32_0 = arith.constant 0 : i32
    %c0_i32_1 = arith.constant 0 : i32
    return %c0_i32, %c0_i32_0 : i32, i32
  }
  func.func @transform_7(%arg0: i32) -> (i32, i32) {
    %c0_i32 = arith.constant 0 : i32
    %c0_i32_0 = arith.constant 0 : i32
    %c0_i32_1 = arith.constant 0 : i32
    return %c0_i32, %c0_i32_0 : i32, i32
  }
  func.func @transform_8(%arg0: i32) -> (i32, i32) {
    %c0_i32 = arith.constant 0 : i32
    %c0_i32_0 = arith.constant 0 : i32
    %c0_i32_1 = arith.constant 0 : i32
    return %c0_i32, %c0_i32_0 : i32, i32
  }
  func.func @transform_9(%arg0: i32) -> (i32, i32) {
    %c0_i32 = arith.constant 0 : i32
    %c0_i32_0 = arith.constant 0 : i32
    %c0_i32_1 = arith.constant 0 : i32
    return %c0_i32, %c0_i32_0 : i32, i32
  }
  func.func @transform_10(%arg0: i32) -> (i32, i32) {
    %c0_i32 = arith.constant 0 : i32
    %c0_i32_0 = arith.constant 0 : i32
    %c0_i32_1 = arith.constant 0 : i32
    return %c0_i32, %c0_i32_0 : i32, i32
  }
  func.func @transform_11(%arg0: i32) -> (i32, i32) {
    %c0_i32 = arith.constant 0 : i32
    %c0_i32_0 = arith.constant 0 : i32
    %c0_i32_1 = arith.constant 0 : i32
    return %c0_i32, %c0_i32_0 : i32, i32
  }
  func.func @transform_12(%arg0: i32) -> (i32, i32) {
    %c0_i32 = arith.constant 0 : i32
    %c0_i32_0 = arith.constant 0 : i32
    %c0_i32_1 = arith.constant 0 : i32
    return %c0_i32, %c0_i32_0 : i32, i32
  }
  func.func @transform_13(%arg0: i32) -> (i32, i32) {
    %c0_i32 = arith.constant 0 : i32
    %c0_i32_0 = arith.constant 0 : i32
    %c0_i32_1 = arith.constant 0 : i32
    return %c0_i32, %c0_i32_0 : i32, i32
  }
  func.func @transform_14(%arg0: i32) -> (i32, i32) {
    %c0_i32 = arith.constant 0 : i32
    %c0_i32_0 = arith.constant 0 : i32
    %c0_i32_1 = arith.constant 0 : i32
    return %c0_i32, %c0_i32_0 : i32, i32
  }
  func.func @transform_15(%arg0: i32) -> (i32, i32) {
    %c0_i32 = arith.constant 0 : i32
    %c0_i32_0 = arith.constant 0 : i32
    %c0_i32_1 = arith.constant 0 : i32
    return %c0_i32, %c0_i32_0 : i32, i32
  }
  func.func @transform_16(%arg0: i32) -> (i32, i32) {
    %c0_i32 = arith.constant 0 : i32
    %c0_i32_0 = arith.constant 0 : i32
    %c0_i32_1 = arith.constant 0 : i32
    return %c0_i32, %c0_i32_0 : i32, i32
  }
  func.func @transform_17(%arg0: i32) -> (i32, i32) {
    %c0_i32 = arith.constant 0 : i32
    %c0_i32_0 = arith.constant 0 : i32
    %c0_i32_1 = arith.constant 0 : i32
    return %c0_i32, %c0_i32_0 : i32, i32
  }
  func.func @transform_18(%arg0: i32) -> (i32, i32) {
    %c0_i32 = arith.constant 0 : i32
    %c0_i32_0 = arith.constant 0 : i32
    return %arg0, %c0_i32 : i32, i32
  }
}

</mosaic_0001>

<bundles_post_ra>
// kernel: tpu_custom_call.1
= control target key start
LH: loop header
LB: loop body
LE: loop exit
PB: predicated region body
PF: predicated region fallthrough
CT: control target
= control target key end

     0   :  { %s6064_s0 = inlined_call_operand.vmem [shape: bf16[256,8], index: 0, kind: input, shape index: {}]   ;;  %s6065_s1 = inlined_call_operand.vmem [shape: bf16[8,64], index: 1, kind: input, shape index: {}]   ;;  %s6066_s2 = inlined_call_operand.vmem [shape: f32[1,64], index: 2, kind: input, shape index: {}]   ;;  %s6067_s3 = inlined_call_operand.hbm [shape: bf16[64,128], index: 3, kind: input, shape index: {}]   ;;  %s6068_s4 = inlined_call_operand.vmem [shape: f32[1,128], index: 4, kind: input, shape index: {}]   ;;  %s6069_s5 = inlined_call_operand.vmem [shape: bf16[128,256], index: 5, kind: input, shape index: {}]   ;;  %s6070_s6 = inlined_call_operand.vmem [shape: f32[1,256], index: 6, kind: input, shape index: {}]   ;;  %s6071_s7 = inlined_call_operand.vmem [shape: bf16[256,64], index: 7, kind: input, shape index: {}]   ;;  %s6072_s8 = inlined_call_operand.vmem [shape: f32[1,64], index: 8, kind: input, shape index: {}]   ;;  %s6073_s9 = inlined_call_operand.vmem [shape: bf16[64,512], index: 9, kind: input, shape index: {}]   ;;  %s6074_s10 = inlined_call_operand.vmem [shape: bf16[64,512], index: 10, kind: input, shape index: {}]   ;;  %s6075_s11 = inlined_call_operand.vmem [shape: f32[1,512], index: 11, kind: input, shape index: {}]   ;;  %s6076_s12 = inlined_call_operand.hbm [shape: bf16[512,256], index: 12, kind: input, shape index: {}]   ;;  %s6077_s13 = inlined_call_operand.vmem [shape: f32[1,256], index: 13, kind: input, shape index: {}]   ;;  %s6078_s14 = inlined_call_operand.hbm [shape: bf16[256,128], index: 14, kind: input, shape index: {}]   ;;  %s6079_s15 = inlined_call_operand.vmem [shape: f32[1,128], index: 15, kind: input, shape index: {}]   ;;  %s6080_s16 = inlined_call_operand.vmem [shape: bf16[128,16], index: 16, kind: input, shape index: {}]   ;;  %s6081_s17 = inlined_call_operand.vmem [shape: f32[1,16], index: 17, kind: input, shape index: {}]   ;;  %s6082_s18 = inlined_call_operand.vmem [shape: f32[256,16], index: 18, kind: output, shape index: {}]  }
   0x1   :  { %6084 = sst [smem:[#allocation9_spill]] %s6064_s0 }
   0x2   :  { %6085 = sst [smem:[#allocation10_spill]] %s6065_s1 }
   0x3   :  { %6086 = sst [smem:[#allocation11_spill]] %s6066_s2 }
   0x4   :  { %6087 = sst [smem:[#allocation12_spill]] %s6067_s3 }
   0x5   :  { %6088 = sst [smem:[#allocation13_spill]] %s6076_s12 }
   0x6   :  { %6089 = sst [smem:[#allocation14_spill]] %s6082_s18 }
   0x7   :  { %23 = vsyncpa [#allocation3], 0 }
   0x8   :  { %24 = vsyncpa [#allocation5], 0  ;;  %s4847_s27 = smov 0  }
   0x9 LB: > { %s6090_s12 = sld [smem:[#allocation13_spill]]  ;;  %s6083_s0 = sadd.s32 4294967295, %s4743_s27   ;;  %s4743_s27 = sphi %s4847_s27, %s30_s27  }
   0xa   : > { %p3703_p0 = scmp.ge.s32.totalorder %s4743_s27, 1  ;;  %p444_p1 = scmp.lt.s32.totalorder %s4743_s27, 3 }
   0xb   : > { %p4860_p2 = scmp.eq.s32.totalorder %s6083_s0, 0  ;;  %s4745_s20 = smov [#allocation4]  }
   0xc   : > { %p4864_p3 = pnand %p3703_p0, %p444_p1  ;;  %s501_s21 = sshll.u32 %s4745_s20, 4  ;;  %s502_s21 = int_to_ptr.vmem [resolvable:$true] %s501_s21 }
   0xd   : > { %s6093_s3 = sld [smem:[#allocation12_spill]]  ;;  %s4746_s25 = smov [#allocation2]  }
   0xe   : > { %p4603_p4 = pneg %p4864_p3  ;;  %s463_s26 = sshll.u32 %s4746_s25, 4  ;;  %s464_s26 = int_to_ptr.vmem [resolvable:$true] %s463_s26 }
   0xf   : > { %s499_s30 = sshll.u32 %s6090_s12, 4  ;;  %s4747_s28 = smov 128   ;;  %s500_s30 = int_to_ptr.hbm [resolvable:$true] %s499_s30 }
  0x10   : > { %p4875_p5 = pnand %p4860_p2, %p4603_p4  ;;  %s4748_s29 = smov 8  }
  0x11   : > { %s516_s22 = sshll.u32 %s6078_s14, 4  ;;  %s4749_s2 = smov 64   ;;  %s517_s22 = int_to_ptr.hbm [resolvable:$true] %s516_s22 }
  0x12   : > { %4609 = dma.hbm_to_vmem [thread:$0]  (!%p4875_p5), %s500_s30, 8192, %s502_s21, [#allocation5], %s4747_s28, %s4747_s28, %s4748_s29  }
  0x13   : > { %s461_s23 = sshll.u32 %s6093_s3, 4  ;;  %s4750_s3 = smov 4   ;;  %s462_s23 = int_to_ptr.hbm [resolvable:$true] %s461_s23 }
  0x14   : > { %4606 = dma.hbm_to_vmem [thread:$0]  (!%p4875_p5), %s462_s23, 512, %s464_s26, [#allocation3], %s4749_s2, %s4749_s2, %s4750_s3  }
  0x15   : > { %s4751_s12 = smov [#allocation6]   ;;  %552 = sbr.rel (%p4864_p3) target bundleno = 1603 (0x643), region = 92 }
  0x16   : > { %s518_s18 = sshll.u32 %s4751_s12, 4  ;;  %s519_s18 = int_to_ptr.vmem [resolvable:$true] %s518_s18 }
  0x17   : > { %4612 = dma.hbm_to_vmem [thread:$0]  (!%p4875_p5), %s517_s22, 2048, %s519_s18, [#allocation5], %s4749_s2, %s4749_s2, %s4750_s3  }
  0x1a   : > { %4734 = dma.done.wait (%p4860_p2), [#allocation3], 512  }
  0x1b   : > { %4736 = vsyncadd (%p4860_p2), [#allocation3], 4294966784 }
  0x1c   : > { %4738 = dma.done.wait (%p4860_p2), [#allocation5], 10240  }
  0x1d   : > { %4740 = vsyncadd (%p4860_p2), [#allocation5], 4294957056  ;;  %s6095_s12 = sadd.s32 4294967295, %s4743_s27   ;;  %vm716_vm0 = vcmask 1043456   ;;  %s6096_s1 = sld [smem:[#allocation9_spill]]  ;;  %vm691_vm1 = vcmask 64512  }
  0x1e   : > { %s3712_s30 = sshll.u32 %s6095_s12, 4  ;;  %s6097_s25 = sld [smem:[#allocation10_spill]]  ;;  %v4437_v5 = vld [vmem:[#allocation2 + $0x18] sm:$0xff]  ;;  %v4436_v6 = vld [vmem:[#allocation2 + $0x10] sm:$0xff]  ;;  %v4435_v9 = vld [vmem:[#allocation2 + $0x8] sm:$0xff]  ;;  %vm829_vm2 = vcmask 523264  }
  0x1f   : > { %p618_p6 = scmp.lt.s32.totalorder %s3712_s30, 31  ;;  %v4434_v10 = vld [vmem:[#allocation2] sm:$0xff]  ;;  %s6098_s28 = sld [smem:[#allocation11_spill]]  ;;  %v3838_v52 = vld [vmem:[%s6069_s5 + $0x70] sm:$0xf]  ;;  %vm3597_vm3 = vcmask 130048  }
  0x20   : > { %v4453_v53 = vld [vmem:[%s6069_s5 + $0x74] sm:$0xf0]  ;;  %v4452_v54 = vld [vmem:[%s6069_s5 + $0x74] sm:$0xf]  ;;  %v3840_v56 = vld [vmem:[%s6069_s5 + $0x78] sm:$0xf0] }
  0x21   : > { %s6101_s30 = smov (!%p618_p6, %s3712_s30), 31  ;;  %v3839_v55 = vor.u32 %v4453_v53, %v3838_v52  ;;  %v3843_v57 = vor.u32 %v4452_v54, %v3840_v56  ;;  %v5045_v56 = vld [vmem:[%s6068_s4] ss:$0 sm:$0xff]  ;;  %s6099_s20 = sld [smem:[#allocation14_spill]] }
  0x22   : > { %s3713_s3 = sshll.u32 %s6101_s30, 2 }
  0x23   : > { %s621_s21 = scalar_lea.vmem %s6096_s1, %s3713_s3  ;;  %1029 = vmatpush.bf16.msra.mxu2 %v3839_v55  ;;  %1078 = vmatpush.bf16.msra.mxu3 %v3843_v57  ;;  %v4469_v57 = vld [vmem:[%s6071_s7 + $0x78] sm:$0xff] }
  0x24   : > { %v646_v0 = vld [vmem:[%s6097_s25] sm:$0xf]  ;;  %v4427_v3 = vld [vmem:[%s621_s21 + $0x8] sm:$0xff]  ;;  %v4428_v7 = vld [vmem:[%s621_s21 + $0x10] sm:$0xff]  ;;  %s3715_s25 = sshll.u32 %s6101_s30, 3 }
  0x25   : > { %v718_v1 = vsel %vm716_vm0, %v646_v0, 0  ;;  %v4426_v2 = vld [vmem:[%s621_s21] sm:$0xff]  ;;  %v4431_v8 = vld [vmem:[%s621_s21 + $0x28] sm:$0xff]  ;;  %v4429_v11 = vld [vmem:[%s621_s21 + $0x18] sm:$0xff] }
  0x26   : > { %727 = vmatpush.bf16.msra.mxu0 %v718_v1  ;;  %4590 = vmatpush.bf16.msra.mxu1 %v718_v1  ;;  %v4430_v4 = vld [vmem:[%s621_s21 + $0x20] sm:$0xff]  ;;  %v4432_v12 = vld [vmem:[%s621_s21 + $0x30] sm:$0xff]  ;;  %v4433_v13 = vld [vmem:[%s621_s21 + $0x38] sm:$0xff] }
  0x27   : > { %v4920_v15 = vld [vmem:[%s6098_s28] ss:$0 sm:$0xff]  ;;  %v4451_v1 = vld [vmem:[%s6069_s5 + $0x64] sm:$0xf0]  ;;  %s6027_s22 = scalar_lea.vmem %s6099_s20, %s3715_s25 }
  0x28   : > { %v3830_v0 = vld [vmem:[%s6069_s5 + $0x60] sm:$0xf] }
  0x29   : > { %3748 = vmatmul.msk.bf16.vlgmr.msra.gmra.mxu0 %vm691_vm1, %v4426_v2  ;;  %3752 = vmatmul.msk.bf16.vlgmr.msra.gmra.mxu1 %vm691_vm1, %v4430_v4  ;;  %v4450_v2 = vld [vmem:[%s6069_s5 + $0x64] sm:$0xf]  ;;  %v3831_v4 = vor.u32 %v4451_v1, %v3830_v0  ;;  %v4468_v1 = vld [vmem:[%s6071_s7 + $0x70] sm:$0xff] }
  0x2a   : > { %858 = vmatpush.bf16.msrb.mxu1 %v4437_v5  ;;  %v3832_v5 = vld [vmem:[%s6069_s5 + $0x68] sm:$0xf0] }
  0x2b   : > { %1030 = vmatpush.bf16.msra.mxu2 %v3831_v4 }
  0x2e   : > { %859 = vmatpush.bf16.msrb.mxu1 %v4436_v6  ;;  %v3835_v6 = vor.u32 %v4450_v2, %v3832_v5 }
  0x30   : > { %1079 = vmatpush.bf16.msra.mxu3 %v3835_v6 }
  0x32   : > { %860 = vmatpush.bf16.msrb.mxu1 %v4435_v9  ;;  %v4448_v9 = vld [vmem:[%s6069_s5 + $0x54] sm:$0xf] }
  0x36   : > { %861 = vmatpush.bf16.msrb.mxu1 %v4434_v10 }
  0x39   : > { %3749 = vmatmul.msk.bf16.gmra.mxu0 %vm691_vm1, %v4427_v3  ;;  %3753 = vmatmul.msk.bf16.gmra.mxu1 %vm691_vm1, %v4431_v8  ;;  %v4449_v8 = vld [vmem:[%s6069_s5 + $0x54] sm:$0xf0] }
  0x3a   : > { %1356 = vmatpush.bf16.msra.mxu1 %v4469_v57  ;;  %v4462_v57 = vld [vmem:[%s6071_s7 + $0x40] sm:$0xff] }
  0x3e   : > { %1357 = vmatpush.bf16.msra.mxu1 %v4468_v1  ;;  %v943_v1 = vld [vmem:[%s6070_s6] sm:$0x3] }
  0x49   : > { %3750 = vmatmul.msk.bf16.gmra.mxu0 %vm691_vm1, %v4428_v7  ;;  %3754 = vmatmul.msk.bf16.gmra.mxu1 %vm691_vm1, %v4432_v12  ;;  %v3822_v7 = vld [vmem:[%s6069_s5 + $0x50] sm:$0xf] }
  0x4a   : > { %v3823_v10 = vor.u32 %v4449_v8, %v3822_v7 }
  0x4c   : > { %1031 = vmatpush.bf16.msra.mxu2 %v3823_v10 }
  0x59   : > { %3751 = vmatmul.msk.bf16.gmra.mxu0 %vm691_vm1, %v4429_v11  ;;  %3755 = vmatmul.msk.bf16.gmra.mxu1 %vm691_vm1, %v4433_v13  ;;  %v3824_v11 = vld [vmem:[%s6069_s5 + $0x58] sm:$0xf0]  ;;  %v3814_v13 = vld [vmem:[%s6069_s5 + $0x40] sm:$0xf] }
  0x5a   : > { %v3827_v12 = vor.u32 %v4448_v9, %v3824_v11  ;;  %v4467_v9 = vld [vmem:[%s6071_s7 + $0x68] sm:$0xff] }
  0x5b   : > { %1358 = vmatpush.bf16.msra.mxu1 %v4467_v9 }
  0x5c   : > { %1080 = vmatpush.bf16.msra.mxu3 %v3827_v12 }
  0xa6   : > { %v729_v14 = vpop.f32.mrf.mxu0  ;;  %v749_v35 = vpop.f32.mrf.mxu1 }
  0xa7   : > { %v730_v16 = vadd.f32 %v4920_v15, %v729_v14  ;;  %v750_v46 = vadd.f32 %v4920_v15, %v749_v35  ;;  %v4447_v14 = vld [vmem:[%s6069_s5 + $0x44] sm:$0xf0] }
  0xa9   : > { %v769_v19 = vmax.f32 %v730_v16, 0.0  ;;  %v777_v48 = vmax.f32 %v750_v46, 0.0  ;;  %v4446_v16 = vld [vmem:[%s6069_s5 + $0x44] sm:$0xf] }
  0xae   : > { %v731_v17 = vpop.f32.mrf.mxu0  ;;  %v751_v38 = vpop.f32.mrf.mxu1 }
  0xaf   : > { %v732_v18 = vadd.f32 %v4920_v15, %v731_v17  ;;  %v752_v47 = vadd.f32 %v4920_v15, %v751_v38  ;;  %v3816_v17 = vld [vmem:[%s6069_s5 + $0x48] sm:$0xf0]  ;;  %v3790_v38 = vld [vmem:[%s6069_s5 + $0x10] sm:$0xf] }
  0xb1   : > { %v770_v20 = vmax.f32 %v732_v18, 0.0  ;;  %v778_v49 = vmax.f32 %v752_v47, 0.0  ;;  %v3782_v47 = vld [vmem:[%s6069_s5] sm:$0xf] }
  0xb3   : > { %v785_v21 = vpack.c.bf16 %v770_v20, %v769_v19  ;;  %v789_v51 = vpack.c.bf16 %v778_v49, %v777_v48  ;;  %v3815_v20 = vor.u32 %v4447_v14, %v3814_v13  ;;  %v4439_v48 = vld [vmem:[%s6069_s5 + $0x4] sm:$0xf0]  ;;  %v4438_v49 = vld [vmem:[%s6069_s5 + $0x4] sm:$0xf] }
  0xb5   : > { %3772 = vmatmul.msk.bf16.vlgmr.msrb.gmra.mxu1 %vm829_vm2, %v785_v21  ;;  %v3819_v21 = vor.u32 %v4446_v16, %v3816_v17  ;;  %1032 = vmatpush.bf16.msra.mxu2 %v3815_v20 }
  0xb6   : > { %v734_v22 = vpop.f32.mrf.mxu0  ;;  %v754_v45 = vpop.f32.mrf.mxu1 }
  0xb7   : > { %v735_v23 = vadd.f32 %v4920_v15, %v734_v22  ;;  %v755_v59 = vadd.f32 %v4920_v15, %v754_v45  ;;  %1081 = vmatpush.bf16.msra.mxu3 %v3819_v21 }
  0xb9   : > { %v771_v26 = vmax.f32 %v735_v23, 0.0  ;;  %v779_v61 = vmax.f32 %v755_v59, 0.0 }
  0xbe   : > { %v736_v24 = vpop.f32.mrf.mxu0  ;;  %v756_v50 = vpop.f32.mrf.mxu1 }
  0xbf   : > { %v737_v25 = vadd.f32 %v4920_v15, %v736_v24  ;;  %v757_v60 = vadd.f32 %v4920_v15, %v756_v50  ;;  %v3783_v50 = vor.u32 %v4439_v48, %v3782_v47  ;;  %v4456_v48 = vld [vmem:[%s6071_s7 + $0x10] sm:$0xff] }
  0xc1   : > { %v772_v27 = vmax.f32 %v737_v25, 0.0  ;;  %v780_v62 = vmax.f32 %v757_v60, 0.0  ;;  %v3806_v25 = vld [vmem:[%s6069_s5 + $0x30] sm:$0xf] }
  0xc3   : > { %v786_v28 = vpack.c.bf16 %v772_v27, %v771_v26  ;;  %v790_v63 = vpack.c.bf16 %v780_v62, %v779_v61  ;;  %v4445_v26 = vld [vmem:[%s6069_s5 + $0x34] sm:$0xf0]  ;;  %v4444_v27 = vld [vmem:[%s6069_s5 + $0x34] sm:$0xf] }
  0xc5   : > { %3773 = vmatmul.msk.bf16.gmra.mxu1 %vm829_vm2, %v786_v28  ;;  %v3807_v28 = vor.u32 %v4445_v26, %v3806_v25  ;;  %v4461_v26 = vld [vmem:[%s6071_s7 + $0x38] sm:$0xff] }
  0xc6   : > { %v739_v29 = vpop.f32.mrf.mxu0  ;;  %v759_v58 = vpop.f32.mrf.mxu1  ;;  %1307 = vmatpush.bf16.msrb.mxu0 %v4461_v26 }
  0xc7   : > { %v740_v30 = vadd.f32 %v4920_v15, %v739_v29  ;;  %v760_v18 = vadd.f32 %v4920_v15, %v759_v58  ;;  %v3808_v29 = vld [vmem:[%s6069_s5 + $0x38] sm:$0xf0]  ;;  %1033 = vmatpush.bf16.msra.mxu2 %v3807_v28 }
  0xc9   : > { %v773_v33 = vmax.f32 %v740_v30, 0.0  ;;  %v781_v22 = vmax.f32 %v760_v18, 0.0  ;;  %v3811_v30 = vor.u32 %v4444_v27, %v3808_v29  ;;  %v4466_v18 = vld [vmem:[%s6071_s7 + $0x60] sm:$0xff]  ;;  %v4465_v27 = vld [vmem:[%s6071_s7 + $0x58] sm:$0xff] }
  0xca   : > { %1359 = vmatpush.bf16.msra.mxu1 %v4466_v18 }
  0xcb   : > { %1082 = vmatpush.bf16.msra.mxu3 %v3811_v30 }
  0xce   : > { %v741_v31 = vpop.f32.mrf.mxu0  ;;  %v761_v3 = vpop.f32.mrf.mxu1  ;;  %1360 = vmatpush.bf16.msra.mxu1 %v4465_v27 }
  0xcf   : > { %v742_v32 = vadd.f32 %v4920_v15, %v741_v31  ;;  %v762_v19 = vadd.f32 %v4920_v15, %v761_v3 }
  0xd1   : > { %v774_v34 = vmax.f32 %v742_v32, 0.0  ;;  %v782_v23 = vmax.f32 %v762_v19, 0.0  ;;  %v3798_v32 = vld [vmem:[%s6069_s5 + $0x20] sm:$0xf] }
  0xd3   : > { %v787_v36 = vpack.c.bf16 %v774_v34, %v773_v33  ;;  %v791_v31 = vpack.c.bf16 %v782_v23, %v781_v22  ;;  %v4443_v33 = vld [vmem:[%s6069_s5 + $0x24] sm:$0xf0]  ;;  %v4442_v34 = vld [vmem:[%s6069_s5 + $0x24] sm:$0xf] }
  0xd4   : > { %v3799_v35 = vor.u32 %v4443_v33, %v3798_v32  ;;  %v4460_v33 = vld [vmem:[%s6071_s7 + $0x30] sm:$0xff] }
  0xd5   : > { %3774 = vmatmul.msk.bf16.gmra.mxu1 %vm829_vm2, %v787_v36  ;;  %v3800_v36 = vld [vmem:[%s6069_s5 + $0x28] sm:$0xf0]  ;;  %1308 = vmatpush.bf16.msrb.mxu0 %v4460_v33 }
  0xd6   : > { %v744_v37 = vpop.f32.mrf.mxu0  ;;  %v764_v24 = vpop.f32.mrf.mxu1  ;;  %1034 = vmatpush.bf16.msra.mxu2 %v3799_v35 }
  0xd7   : > { %v745_v39 = vadd.f32 %v4920_v15, %v744_v37  ;;  %v3803_v37 = vor.u32 %v4442_v34, %v3800_v36  ;;  %v765_v45 = vadd.f32 %v4920_v15, %v764_v24  ;;  %v4459_v36 = vld [vmem:[%s6071_s7 + $0x28] sm:$0xff] }
  0xd9   : > { %v775_v42 = vmax.f32 %v745_v39, 0.0  ;;  %1083 = vmatpush.bf16.msra.mxu3 %v3803_v37  ;;  %v4441_v39 = vld [vmem:[%s6069_s5 + $0x14] sm:$0xf0]  ;;  %v4464_v37 = vld [vmem:[%s6071_s7 + $0x50] sm:$0xff]  ;;  %1309 = vmatpush.bf16.msrb.mxu0 %v4459_v36 }
  0xda   : > { %1361 = vmatpush.bf16.msra.mxu1 %v4464_v37 }
  0xde   : > { %v746_v40 = vpop.f32.mrf.mxu0 }
  0xdf   : > { %v747_v41 = vadd.f32 %v4920_v15, %v746_v40  ;;  %v4440_v40 = vld [vmem:[%s6069_s5 + $0x14] sm:$0xf] }
  0xe1   : > { %v776_v43 = vmax.f32 %v747_v41, 0.0  ;;  %v766_v41 = vpop.f32.mrf.mxu1 }
  0xe2   : > { %v767_v46 = vadd.f32 %v4920_v15, %v766_v41  ;;  %v783_v15 = vmax.f32 %v765_v45, 0.0  ;;  %v4457_v45 = vld [vmem:[%s6071_s7 + $0x18] sm:$0xff] }
  0xe3   : > { %v788_v44 = vpack.c.bf16 %v776_v43, %v775_v42  ;;  %v3791_v42 = vor.u32 %v4441_v39, %v3790_v38  ;;  %v3792_v43 = vld [vmem:[%s6069_s5 + $0x18] sm:$0xf0] }
  0xe4   : > { %v784_v53 = vmax.f32 %v767_v46, 0.0  ;;  %v4463_v46 = vld [vmem:[%s6071_s7 + $0x48] sm:$0xff] }
  0xe5   : > { %3775 = vmatmul.msk.bf16.gmra.mxu1 %vm829_vm2, %v788_v44  ;;  %v3795_v44 = vor.u32 %v4440_v40, %v3792_v43  ;;  %1035 = vmatpush.bf16.msra.mxu2 %v3791_v42  ;;  %v4458_v43 = vld [vmem:[%s6071_s7 + $0x20] sm:$0xff] }
  0xe6   : > { %v792_v54 = vpack.c.bf16 %v784_v53, %v783_v15  ;;  %1310 = vmatpush.bf16.msrb.mxu0 %v4458_v43  ;;  %1362 = vmatpush.bf16.msra.mxu1 %v4463_v46 }
  0xe7   : > { %1084 = vmatpush.bf16.msra.mxu3 %v3795_v44 }
  0xe9   : > { %1036 = vmatpush.bf16.msra.mxu2 %v3783_v50 }
  0xea   : > { %1311 = vmatpush.bf16.msrb.mxu0 %v4457_v45  ;;  %1363 = vmatpush.bf16.msra.mxu1 %v4462_v57 }
  0xee   : > { %1312 = vmatpush.bf16.msrb.mxu0 %v4456_v48 }
  0xf5   : > { %3776 = vmatmul.msk.bf16.gmra.mxu1 %vm829_vm2, %v789_v51  ;;  %v3784_v51 = vld [vmem:[%s6069_s5 + $0x8] sm:$0xf0] }
  0xf6   : > { %v3787_v52 = vor.u32 %v4438_v49, %v3784_v51  ;;  %v4455_v49 = vld [vmem:[%s6071_s7 + $0x8] sm:$0xff] }
  0xf7   : > { %1313 = vmatpush.bf16.msrb.mxu0 %v4455_v49 }
  0xf8   : > { %1085 = vmatpush.bf16.msra.mxu3 %v3787_v52 }
 0x105   : > { %3777 = vmatmul.msk.bf16.gmra.mxu1 %vm829_vm2, %v790_v63 }
 0x115   : > { %3778 = vmatmul.msk.bf16.gmra.mxu1 %vm829_vm2, %v791_v31 }
 0x125   : > { %3779 = vmatmul.msk.bf16.gmra.mxu1 %vm829_vm2, %v792_v54 }
 0x132   : > { %v863_v55 = vpop.f32.mrf.mxu1 }
 0x133   : > { %v864_v58 = vadd.f32 %v5045_v56, %v863_v55 }
 0x135   : > { %v903_v61 = vmax.f32 %v864_v58, 0.0  ;;  %v4454_v58 = vld [vmem:[%s6071_s7] sm:$0xff] }
 0x136   : > { %1314 = vmatpush.bf16.msrb.mxu0 %v4454_v58 }
 0x13a   : > { %v865_v59 = vpop.f32.mrf.mxu1 }
 0x13b   : > { %v866_v60 = vadd.f32 %v5045_v56, %v865_v59 }
 0x13d   : > { %v904_v62 = vmax.f32 %v866_v60, 0.0 }
 0x13f   : > { %v919_v63 = vpack.c.bf16 %v904_v62, %v903_v61 }
 0x141   : > { %1037 = vmatmul.bf16.vlgmr.msra.gmra.mxu2 %v919_v63  ;;  %1086 = vmatmul.bf16.vlgmr.msra.gmra.mxu3 %v919_v63 }
 0x142   : > { %v868_v0 = vpop.f32.mrf.mxu1 }
 0x143   : > { %v869_v2 = vadd.f32 %v5045_v56, %v868_v0 }
 0x145   : > { %v905_v5 = vmax.f32 %v869_v2, 0.0 }
 0x14a   : > { %v870_v3 = vpop.f32.mrf.mxu1 }
 0x14b   : > { %v871_v4 = vadd.f32 %v5045_v56, %v870_v3 }
 0x14d   : > { %v906_v6 = vmax.f32 %v871_v4, 0.0  ;;  %v5114_v4 = vperm.slane %v943_v1, 0 }
 0x14f   : > { %v920_v7 = vpack.c.bf16 %v906_v6, %v905_v5  ;;  %v5116_v5 = vperm.slane %v943_v1, 1 }
 0x151   : > { %1042 = vmatmul.bf16.gmra.mxu2 %v920_v7  ;;  %1091 = vmatmul.bf16.gmra.mxu3 %v920_v7 }
 0x152   : > { %v873_v8 = vpop.f32.mrf.mxu1 }
 0x153   : > { %v874_v10 = vadd.f32 %v5045_v56, %v873_v8 }
 0x155   : > { %v907_v13 = vmax.f32 %v874_v10, 0.0 }
 0x15a   : > { %v875_v11 = vpop.f32.mrf.mxu1 }
 0x15b   : > { %v876_v12 = vadd.f32 %v5045_v56, %v875_v11 }
 0x15d   : > { %v908_v14 = vmax.f32 %v876_v12, 0.0 }
 0x15f   : > { %v921_v16 = vpack.c.bf16 %v908_v14, %v907_v13 }
 0x161   : > { %1047 = vmatmul.bf16.gmra.mxu2 %v921_v16  ;;  %1096 = vmatmul.bf16.gmra.mxu3 %v921_v16 }
 0x162   : > { %v878_v17 = vpop.f32.mrf.mxu1 }
 0x163   : > { %v879_v19 = vadd.f32 %v5045_v56, %v878_v17 }
 0x165   : > { %v909_v22 = vmax.f32 %v879_v19, 0.0 }
 0x16a   : > { %v880_v20 = vpop.f32.mrf.mxu1 }
 0x16b   : > { %v881_v21 = vadd.f32 %v5045_v56, %v880_v20 }
 0x16d   : > { %v910_v23 = vmax.f32 %v881_v21, 0.0 }
 0x16f   : > { %v922_v24 = vpack.c.bf16 %v910_v23, %v909_v22 }
 0x171   : > { %1052 = vmatmul.bf16.gmra.mxu2 %v922_v24  ;;  %1101 = vmatmul.bf16.gmra.mxu3 %v922_v24 }
 0x172   : > { %v883_v25 = vpop.f32.mrf.mxu1 }
 0x173   : > { %v884_v28 = vadd.f32 %v5045_v56, %v883_v25 }
 0x175   : > { %v911_v31 = vmax.f32 %v884_v28, 0.0 }
 0x17a   : > { %v885_v29 = vpop.f32.mrf.mxu1 }
 0x17b   : > { %v886_v30 = vadd.f32 %v5045_v56, %v885_v29 }
 0x17d   : > { %v912_v32 = vmax.f32 %v886_v30, 0.0 }
 0x17f   : > { %v923_v34 = vpack.c.bf16 %v912_v32, %v911_v31 }
 0x181   : > { %1057 = vmatmul.bf16.gmra.mxu2 %v923_v34  ;;  %1106 = vmatmul.bf16.gmra.mxu3 %v923_v34 }
 0x182   : > { %v888_v35 = vpop.f32.mrf.mxu1 }
 0x183   : > { %v889_v38 = vadd.f32 %v5045_v56, %v888_v35 }
 0x185   : > { %v913_v41 = vmax.f32 %v889_v38, 0.0 }
 0x18a   : > { %v890_v39 = vpop.f32.mrf.mxu1 }
 0x18b   : > { %v891_v40 = vadd.f32 %v5045_v56, %v890_v39 }
 0x18d   : > { %v914_v42 = vmax.f32 %v891_v40, 0.0 }
 0x18f   : > { %v924_v44 = vpack.c.bf16 %v914_v42, %v913_v41 }
 0x191   : > { %1062 = vmatmul.bf16.gmra.mxu2 %v924_v44  ;;  %1111 = vmatmul.bf16.gmra.mxu3 %v924_v44 }
 0x192   : > { %v893_v47 = vpop.f32.mrf.mxu1 }
 0x193   : > { %v894_v50 = vadd.f32 %v5045_v56, %v893_v47 }
 0x195   : > { %v915_v15 = vmax.f32 %v894_v50, 0.0 }
 0x19a   : > { %v895_v51 = vpop.f32.mrf.mxu1 }
 0x19b   : > { %v896_v52 = vadd.f32 %v5045_v56, %v895_v51 }
 0x19d   : > { %v916_v53 = vmax.f32 %v896_v52, 0.0 }
 0x19f   : > { %v925_v54 = vpack.c.bf16 %v916_v53, %v915_v15 }
 0x1a1   : > { %1067 = vmatmul.bf16.gmra.mxu2 %v925_v54  ;;  %1116 = vmatmul.bf16.gmra.mxu3 %v925_v54 }
 0x1a2   : > { %v898_v55 = vpop.f32.mrf.mxu1 }
 0x1a3   : > { %v899_v59 = vadd.f32 %v5045_v56, %v898_v55 }
 0x1a5   : > { %v917_v62 = vmax.f32 %v899_v59, 0.0 }
 0x1aa   : > { %v900_v60 = vpop.f32.mrf.mxu1 }
 0x1ab   : > { %v901_v61 = vadd.f32 %v5045_v56, %v900_v60 }
 0x1ad   : > { %v918_v63 = vmax.f32 %v901_v61, 0.0 }
 0x1af   : > { %v926_v0 = vpack.c.bf16 %v918_v63, %v917_v62 }
 0x1b1   : > { %1072 = vmatmul.bf16.gmra.mxu2 %v926_v0  ;;  %1121 = vmatmul.bf16.gmra.mxu3 %v926_v0 }
 0x1c4   : > { %v1038_v2 = vpop.f32.mrf.mxu2  ;;  %v1087_v3 = vpop.f32.mrf.mxu3 }
 0x1c5   : > { %v1039_v6 = vadd.f32 %v1038_v2, %v5114_v4  ;;  %v1088_v7 = vadd.f32 %v1087_v3, %v5116_v5 }
 0x1c7   : > { %v1127_v11 = vmax.f32 %v1039_v6, 0.0  ;;  %v1128_v12 = vmax.f32 %v1088_v7, 0.0 }
 0x1cc   : > { %v1040_v56 = vpop.f32.mrf.mxu2  ;;  %v1089_v8 = vpop.f32.mrf.mxu3 }
 0x1cd   : > { %v1041_v9 = vadd.f32 %v1040_v56, %v5114_v4  ;;  %v1090_v10 = vadd.f32 %v1089_v8, %v5116_v5 }
 0x1cf   : > { %v1129_v13 = vmax.f32 %v1041_v9, 0.0  ;;  %v1130_v14 = vmax.f32 %v1090_v10, 0.0 }
 0x1d1   : > { %v1160_v16 = vpack.c.bf16 %v1130_v14, %v1128_v12  ;;  %v1159_v17 = vpack.c.bf16 %v1129_v13, %v1127_v11 }
 0x1d3   : > { %1315 = vmatmul.bf16.vlgmr.msrb.gmra.mxu0 %v1159_v17  ;;  %1364 = vmatmul.bf16.vlgmr.msra.gmra.mxu1 %v1160_v16 }
 0x1d4   : > { %v1043_v18 = vpop.f32.mrf.mxu2  ;;  %v1092_v19 = vpop.f32.mrf.mxu3 }
 0x1d5   : > { %v1044_v20 = vadd.f32 %v1043_v18, %v5114_v4  ;;  %v1093_v21 = vadd.f32 %v1092_v19, %v5116_v5 }
 0x1d7   : > { %v1131_v26 = vmax.f32 %v1044_v20, 0.0  ;;  %v1132_v27 = vmax.f32 %v1093_v21, 0.0 }
 0x1dc   : > { %v1045_v22 = vpop.f32.mrf.mxu2  ;;  %v1094_v23 = vpop.f32.mrf.mxu3 }
 0x1dd   : > { %v1046_v24 = vadd.f32 %v1045_v22, %v5114_v4  ;;  %v1095_v25 = vadd.f32 %v1094_v23, %v5116_v5 }
 0x1df   : > { %v1133_v28 = vmax.f32 %v1046_v24, 0.0  ;;  %v1134_v29 = vmax.f32 %v1095_v25, 0.0 }
 0x1e1   : > { %v1161_v30 = vpack.c.bf16 %v1133_v28, %v1131_v26  ;;  %v1162_v31 = vpack.c.bf16 %v1134_v29, %v1132_v27 }
 0x1e3   : > { %1320 = vmatmul.bf16.gmra.mxu0 %v1161_v30  ;;  %1369 = vmatmul.bf16.gmra.mxu1 %v1162_v31 }
 0x1e4   : > { %v1048_v32 = vpop.f32.mrf.mxu2  ;;  %v1097_v33 = vpop.f32.mrf.mxu3 }
 0x1e5   : > { %v1049_v34 = vadd.f32 %v1048_v32, %v5114_v4  ;;  %v1098_v35 = vadd.f32 %v1097_v33, %v5116_v5 }
 0x1e7   : > { %v1135_v40 = vmax.f32 %v1049_v34, 0.0  ;;  %v1136_v41 = vmax.f32 %v1098_v35, 0.0 }
 0x1ec   : > { %v1050_v36 = vpop.f32.mrf.mxu2  ;;  %v1099_v37 = vpop.f32.mrf.mxu3 }
 0x1ed   : > { %v1051_v38 = vadd.f32 %v1050_v36, %v5114_v4  ;;  %v1100_v39 = vadd.f32 %v1099_v37, %v5116_v5 }
 0x1ef   : > { %v1137_v42 = vmax.f32 %v1051_v38, 0.0  ;;  %v1138_v43 = vmax.f32 %v1100_v39, 0.0 }
 0x1f1   : > { %v1163_v44 = vpack.c.bf16 %v1137_v42, %v1135_v40  ;;  %v1164_v45 = vpack.c.bf16 %v1138_v43, %v1136_v41  ;;  %v4034_v40 = vld [vmem:[%s6073_s9 + $0x68] sm:$0xf]  ;;  %v4501_v41 = vld [vmem:[%s6073_s9 + $0x74] sm:$0xf0]  ;;  %v4499_v42 = vld [vmem:[%s6073_s9 + $0x6c] sm:$0xf] }
 0x1f3   : > { %1325 = vmatmul.bf16.gmra.mxu0 %v1163_v44  ;;  %1374 = vmatmul.bf16.gmra.mxu1 %v1164_v45  ;;  %v4035_v45 = vor.u32 %v4501_v41, %v4034_v40 }
 0x1f4   : > { %v1053_v46 = vpop.f32.mrf.mxu2  ;;  %v1102_v47 = vpop.f32.mrf.mxu3 }
 0x1f5   : > { %v1054_v48 = vadd.f32 %v1053_v46, %v5114_v4  ;;  %v1103_v49 = vadd.f32 %v1102_v47, %v5116_v5  ;;  %v4036_v46 = vld [vmem:[%s6073_s9 + $0x78] sm:$0xf0]  ;;  %1904 = vmatpush.bf16.msra.mxu0 %v4035_v45 }
 0x1f6   : > { %v4039_v47 = vor.u32 %v4499_v42, %v4036_v46 }
 0x1f7   : > { %v1139_v53 = vmax.f32 %v1054_v48, 0.0  ;;  %v1140_v54 = vmax.f32 %v1103_v49, 0.0  ;;  %v4018_v48 = vld [vmem:[%s6073_s9 + $0x48] sm:$0xf]  ;;  %v4497_v49 = vld [vmem:[%s6073_s9 + $0x54] sm:$0xf0] }
 0x1f8   : > { %1953 = vmatpush.bf16.msrb.mxu1 %v4039_v47 }
 0x1fc   : > { %v1055_v50 = vpop.f32.mrf.mxu2  ;;  %v1104_v51 = vpop.f32.mrf.mxu3 }
 0x1fd   : > { %v1056_v52 = vadd.f32 %v1055_v50, %v5114_v4  ;;  %v1105_v15 = vadd.f32 %v1104_v51, %v5116_v5  ;;  %v4019_v50 = vor.u32 %v4497_v49, %v4018_v48  ;;  %v4495_v51 = vld [vmem:[%s6073_s9 + $0x4c] sm:$0xf] }
 0x1ff   : > { %v1141_v55 = vmax.f32 %v1056_v52, 0.0  ;;  %v1142_v57 = vmax.f32 %v1105_v15, 0.0  ;;  %v4020_v52 = vld [vmem:[%s6073_s9 + $0x58] sm:$0xf0]  ;;  %1905 = vmatpush.bf16.msra.mxu0 %v4019_v50 }
 0x200   : > { %v4023_v15 = vor.u32 %v4495_v51, %v4020_v52 }
 0x201   : > { %v1165_v58 = vpack.c.bf16 %v1141_v55, %v1139_v53  ;;  %v1166_v59 = vpack.c.bf16 %v1142_v57, %v1140_v54  ;;  %v4002_v55 = vld [vmem:[%s6073_s9 + $0x28] sm:$0xf]  ;;  %v4493_v57 = vld [vmem:[%s6073_s9 + $0x34] sm:$0xf0] }
 0x202   : > { %1954 = vmatpush.bf16.msrb.mxu1 %v4023_v15 }
 0x203   : > { %1330 = vmatmul.bf16.gmra.mxu0 %v1165_v58  ;;  %1379 = vmatmul.bf16.gmra.mxu1 %v1166_v59  ;;  %v4491_v58 = vld [vmem:[%s6073_s9 + $0x2c] sm:$0xf] }
 0x204   : > { %v1058_v60 = vpop.f32.mrf.mxu2  ;;  %v1107_v61 = vpop.f32.mrf.mxu3 }
 0x205   : > { %v1059_v62 = vadd.f32 %v1058_v60, %v5114_v4  ;;  %v1108_v63 = vadd.f32 %v1107_v61, %v5116_v5  ;;  %v4003_v61 = vor.u32 %v4493_v57, %v4002_v55  ;;  %v4480_v55 = vld [vmem:[%s6074_s10 + $0x4c] sm:$0xf0]  ;;  %v4478_v57 = vld [vmem:[%s6074_s10 + $0x44] sm:$0xf] }
 0x207   : > { %v1143_v6 = vmax.f32 %v1059_v62, 0.0  ;;  %v1144_v7 = vmax.f32 %v1108_v63, 0.0  ;;  %v4004_v62 = vld [vmem:[%s6073_s9 + $0x38] sm:$0xf0]  ;;  %1906 = vmatpush.bf16.msra.mxu0 %v4003_v61 }
 0x20c   : > { %v1060_v0 = vpop.f32.mrf.mxu2  ;;  %v1109_v1 = vpop.f32.mrf.mxu3 }
 0x20d   : > { %v1061_v2 = vadd.f32 %v1060_v0, %v5114_v4  ;;  %v1110_v3 = vadd.f32 %v1109_v1, %v5116_v5  ;;  %v4007_v1 = vor.u32 %v4491_v58, %v4004_v62 }
 0x20f   : > { %v1145_v56 = vmax.f32 %v1061_v2, 0.0  ;;  %v1146_v8 = vmax.f32 %v1110_v3, 0.0  ;;  %1955 = vmatpush.bf16.msrb.mxu1 %v4007_v1 }
 0x211   : > { %v1167_v9 = vpack.c.bf16 %v1145_v56, %v1143_v6  ;;  %v1168_v10 = vpack.c.bf16 %v1146_v8, %v1144_v7  ;;  %v3986_v56 = vld [vmem:[%s6073_s9 + $0x8] sm:$0xf]  ;;  %v4489_v8 = vld [vmem:[%s6073_s9 + $0x14] sm:$0xf0] }
 0x213   : > { %1335 = vmatmul.bf16.gmra.mxu0 %v1167_v9  ;;  %1384 = vmatmul.bf16.gmra.mxu1 %v1168_v10  ;;  %v3987_v9 = vor.u32 %v4489_v8, %v3986_v56 }
 0x214   : > { %v1063_v11 = vpop.f32.mrf.mxu2  ;;  %v1112_v12 = vpop.f32.mrf.mxu3 }
 0x215   : > { %v1064_v13 = vadd.f32 %v1063_v11, %v5114_v4  ;;  %v1113_v14 = vadd.f32 %v1112_v12, %v5116_v5  ;;  %1907 = vmatpush.bf16.msra.mxu0 %v3987_v9 }
 0x217   : > { %v1147_v20 = vmax.f32 %v1064_v13, 0.0  ;;  %v1148_v21 = vmax.f32 %v1113_v14, 0.0  ;;  %v5201_v13 = vld [vmem:[%s6072_s8] ss:$0 sm:$0xff] }
 0x21c   : > { %v1065_v16 = vpop.f32.mrf.mxu2  ;;  %v1114_v17 = vpop.f32.mrf.mxu3 }
 0x21d   : > { %v1066_v18 = vadd.f32 %v1065_v16, %v5114_v4  ;;  %v1115_v19 = vadd.f32 %v1114_v17, %v5116_v5 }
 0x21f   : > { %v1149_v22 = vmax.f32 %v1066_v18, 0.0  ;;  %v1150_v23 = vmax.f32 %v1115_v19, 0.0  ;;  %v3958_v18 = vld [vmem:[%s6074_s10 + $0x60] sm:$0xf]  ;;  %v4484_v19 = vld [vmem:[%s6074_s10 + $0x6c] sm:$0xf0] }
 0x221   : > { %v1169_v24 = vpack.c.bf16 %v1149_v22, %v1147_v20  ;;  %v1170_v25 = vpack.c.bf16 %v1150_v23, %v1148_v21  ;;  %v4482_v20 = vld [vmem:[%s6074_s10 + $0x64] sm:$0xf]  ;;  %v3959_v21 = vor.u32 %v4484_v19, %v3958_v18  ;;  %v3960_v22 = vld [vmem:[%s6074_s10 + $0x70] sm:$0xf0] }
 0x223   : > { %1340 = vmatmul.bf16.gmra.mxu0 %v1169_v24  ;;  %1389 = vmatmul.bf16.gmra.mxu1 %v1170_v25  ;;  %v3963_v24 = vor.u32 %v4482_v20, %v3960_v22 }
 0x224   : > { %v1068_v26 = vpop.f32.mrf.mxu2  ;;  %v1117_v27 = vpop.f32.mrf.mxu3  ;;  %1594 = vmatpush.bf16.msrb.mxu2 %v3959_v21 }
 0x225   : > { %v1069_v28 = vadd.f32 %v1068_v26, %v5114_v4  ;;  %v1118_v29 = vadd.f32 %v1117_v27, %v5116_v5  ;;  %1607 = vmatpush.bf16.msrb.mxu3 %v3963_v24 }
 0x227   : > { %v1151_v34 = vmax.f32 %v1069_v28, 0.0  ;;  %v1152_v35 = vmax.f32 %v1118_v29, 0.0 }
 0x22c   : > { %v1070_v30 = vpop.f32.mrf.mxu2  ;;  %v1119_v31 = vpop.f32.mrf.mxu3 }
 0x22d   : > { %v1071_v32 = vadd.f32 %v1070_v30, %v5114_v4  ;;  %v1120_v33 = vadd.f32 %v1119_v31, %v5116_v5 }
 0x22f   : > { %v1153_v36 = vmax.f32 %v1071_v32, 0.0  ;;  %v1154_v37 = vmax.f32 %v1120_v33, 0.0 }
 0x231   : > { %v1171_v38 = vpack.c.bf16 %v1153_v36, %v1151_v34  ;;  %v1172_v39 = vpack.c.bf16 %v1154_v37, %v1152_v35 }
 0x233   : > { %1345 = vmatmul.bf16.gmra.mxu0 %v1171_v38  ;;  %1394 = vmatmul.bf16.gmra.mxu1 %v1172_v39 }
 0x234   : > { %v1073_v43 = vpop.f32.mrf.mxu2  ;;  %v1122_v44 = vpop.f32.mrf.mxu3 }
 0x235   : > { %v1074_v53 = vadd.f32 %v1073_v43, %v5114_v4  ;;  %v1123_v54 = vadd.f32 %v1122_v44, %v5116_v5 }
 0x237   : > { %v1155_v2 = vmax.f32 %v1074_v53, 0.0  ;;  %v1156_v3 = vmax.f32 %v1123_v54, 0.0  ;;  %v3942_v54 = vld [vmem:[%s6074_s10 + $0x40] sm:$0xf] }
 0x23c   : > { %v1075_v59 = vpop.f32.mrf.mxu2  ;;  %v1124_v60 = vpop.f32.mrf.mxu3 }
 0x23d   : > { %v1076_v63 = vadd.f32 %v1075_v59, %v5114_v4  ;;  %v1125_v0 = vadd.f32 %v1124_v60, %v5116_v5  ;;  %v4487_v4 = vld [vmem:[%s6073_s9 + $0xc] sm:$0xf]  ;;  %v3988_v5 = vld [vmem:[%s6073_s9 + $0x18] sm:$0xf0]  ;;  %v3943_v59 = vor.u32 %v4480_v55, %v3942_v54  ;;  %v3944_v60 = vld [vmem:[%s6074_s10 + $0x50] sm:$0xf0] }
 0x23e   : > { %v3991_v12 = vor.u32 %v4487_v4, %v3988_v5  ;;  %v3947_v61 = vor.u32 %v4478_v57, %v3944_v60 }
 0x23f   : > { %v1157_v6 = vmax.f32 %v1076_v63, 0.0  ;;  %v1158_v7 = vmax.f32 %v1125_v0, 0.0  ;;  %1595 = vmatpush.bf16.msrb.mxu2 %v3943_v59 }
 0x240   : > { %1956 = vmatpush.bf16.msrb.mxu1 %v3991_v12  ;;  %1608 = vmatpush.bf16.msrb.mxu3 %v3947_v61 }
 0x241   : > { %v1173_v10 = vpack.c.bf16 %v1157_v6, %v1155_v2  ;;  %v1174_v11 = vpack.c.bf16 %v1158_v7, %v1156_v3 }
 0x243   : > { %1350 = vmatmul.bf16.gmra.mxu0 %v1173_v10  ;;  %1399 = vmatmul.bf16.gmra.mxu1 %v1174_v11 }
 0x250   : > { %v1316_v14 = vpop.f32.mrf.mxu0  ;;  %v1365_v16 = vpop.f32.mrf.mxu1 }
 0x251   : > { %v1317_v17 = vadd.f32 %v5201_v13, %v1316_v14 }
 0x253   : > { %v1366_v23 = vadd.f32 %v1365_v16, %v1317_v17 }
 0x255   : > { %v1405_v27 = vmax.f32 %v1366_v23, 0.0 }
 0x257   : > { %v1421_v30 = vpack.c.bf16 %v1405_v27, %v1405_v27 }
 0x258   : > { %v1318_v25 = vpop.f32.mrf.mxu0  ;;  %v1367_v26 = vpop.f32.mrf.mxu1 }
 0x259   : > { %v1319_v28 = vadd.f32 %v5201_v13, %v1318_v25  ;;  %v1674_v35 = vunpack.c.l.b16 %v1421_v30  ;;  %v1437_v62 = vunpack.c.l.bf16 %v1421_v30 }
 0x25b   : > { %v1368_v29 = vadd.f32 %v1367_v26, %v1319_v28  ;;  %v5252_v6 = vsel %vm829_vm2, %v1437_v62, -inf }
 0x25d   : > { %v1406_v31 = vmax.f32 %v1368_v29, 0.0 }
 0x25f   : > { %v1422_v32 = vpack.c.bf16 %v1406_v31, %v1406_v31 }
 0x260   : > { %v1321_v33 = vpop.f32.mrf.mxu0  ;;  %v1370_v34 = vpop.f32.mrf.mxu1 }
 0x261   : > { %v1675_v36 = vunpack.c.l.b16 %v1422_v32  ;;  %v1322_v37 = vadd.f32 %v5201_v13, %v1321_v33  ;;  %v1438_v4 = vunpack.c.l.bf16 %v1422_v32 }
 0x263   : > { %v5218_v38 = vpack.c.b16 %v1675_v36, %v1674_v35  ;;  %v1371_v39 = vadd.f32 %v1370_v34, %v1322_v37  ;;  %v5261_v18 = vsel %vm829_vm2, %v1438_v4, -inf  ;;  %v3926_v37 = vld [vmem:[%s6074_s10 + $0x20] sm:$0xf] }
 0x265   : > { %4056 = vmatmul.msk.bf16.vlgmr.msra.gmra.mxu0 %vm829_vm2, %v5218_v38  ;;  %4064 = vmatmul.msk.bf16.vlgmr.msrb.gmra.mxu1 %vm829_vm2, %v5218_v38  ;;  %v1407_v42 = vmax.f32 %v1371_v39, 0.0  ;;  %v4476_v39 = vld [vmem:[%s6074_s10 + $0x2c] sm:$0xf0] }
 0x267   : > { %v5225_v45 = vpack.c.bf16 %v1407_v42, %v1407_v42  ;;  %v3927_v42 = vor.u32 %v4476_v39, %v3926_v37  ;;  %v3912_v37 = vld [vmem:[%s6074_s10 + $0x10] sm:$0xf0] }
 0x268   : > { %v1323_v40 = vpop.f32.mrf.mxu0  ;;  %v1372_v41 = vpop.f32.mrf.mxu1 }
 0x269   : > { %v1324_v43 = vadd.f32 %v5201_v13, %v1323_v40  ;;  %v1676_v50 = vunpack.c.l.b16 %v5225_v45  ;;  %v4474_v40 = vld [vmem:[%s6074_s10 + $0x24] sm:$0xf]  ;;  %1596 = vmatpush.bf16.msrb.mxu2 %v3927_v42 }
 0x26b   : > { %v1373_v44 = vadd.f32 %v1372_v41, %v1324_v43  ;;  %v3928_v43 = vld [vmem:[%s6074_s10 + $0x30] sm:$0xf0] }
 0x26d   : > { %v1408_v46 = vmax.f32 %v1373_v44, 0.0  ;;  %v3931_v44 = vor.u32 %v4474_v40, %v3928_v43 }
 0x26f   : > { %v5227_v47 = vpack.c.bf16 %v1408_v46, %v1408_v46  ;;  %1609 = vmatpush.bf16.msrb.mxu3 %v3931_v44 }
 0x270   : > { %v1326_v48 = vpop.f32.mrf.mxu0  ;;  %v1375_v49 = vpop.f32.mrf.mxu1 }
 0x271   : > { %v1677_v51 = vunpack.c.l.b16 %v5227_v47  ;;  %v1327_v52 = vadd.f32 %v5201_v13, %v1326_v48 }
 0x273   : > { %v5232_v15 = vpack.c.b16 %v1677_v51, %v1676_v50  ;;  %v1376_v53 = vadd.f32 %v1375_v49, %v1327_v52 }
 0x275   : > { %v1409_v58 = vmax.f32 %v1376_v53, 0.0  ;;  %4057 = vmatmul.msk.bf16.gmra.mxu0 %vm829_vm2, %v5232_v15  ;;  %4065 = vmatmul.msk.bf16.gmra.mxu1 %vm829_vm2, %v5232_v15 }
 0x277   : > { %v1425_v63 = vpack.c.bf16 %v1409_v58, %v1409_v58 }
 0x278   : > { %v1328_v0 = vpop.f32.mrf.mxu0  ;;  %v1377_v1 = vpop.f32.mrf.mxu1 }
 0x279   : > { %v1441_v2 = vunpack.c.l.bf16 %v1425_v63  ;;  %v1329_v3 = vadd.f32 %v5201_v13, %v1328_v0  ;;  %v1678_v12 = vunpack.c.l.b16 %v1425_v63 }
 0x27b   : > { %v5255_v7 = vsel %vm829_vm2, %v1441_v2, -inf  ;;  %v1378_v56 = vadd.f32 %v1377_v1, %v1329_v3 }
 0x27c   : > { %v1458_v8 = vmax.f32 %v5252_v6, %v5255_v7  ;;  %v3966_v7 = vld [vmem:[%s6074_s10 + $0x68] sm:$0xf] }
 0x27d   : > { %v1410_v9 = vmax.f32 %v1378_v56, 0.0 }
 0x27f   : > { %v1426_v5 = vpack.c.bf16 %v1410_v9, %v1410_v9 }
 0x280   : > { %v1331_v10 = vpop.f32.mrf.mxu0  ;;  %v1380_v11 = vpop.f32.mrf.mxu1 }
 0x281   : > { %v1442_v14 = vunpack.c.l.bf16 %v1426_v5  ;;  %v1679_v16 = vunpack.c.l.b16 %v1426_v5  ;;  %v1332_v17 = vadd.f32 %v5201_v13, %v1331_v10 }
 0x283   : > { %v5264_v19 = vsel %vm829_vm2, %v1442_v14, -inf  ;;  %v5266_v20 = vpack.c.b16 %v1679_v16, %v1678_v12  ;;  %v1381_v22 = vadd.f32 %v1380_v11, %v1332_v17 }
 0x284   : > { %v1460_v21 = vmax.f32 %v5261_v18, %v5264_v19  ;;  %v4483_v18 = vld [vmem:[%s6074_s10 + $0x6c] sm:$0xf] }
 0x285   : > { %4058 = vmatmul.msk.bf16.gmra.mxu0 %vm829_vm2, %v5266_v20  ;;  %4066 = vmatmul.msk.bf16.gmra.mxu1 %vm829_vm2, %v5266_v20  ;;  %v1411_v25 = vmax.f32 %v1381_v22, 0.0 }
 0x287   : > { %v5275_v28 = vpack.c.bf16 %v1411_v25, %v1411_v25 }
 0x288   : > { %v1333_v23 = vpop.f32.mrf.mxu0  ;;  %v1382_v24 = vpop.f32.mrf.mxu1 }
 0x289   : > { %v1334_v26 = vadd.f32 %v5201_v13, %v1333_v23  ;;  %v1680_v33 = vunpack.c.l.b16 %v5275_v28 }
 0x28b   : > { %v1383_v27 = vadd.f32 %v1382_v24, %v1334_v26 }
 0x28d   : > { %v1412_v29 = vmax.f32 %v1383_v27, 0.0  ;;  %v3910_v27 = vld [vmem:[%s6074_s10] sm:$0xf] }
 0x28f   : > { %v5277_v30 = vpack.c.bf16 %v1412_v29, %v1412_v29  ;;  %v4472_v29 = vld [vmem:[%s6074_s10 + $0xc] sm:$0xf0] }
 0x290   : > { %v1336_v31 = vpop.f32.mrf.mxu0  ;;  %v1385_v32 = vpop.f32.mrf.mxu1 }
 0x291   : > { %v1681_v34 = vunpack.c.l.b16 %v5277_v30  ;;  %v1337_v35 = vadd.f32 %v5201_v13, %v1336_v31  ;;  %v4470_v31 = vld [vmem:[%s6074_s10 + $0x4] sm:$0xf] }
 0x292   : > { %v3915_v39 = vor.u32 %v4470_v31, %v3912_v37 }
 0x293   : > { %v5282_v36 = vpack.c.b16 %v1681_v34, %v1680_v33  ;;  %v1386_v41 = vadd.f32 %v1385_v32, %v1337_v35  ;;  %v3911_v35 = vor.u32 %v4472_v29, %v3910_v27 }
 0x294   : > { %1610 = vmatpush.bf16.msrb.mxu3 %v3915_v39 }
 0x295   : > { %4059 = vmatmul.msk.bf16.gmra.mxu0 %vm829_vm2, %v5282_v36  ;;  %4067 = vmatmul.msk.bf16.gmra.mxu1 %vm829_vm2, %v5282_v36  ;;  %v1413_v49 = vmax.f32 %v1386_v41, 0.0 }
 0x296   : > { %1597 = vmatpush.bf16.msrb.mxu2 %v3911_v35 }
 0x297   : > { %v1429_v52 = vpack.c.bf16 %v1413_v49, %v1413_v49 }
 0x298   : > { %v1338_v46 = vpop.f32.mrf.mxu0  ;;  %v1387_v48 = vpop.f32.mrf.mxu1 }
 0x299   : > { %v1339_v50 = vadd.f32 %v5201_v13, %v1338_v46  ;;  %v1682_v58 = vunpack.c.l.b16 %v1429_v52  ;;  %v1445_v32 = vunpack.c.l.bf16 %v1429_v52 }
 0x29b   : > { %v1388_v51 = vadd.f32 %v1387_v48, %v1339_v50  ;;  %v1465_v42 = vsel %vm829_vm2, %v1445_v32, -inf }
 0x29d   : > { %v1414_v53 = vmax.f32 %v1388_v51, 0.0 }
 0x29f   : > { %v1430_v54 = vpack.c.bf16 %v1414_v53, %v1414_v53 }
 0x2a0   : > { %v1341_v55 = vpop.f32.mrf.mxu0  ;;  %v1390_v57 = vpop.f32.mrf.mxu1 }
 0x2a1   : > { %v1683_v59 = vunpack.c.l.b16 %v1430_v54  ;;  %v1342_v60 = vadd.f32 %v5201_v13, %v1341_v55  ;;  %v1446_v33 = vunpack.c.l.bf16 %v1430_v54  ;;  %v1466_v54 = vmax.f32 %v1458_v8, %v1465_v42  ;;  %v4485_v8 = vld [vmem:[%s6074_s10 + $0x74] sm:$0xf0] }
 0x2a2   : > { %v3967_v19 = vor.u32 %v4485_v8, %v3966_v7 }
 0x2a3   : > { %v5302_v61 = vpack.c.b16 %v1683_v59, %v1682_v58  ;;  %v1391_v62 = vadd.f32 %v1390_v57, %v1342_v60  ;;  %v1467_v43 = vsel %vm829_vm2, %v1446_v33, -inf }
 0x2a4   : > { %v1468_v55 = vmax.f32 %v1460_v21, %v1467_v43  ;;  %v3968_v21 = vld [vmem:[%s6074_s10 + $0x78] sm:$0xf0]  ;;  %1620 = vmatpush.bf16.msra.mxu2 %v3967_v19 }
 0x2a5   : > { %4060 = vmatmul.msk.bf16.gmra.mxu0 %vm829_vm2, %v5302_v61  ;;  %4068 = vmatmul.msk.bf16.gmra.mxu1 %vm829_vm2, %v5302_v61  ;;  %v1415_v1 = vmax.f32 %v1391_v62, 0.0 }
 0x2a7   : > { %v5309_v56 = vpack.c.bf16 %v1415_v1, %v1415_v1  ;;  %v3971_v1 = vor.u32 %v4483_v18, %v3968_v21 }
 0x2a8   : > { %v1343_v63 = vpop.f32.mrf.mxu0  ;;  %v1392_v0 = vpop.f32.mrf.mxu1 }
 0x2a9   : > { %v1344_v2 = vadd.f32 %v5201_v13, %v1343_v63  ;;  %v1684_v11 = vunpack.c.l.b16 %v5309_v56  ;;  %v1443_v63 = vunpack.c.l.bf16 %v5275_v28  ;;  %1633 = vmatpush.bf16.msra.mxu3 %v3971_v1  ;;  %v4500_v1 = vld [vmem:[%s6073_s9 + $0x6c] sm:$0xf0] }
 0x2ab   : > { %v1393_v3 = vadd.f32 %v1392_v0, %v1344_v2  ;;  %v1461_v2 = vsel %vm829_vm2, %v1443_v63, -inf }
 0x2ad   : > { %v1416_v9 = vmax.f32 %v1393_v3, 0.0  ;;  %v1444_v3 = vunpack.c.l.bf16 %v5277_v30  ;;  %v4479_v30 = vld [vmem:[%s6074_s10 + $0x4c] sm:$0xf] }
 0x2af   : > { %v5311_v4 = vpack.c.bf16 %v1416_v9, %v1416_v9  ;;  %v1463_v27 = vsel %vm829_vm2, %v1444_v3, -inf  ;;  %v4498_v3 = vld [vmem:[%s6073_s9 + $0x64] sm:$0xf] }
 0x2b0   : > { %v1346_v5 = vpop.f32.mrf.mxu0  ;;  %v1395_v10 = vpop.f32.mrf.mxu1 }
 0x2b1   : > { %v1685_v12 = vunpack.c.l.b16 %v5311_v4  ;;  %v1347_v14 = vadd.f32 %v5201_v13, %v1346_v5 }
 0x2b3   : > { %v5316_v16 = vpack.c.b16 %v1685_v12, %v1684_v11  ;;  %v1396_v17 = vadd.f32 %v1395_v10, %v1347_v14  ;;  %v1439_v10 = vunpack.c.l.bf16 %v5225_v45  ;;  %v1440_v11 = vunpack.c.l.bf16 %v5227_v47  ;;  %v3950_v14 = vld [vmem:[%s6074_s10 + $0x48] sm:$0xf] }
 0x2b4   : > { %v1448_v45 = vunpack.c.l.bf16 %v5311_v4  ;;  %v3936_v4 = vld [vmem:[%s6074_s10 + $0x38] sm:$0xf0] }
 0x2b5   : > { %v1417_v22 = vmax.f32 %v1396_v17, 0.0  ;;  %4061 = vmatmul.msk.bf16.gmra.mxu0 %vm829_vm2, %v5316_v16  ;;  %4069 = vmatmul.msk.bf16.gmra.mxu1 %vm829_vm2, %v5316_v16  ;;  %v4481_v17 = vld [vmem:[%s6074_s10 + $0x54] sm:$0xf0]  ;;  %v1455_v33 = vsel %vm829_vm2, %v1439_v10, -inf  ;;  %v1456_v35 = vsel %vm829_vm2, %v1440_v11, -inf }
 0x2b6   : > { %v3951_v47 = vor.u32 %v4481_v17, %v3950_v14  ;;  %v1471_v39 = vsel %vm829_vm2, %v1448_v45, -inf  ;;  %v1464_v42 = vmax.f32 %v1456_v35, %v1463_v27  ;;  %v4010_v11 = vld [vmem:[%s6073_s9 + $0x40] sm:$0xf]  ;;  %v4496_v14 = vld [vmem:[%s6073_s9 + $0x4c] sm:$0xf0] }
 0x2b7   : > { %v1433_v25 = vpack.c.bf16 %v1417_v22, %v1417_v22  ;;  %v4494_v17 = vld [vmem:[%s6073_s9 + $0x44] sm:$0xf] }
 0x2b8   : > { %v1348_v23 = vpop.f32.mrf.mxu0  ;;  %v1397_v24 = vpop.f32.mrf.mxu1  ;;  %1621 = vmatpush.bf16.msra.mxu2 %v3951_v47  ;;  %v4492_v47 = vld [vmem:[%s6073_s9 + $0x2c] sm:$0xf0]  ;;  %v4486_v27 = vld [vmem:[%s6073_s9 + $0x4] sm:$0xf] }
 0x2b9   : > { %v1349_v26 = vadd.f32 %v5201_v13, %v1348_v23  ;;  %v1449_v40 = vunpack.c.l.bf16 %v1433_v25  ;;  %v1686_v46 = vunpack.c.l.b16 %v1433_v25  ;;  %v3952_v23 = vld [vmem:[%s6074_s10 + $0x58] sm:$0xf0] }
 0x2ba   : > { %v3955_v25 = vor.u32 %v4479_v30, %v3952_v23  ;;  %v4012_v30 = vld [vmem:[%s6073_s9 + $0x50] sm:$0xf0]  ;;  %v4490_v23 = vld [vmem:[%s6073_s9 + $0x24] sm:$0xf] }
 0x2bb   : > { %v1398_v34 = vadd.f32 %v1397_v24, %v1349_v26  ;;  %v1473_v50 = vsel %vm829_vm2, %v1449_v40, -inf  ;;  %v3934_v24 = vld [vmem:[%s6074_s10 + $0x28] sm:$0xf]  ;;  %v4477_v26 = vld [vmem:[%s6074_s10 + $0x34] sm:$0xf0]  ;;  %v4015_v45 = vor.u32 %v4494_v17, %v4012_v30 }
 0x2bc   : > { %v1474_v60 = vmax.f32 %v1466_v54, %v1473_v50  ;;  %v3935_v32 = vor.u32 %v4477_v26, %v3934_v24  ;;  %1634 = vmatpush.bf16.msra.mxu3 %v3955_v25  ;;  %v1472_v50 = vmax.f32 %v1464_v42, %v1471_v39  ;;  %v3996_v24 = vld [vmem:[%s6073_s9 + $0x30] sm:$0xf0]  ;;  %v4533_v39 = vld [vmem:[#allocation4 + $0xf4] sm:$0xf0]  ;;  %v4511_v17 = vld [vmem:[#allocation4 + $0x44] sm:$0xf0] }
 0x2bd   : > { %v1418_v41 = vmax.f32 %v1398_v34, 0.0  ;;  %v3999_v26 = vor.u32 %v4490_v23, %v3996_v24  ;;  %v4549_v42 = vld [vmem:[#allocation4 + $0x174] sm:$0xf0]  ;;  %v4234_v24 = vld [vmem:[#allocation4 + $0x140] sm:$0xf] }
 0x2be   : > { %1622 = vmatpush.bf16.msra.mxu2 %v3935_v32 }
 0x2bf   : > { %v1434_v44 = vpack.c.bf16 %v1418_v41, %v1418_v41  ;;  %v1462_v41 = vmax.f32 %v1455_v33, %v1461_v2  ;;  %v4130_v33 = vld [vmem:[#allocation4 + $0x70] sm:$0xf] }
 0x2c0   : > { %v1351_v48 = vpop.f32.mrf.mxu0  ;;  %v1400_v49 = vpop.f32.mrf.mxu1 }
 0x2c1   : > { %v1450_v51 = vunpack.c.l.bf16 %v1434_v44  ;;  %v1687_v52 = vunpack.c.l.b16 %v1434_v44  ;;  %v1352_v53 = vadd.f32 %v5201_v13, %v1351_v48 }
 0x2c3   : > { %v1475_v57 = vsel %vm829_vm2, %v1450_v51, -inf  ;;  %v5346_v58 = vpack.c.b16 %v1687_v52, %v1686_v46  ;;  %v1401_v59 = vadd.f32 %v1400_v49, %v1352_v53  ;;  %v3918_v51 = vld [vmem:[%s6074_s10 + $0x8] sm:$0xf]  ;;  %v4473_v52 = vld [vmem:[%s6074_s10 + $0x14] sm:$0xf0] }
 0x2c4   : > { %v1476_v62 = vmax.f32 %v1468_v55, %v1475_v57  ;;  %v4471_v53 = vld [vmem:[%s6074_s10 + $0xc] sm:$0xf]  ;;  %v3919_v57 = vor.u32 %v4473_v52, %v3918_v51  ;;  %v4186_v52 = vld [vmem:[#allocation4 + $0xe0] sm:$0xf] }
 0x2c5   : > { %v1419_v0 = vmax.f32 %v1401_v59, 0.0  ;;  %4062 = vmatmul.msk.bf16.gmra.mxu0 %vm829_vm2, %v5346_v58  ;;  %4070 = vmatmul.msk.bf16.gmra.mxu1 %vm829_vm2, %v5346_v58  ;;  %v3920_v59 = vld [vmem:[%s6074_s10 + $0x18] sm:$0xf0] }
 0x2c6   : > { %v5353_v6 = vmax.f32 %v1474_v60, %v1476_v62  ;;  %v3923_v63 = vor.u32 %v4471_v53, %v3920_v59  ;;  %1623 = vmatpush.bf16.msra.mxu2 %v3919_v57  ;;  %v4531_v53 = vld [vmem:[#allocation4 + $0xe4] sm:$0xf0] }
 0x2c7   : > { %v1435_v9 = vpack.c.bf16 %v1419_v0, %v1419_v0 }
 0x2c8   : > { %v1353_v28 = vpop.f32.mrf.mxu0  ;;  %v1402_v12 = vpop.f32.mrf.mxu1 }
 0x2c9   : > { %v1354_v5 = vadd.f32 %v5201_v13, %v1353_v28  ;;  %v1447_v13 = vunpack.c.l.bf16 %v5309_v56  ;;  %v4475_v56 = vld [vmem:[%s6074_s10 + $0x2c] sm:$0xf]  ;;  %v1451_v29 = vunpack.c.l.bf16 %v1435_v9  ;;  %v1688_v44 = vunpack.c.l.b16 %v1435_v9  ;;  %v4026_v28 = vld [vmem:[%s6073_s9 + $0x60] sm:$0xf] }
 0x2ca   : > { %v3939_v34 = vor.u32 %v4475_v56, %v3936_v4  ;;  %v3978_v56 = vld [vmem:[%s6073_s9] sm:$0xf]  ;;  %v4488_v4 = vld [vmem:[%s6073_s9 + $0xc] sm:$0xf0] }
 0x2cb   : > { %v1403_v22 = vadd.f32 %v1402_v12, %v1354_v5  ;;  %v1469_v37 = vsel %vm829_vm2, %v1447_v13, -inf  ;;  %v1477_v43 = vsel %vm829_vm2, %v1451_v29, -inf  ;;  %v4027_v5 = vor.u32 %v4500_v1, %v4026_v28  ;;  %v3980_v29 = vld [vmem:[%s6073_s9 + $0x10] sm:$0xf0]  ;;  %v4178_v1 = vld [vmem:[#allocation4 + $0xd0] sm:$0xf] }
 0x2cc   : > { %v1470_v49 = vmax.f32 %v1462_v41, %v1469_v37  ;;  %1635 = vmatpush.bf16.msra.mxu3 %v3939_v34  ;;  %v4011_v13 = vor.u32 %v4496_v14, %v4010_v11  ;;  %v3983_v32 = vor.u32 %v4486_v27, %v3980_v29  ;;  %v4517_v34 = vld [vmem:[#allocation4 + $0x74] sm:$0xf0]  ;;  %v4194_v37 = vld [vmem:[#allocation4 + $0xf0] sm:$0xf]  ;;  %v4106_v14 = vld [vmem:[#allocation4 + $0x40] sm:$0xf] }
 0x2cd   : > { %v1420_v31 = vmax.f32 %v1403_v22, 0.0  ;;  %v3994_v22 = vld [vmem:[%s6073_s9 + $0x20] sm:$0xf]  ;;  %v4131_v35 = vor.u32 %v4517_v34, %v4130_v33  ;;  %v4258_v41 = vld [vmem:[#allocation4 + $0x170] sm:$0xf] }
 0x2ce   : > { %v1478_v60 = vmax.f32 %v1470_v49, %v1477_v43  ;;  %v3995_v25 = vor.u32 %v4492_v47, %v3994_v22  ;;  %v4322_v43 = vld [vmem:[#allocation4 + $0x1f0] sm:$0xf]  ;;  %v4515_v49 = vld [vmem:[#allocation4 + $0x64] sm:$0xf0]  ;;  %v4170_v22 = vld [vmem:[#allocation4 + $0xc0] sm:$0xf] }
 0x2cf   : > { %v1436_v40 = vpack.c.bf16 %v1420_v31, %v1420_v31  ;;  %v3979_v31 = vor.u32 %v4488_v4, %v3978_v56  ;;  %v4527_v47 = vld [vmem:[#allocation4 + $0xc4] sm:$0xf0]  ;;  %v4098_v27 = vld [vmem:[#allocation4 + $0x30] sm:$0xf]  ;;  %v4509_v29 = vld [vmem:[#allocation4 + $0x34] sm:$0xf0] }
 0x2d0   : > { %1636 = vmatpush.bf16.msra.mxu3 %v3923_v63  ;;  %v4171_v23 = vor.u32 %v4527_v47, %v4170_v22  ;;  %v4559_v4 = vld [vmem:[#allocation4 + $0x1c4] sm:$0xf0]  ;;  %v4099_v33 = vor.u32 %v4509_v29, %v4098_v27  ;;  %v4162_v34 = vld [vmem:[#allocation4 + $0xb0] sm:$0xf]  ;;  %v4266_v47 = vld [vmem:[#allocation4 + $0x180] sm:$0xf] }
 0x2d1   : > { %v1452_v46 = vunpack.c.l.bf16 %v1436_v40  ;;  %v1689_v48 = vunpack.c.l.b16 %v1436_v40  ;;  %v4195_v40 = vor.u32 %v4533_v39, %v4194_v37  ;;  %v4535_v22 = vld [vmem:[#allocation4 + $0x104] sm:$0xf0] }
 0x2d3   : > { %v1479_v54 = vsel %vm829_vm2, %v1452_v46, -inf  ;;  %v5414_v55 = vpack.c.b16 %v1689_v48, %v1688_v44  ;;  %v4259_v44 = vor.u32 %v4549_v42, %v4258_v41  ;;  %v4565_v46 = vld [vmem:[#allocation4 + $0x1f4] sm:$0xf0]  ;;  %v4122_v48 = vld [vmem:[#allocation4 + $0x60] sm:$0xf] }
 0x2d4   : > { %v1480_v62 = vmax.f32 %v1472_v50, %v1479_v54  ;;  %v4323_v50 = vor.u32 %v4565_v46, %v4322_v43  ;;  %v4123_v51 = vor.u32 %v4515_v49, %v4122_v48  ;;  %v4187_v54 = vor.u32 %v4531_v53, %v4186_v52  ;;  %v4226_v41 = vld [vmem:[#allocation4 + $0x130] sm:$0xf]  ;;  %v4541_v42 = vld [vmem:[#allocation4 + $0x134] sm:$0xf0]  ;;  %v4090_v48 = vld [vmem:[#allocation4 + $0x20] sm:$0xf] }
 0x2d5   : > { %4063 = vmatmul.msk.bf16.gmra.mxu0 %vm829_vm2, %v5414_v55  ;;  %4071 = vmatmul.msk.bf16.gmra.mxu1 %vm829_vm2, %v5414_v55  ;;  %v4227_v43 = vor.u32 %v4541_v42, %v4226_v41  ;;  %v4557_v46 = vld [vmem:[#allocation4 + $0x1b4] sm:$0xf0]  ;;  %v4523_v52 = vld [vmem:[#allocation4 + $0xa4] sm:$0xf0]  ;;  %v4138_v41 = vld [vmem:[#allocation4 + $0x80] sm:$0xf] }
 0x2d6   : > { %v1482_v0 = vmax.f32 %v1478_v60, %v1480_v62  ;;  %2884 = vmatpush.bf16.msrb.mxu0 %v4259_v44  ;;  %2933 = vmatpush.bf16.msra.mxu1 %v4323_v50  ;;  %v4547_v60 = vld [vmem:[#allocation4 + $0x164] sm:$0xf0]  ;;  %v4314_v62 = vld [vmem:[#allocation4 + $0x1e0] sm:$0xf]  ;;  %v4290_v44 = vld [vmem:[#allocation4 + $0x1b0] sm:$0xf] }
 0x2d7   : > { %v4291_v49 = vor.u32 %v4557_v46, %v4290_v44  ;;  %v4507_v50 = vld [vmem:[#allocation4 + $0x24] sm:$0xf0] }
 0x2d8   : > { %v1483_v7 = vmax.f32 %v5353_v6, %v1482_v0  ;;  %v4028_v6 = vld [vmem:[%s6073_s9 + $0x70] sm:$0xf0]  ;;  %v4563_v0 = vld [vmem:[#allocation4 + $0x1e4] sm:$0xf0]  ;;  %v4091_v53 = vor.u32 %v4507_v50, %v4090_v48 }
 0x2d9   : > { %v4031_v10 = vor.u32 %v4498_v3, %v4028_v6 }
 0x2da   : > { %v1484_v8 = vrot.slane %v1483_v7, 4 }
 0x2dc   : > { %v1485_v18 = vmax.f32 %v1483_v7, %v1484_v8  ;;  %v4114_v7 = vld [vmem:[#allocation4 + $0x50] sm:$0xf]  ;;  %v4513_v8 = vld [vmem:[#allocation4 + $0x54] sm:$0xf0] }
 0x2de   : > { %v1486_v19 = vrot.slane %v1485_v18, 2 }
 0x2e0   : > { %v1487_v21 = vmax.f32 %v1485_v18, %v1486_v19  ;;  %v4315_v18 = vor.u32 %v4563_v0, %v4314_v62  ;;  %v4115_v19 = vor.u32 %v4513_v8, %v4114_v7  ;;  %v4539_v62 = vld [vmem:[#allocation4 + $0x124] sm:$0xf0]  ;;  %v4282_v8 = vld [vmem:[#allocation4 + $0x1a0] sm:$0xf] }
 0x2e2   : > { %v1488_v2 = vrot.slane %v1487_v21, 1  ;;  %v5480_v57 = vpop.f32.mrf.mxu0  ;;  %v5482_v59 = vpop.f32.mrf.mxu1  ;;  %2934 = vmatpush.bf16.msra.mxu1 %v4315_v18  ;;  %v4555_v18 = vld [vmem:[#allocation4 + $0x1a4] sm:$0xf0] }
 0x2e4   : > { %v1489_v9 = vmax.f32 %v1487_v21, %v1488_v2  ;;  %v4529_v2 = vld [vmem:[#allocation4 + $0xd4] sm:$0xf0] }
 0x2e5   : > { %v4179_v3 = vor.u32 %v4529_v2, %v4178_v1  ;;  %v4283_v1 = vor.u32 %v4555_v18, %v4282_v8  ;;  %v4505_v2 = vld [vmem:[#allocation4 + $0x14] sm:$0xf0] }
 0x2e6   : > { %v1490_v12 = vpack.c.bf16 %v1489_v9, %v1489_v9  ;;  %v4242_v9 = vld [vmem:[#allocation4 + $0x150] sm:$0xf] }
 0x2e8   : > { %3972 = vmatmul.msk.bf16.vlgmr.msrb.gmra.mxu2 %vm829_vm2, %v1490_v12  ;;  %3973 = vmatmul.msk.bf16.vlgmr.msrb.gmra.mxu3 %vm829_vm2, %v1490_v12 }
 0x2e9   : > { %1806 = vmatpush.bf16.msrb.mxu2 %v4027_v5  ;;  %1855 = vmatpush.bf16.msrb.mxu3 %v4031_v10  ;;  %v4545_v5 = vld [vmem:[#allocation4 + $0x154] sm:$0xf0]  ;;  %v4306_v10 = vld [vmem:[#allocation4 + $0x1d0] sm:$0xf] }
 0x2ea   : > { %v5488_v21 = vpop.f32.mrf.mxu0  ;;  %v5490_v28 = vpop.f32.mrf.mxu1  ;;  %v4243_v11 = vor.u32 %v4545_v5, %v4242_v9  ;;  %v4521_v9 = vld [vmem:[#allocation4 + $0x94] sm:$0xf0] }
 0x2ed   : > { %1807 = vmatpush.bf16.msrb.mxu2 %v4011_v13  ;;  %1856 = vmatpush.bf16.msrb.mxu3 %v4015_v45  ;;  %v4107_v13 = vor.u32 %v4511_v17, %v4106_v14  ;;  %v4553_v17 = vld [vmem:[#allocation4 + $0x194] sm:$0xf0] }
 0x2f1   : > { %1808 = vmatpush.bf16.msrb.mxu2 %v3995_v25  ;;  %1857 = vmatpush.bf16.msrb.mxu3 %v3999_v26  ;;  %v4543_v25 = vld [vmem:[#allocation4 + $0x144] sm:$0xf0]  ;;  %v4298_v26 = vld [vmem:[#allocation4 + $0x1c0] sm:$0xf] }
 0x2f2   : > { %v5498_v6 = vpop.f32.mrf.mxu1  ;;  %v4235_v56 = vor.u32 %v4543_v25, %v4234_v24  ;;  %v4551_v25 = vld [vmem:[#allocation4 + $0x184] sm:$0xf0] }
 0x2f5   : > { %1809 = vmatpush.bf16.msrb.mxu2 %v3979_v31  ;;  %1858 = vmatpush.bf16.msrb.mxu3 %v3983_v32  ;;  %v4299_v32 = vor.u32 %v4559_v4, %v4298_v26  ;;  %v4267_v26 = vor.u32 %v4551_v25, %v4266_v47 }
 0x2f8   : > { %3974 = vmatmul.msk.bf16.vlgmr.msra.gmra.mxu2 %vm829_vm2, %v1490_v12  ;;  %3975 = vmatmul.msk.bf16.vlgmr.msra.gmra.mxu3 %vm829_vm2, %v1490_v12  ;;  %v4561_v12 = vld [vmem:[#allocation4 + $0x1d4] sm:$0xf0] }
 0x2f9   : > { %2786 = vmatpush.bf16.msra.mxu2 %v4131_v35  ;;  %2835 = vmatpush.bf16.msra.mxu3 %v4195_v40  ;;  %v4307_v30 = vor.u32 %v4561_v12, %v4306_v10  ;;  %v4525_v35 = vld [vmem:[#allocation4 + $0xb4] sm:$0xf0]  ;;  %v4274_v12 = vld [vmem:[#allocation4 + $0x190] sm:$0xf] }
 0x2fa   : > { %v4163_v37 = vor.u32 %v4525_v35, %v4162_v34  ;;  %v4074_v35 = vld [vmem:[#allocation4] sm:$0xf] }
 0x2fb   : > { %2935 = vmatpush.bf16.msra.mxu1 %v4307_v30  ;;  %v4275_v30 = vor.u32 %v4553_v17, %v4274_v12 }
 0x2fd   : > { %2787 = vmatpush.bf16.msra.mxu2 %v4123_v51  ;;  %2836 = vmatpush.bf16.msra.mxu3 %v4187_v54  ;;  %v4154_v51 = vld [vmem:[#allocation4 + $0xa0] sm:$0xf] }
 0x2fe   : > { %v4155_v54 = vor.u32 %v4523_v52, %v4154_v51 }
 0x2ff   : > { %2936 = vmatpush.bf16.msra.mxu1 %v4299_v32 }
 0x301   : > { %2788 = vmatpush.bf16.msra.mxu2 %v4115_v19  ;;  %2837 = vmatpush.bf16.msra.mxu3 %v4179_v3  ;;  %v4082_v19 = vld [vmem:[#allocation4 + $0x10] sm:$0xf] }
 0x302   : > { %v4146_v3 = vld [vmem:[#allocation4 + $0x90] sm:$0xf]  ;;  %v4083_v5 = vor.u32 %v4505_v2, %v4082_v19 }
 0x303   : > { %2937 = vmatpush.bf16.msra.mxu1 %v4291_v49  ;;  %v4147_v10 = vor.u32 %v4521_v9, %v4146_v3 }
 0x305   : > { %2789 = vmatpush.bf16.msra.mxu2 %v4107_v13  ;;  %2838 = vmatpush.bf16.msra.mxu3 %v4171_v23  ;;  %v4202_v13 = vld [vmem:[#allocation4 + $0x100] sm:$0xf] }
 0x306   : > { %v4203_v24 = vor.u32 %v4535_v22, %v4202_v13 }
 0x307   : > { %2938 = vmatpush.bf16.msra.mxu1 %v4283_v1 }
 0x308   : > { %4040 = vmatmul.msk.bf16.vlgmr.msrb.gmra.mxu2 %vm829_vm2, %v5218_v38  ;;  %4048 = vmatmul.msk.bf16.vlgmr.msrb.gmra.mxu3 %vm829_vm2, %v5218_v38  ;;  %v4250_v38 = vld [vmem:[#allocation4 + $0x160] sm:$0xf] }
 0x309   : > { %v4251_v63 = vor.u32 %v4547_v60, %v4250_v38  ;;  %2790 = vmatpush.bf16.msra.mxu2 %v4099_v33  ;;  %2839 = vmatpush.bf16.msra.mxu3 %v4163_v37  ;;  %v4503_v37 = vld [vmem:[#allocation4 + $0x4] sm:$0xf0] }
 0x30a   : > { %v4075_v42 = vor.u32 %v4503_v37, %v4074_v35 }
 0x30b   : > { %2885 = vmatpush.bf16.msrb.mxu0 %v4251_v63  ;;  %2939 = vmatpush.bf16.msra.mxu1 %v4275_v30  ;;  %v4132_v30 = vld [vmem:[#allocation4 + $0x78] sm:$0xf0] }
 0x30d   : > { %2791 = vmatpush.bf16.msra.mxu2 %v4091_v53  ;;  %2840 = vmatpush.bf16.msra.mxu3 %v4155_v54 }
 0x30f   : > { %2886 = vmatpush.bf16.msrb.mxu0 %v4243_v11  ;;  %v4537_v11 = vld [vmem:[#allocation4 + $0x114] sm:$0xf0]  ;;  %2940 = vmatpush.bf16.msra.mxu1 %v4267_v26  ;;  %v4532_v26 = vld [vmem:[#allocation4 + $0xf4] sm:$0xf] }
 0x311   : > { %2792 = vmatpush.bf16.msra.mxu2 %v4083_v5  ;;  %2841 = vmatpush.bf16.msra.mxu3 %v4147_v10 }
 0x313   : > { %2887 = vmatpush.bf16.msrb.mxu0 %v4235_v56 }
 0x315   : > { %2793 = vmatpush.bf16.msra.mxu2 %v4075_v42 }
 0x317   : > { %2888 = vmatpush.bf16.msrb.mxu0 %v4227_v43  ;;  %v4519_v43 = vld [vmem:[#allocation4 + $0x84] sm:$0xf0] }
 0x318   : > { %4041 = vmatmul.msk.bf16.gmra.mxu2 %vm829_vm2, %v5232_v15  ;;  %4049 = vmatmul.msk.bf16.gmra.mxu3 %vm829_vm2, %v5232_v15  ;;  %v5492_v15 = vpop.f32.mrf.mxu0  ;;  %v4139_v44 = vor.u32 %v4519_v43, %v4138_v41 }
 0x31a   : > { %2842 = vmatpush.bf16.msra.mxu3 %v4139_v44 }
 0x320   : > { %v5500_v45 = vpop.f32.mrf.mxu0 }
 0x328   : > { %4042 = vmatmul.msk.bf16.gmra.mxu2 %vm829_vm2, %v5266_v20  ;;  %4050 = vmatmul.msk.bf16.gmra.mxu3 %vm829_vm2, %v5266_v20  ;;  %v5502_v20 = vpop.f32.mrf.mxu1  ;;  %v5508_v31 = vpop.f32.mrf.mxu0 }
 0x330   : > { %v5510_v39 = vpop.f32.mrf.mxu1 }
 0x338   : > { %4043 = vmatmul.msk.bf16.gmra.mxu2 %vm829_vm2, %v5282_v36  ;;  %4051 = vmatmul.msk.bf16.gmra.mxu3 %vm829_vm2, %v5282_v36  ;;  %v5512_v36 = vpop.f32.mrf.mxu0  ;;  %v5514_v40 = vpop.f32.mrf.mxu1 }
 0x340   : > { %v5520_v38 = vpop.f32.mrf.mxu0  ;;  %v5522_v60 = vpop.f32.mrf.mxu1 }
 0x348   : > { %4044 = vmatmul.msk.bf16.gmra.mxu2 %vm829_vm2, %v5302_v61  ;;  %4052 = vmatmul.msk.bf16.gmra.mxu3 %vm829_vm2, %v5302_v61  ;;  %v4218_v61 = vld [vmem:[#allocation4 + $0x120] sm:$0xf]  ;;  %v5528_v0 = vpop.f32.mrf.mxu0  ;;  %v5530_v7 = vpop.f32.mrf.mxu1 }
 0x349   : > { %v4219_v63 = vor.u32 %v4539_v62, %v4218_v61 }
 0x34b   : > { %2889 = vmatpush.bf16.msrb.mxu0 %v4219_v63 }
 0x350   : > { %v5532_v23 = vpop.f32.mrf.mxu0  ;;  %v5534_v56 = vpop.f32.mrf.mxu1 }
 0x358   : > { %4045 = vmatmul.msk.bf16.gmra.mxu2 %vm829_vm2, %v5316_v16  ;;  %4053 = vmatmul.msk.bf16.gmra.mxu3 %vm829_vm2, %v5316_v16  ;;  %v4210_v16 = vld [vmem:[#allocation4 + $0x110] sm:$0xf]  ;;  %v5544_v29 = vpop.f32.mrf.mxu0  ;;  %v5546_v32 = vpop.f32.mrf.mxu1 }
 0x359   : > { %v4211_v14 = vor.u32 %v4537_v11, %v4210_v16  ;;  %v4516_v16 = vld [vmem:[#allocation4 + $0x74] sm:$0xf] }
 0x35a   : > { %v4135_v25 = vor.u32 %v4516_v16, %v4132_v30 }
 0x35b   : > { %2890 = vmatpush.bf16.msrb.mxu0 %v4211_v14 }
 0x35c   : > { %2982 = vmatpush.bf16.msrb.mxu2 %v4135_v25 }
 0x35f   : > { %2891 = vmatpush.bf16.msrb.mxu0 %v4203_v24 }
 0x360   : > { %v5548_v46 = vpop.f32.mrf.mxu0  ;;  %v5559_v48 = vpop.f32.mrf.mxu1 }
 0x368   : > { %4046 = vmatmul.msk.bf16.gmra.mxu2 %vm829_vm2, %v5346_v58  ;;  %4054 = vmatmul.msk.bf16.gmra.mxu3 %vm829_vm2, %v5346_v58  ;;  %v5557_v58 = vld [vmem:[%s6075_s11] sm:$0xf]  ;;  %v5597_v13 = vpop.f32.mrf.mxu1 }
 0x369   : > { %v5566_v53 = vperm.slane %v5557_v58, 2  ;;  %v5569_v54 = vperm.slane %v5557_v58, 3 }
 0x36b   : > { %v5540_v4 = vpop.f32.mrf.mxu2  ;;  %v5542_v27 = vpop.f32.mrf.mxu3 }
 0x373   : > { %v1601_v33 = vpop.f32.mrf.mxu2  ;;  %v1614_v34 = vpop.f32.mrf.mxu3 }
 0x374   : > { %v4196_v33 = vld [vmem:[#allocation4 + $0xf8] sm:$0xf0] }
 0x375   : > { %v4199_v35 = vor.u32 %v4532_v26, %v4196_v33 }
 0x377   : > { %3031 = vmatpush.bf16.msrb.mxu3 %v4199_v35 }
 0x378   : > { %4047 = vmatmul.msk.bf16.gmra.mxu2 %vm829_vm2, %v5414_v55  ;;  %4055 = vmatmul.msk.bf16.gmra.mxu3 %vm829_vm2, %v5414_v55 }
 0x37b   : > { %v1625_v49 = vpop.f32.mrf.mxu2  ;;  %v1638_v50 = vpop.f32.mrf.mxu3 }
 0x37c   : > { %v5561_v51 = vperm.slane %v1625_v49, 0  ;;  %v5563_v52 = vperm.slane %v1638_v50, 0  ;;  %v5604_v50 = vperm.slane %v5540_v4, 0 }
 0x37e   : > { %v2004_v55 = vadd.f32 %v5561_v51, %v5480_v57  ;;  %v2005_v61 = vadd.f32 %v5563_v52, %v5482_v59  ;;  %v2008_v62 = vadd.f32 %v5561_v51, %v5488_v21  ;;  %v2009_v63 = vadd.f32 %v5563_v52, %v5490_v28 }
 0x37f   : > { %v2012_v8 = vadd.f32 %v5561_v51, %v5492_v15  ;;  %v2013_v18 = vadd.f32 %v5563_v52, %v5498_v6  ;;  %v2016_v19 = vadd.f32 %v5561_v51, %v5500_v45  ;;  %v2017_v57 = vadd.f32 %v5563_v52, %v5502_v20  ;;  %v5595_v45 = vpop.f32.mrf.mxu0 }
 0x380   : > { %v2078_v59 = vadd.f32 %v5566_v53, %v2004_v55  ;;  %v2079_v1 = vadd.f32 %v5569_v54, %v2005_v61  ;;  %v2082_v21 = vadd.f32 %v5566_v53, %v2008_v62  ;;  %v2083_v28 = vadd.f32 %v5569_v54, %v2009_v63 }
 0x381   : > { %v2086_v2 = vadd.f32 %v5566_v53, %v2012_v8  ;;  %v2087_v15 = vadd.f32 %v5569_v54, %v2013_v18  ;;  %v2090_v6 = vadd.f32 %v5566_v53, %v2016_v19  ;;  %v2091_v3 = vadd.f32 %v5569_v54, %v2017_v57 }
 0x382   : > { %v2142_v9 = vmax.f32 %v2078_v59, 0.0  ;;  %v2143_v20 = vmax.f32 %v2079_v1, 0.0  ;;  %v2146_v5 = vmax.f32 %v2082_v21, 0.0  ;;  %v2147_v10 = vmax.f32 %v2083_v28, 0.0  ;;  %v4548_v59 = vld [vmem:[#allocation4 + $0x174] sm:$0xf] }
 0x383   : > { %v1627_v11 = vpop.f32.mrf.mxu2  ;;  %v1640_v12 = vpop.f32.mrf.mxu3  ;;  %v2150_v14 = vmax.f32 %v2086_v2, 0.0  ;;  %v2151_v17 = vmax.f32 %v2087_v15, 0.0  ;;  %v2154_v24 = vmax.f32 %v2090_v6, 0.0  ;;  %v2155_v34 = vmax.f32 %v2091_v3, 0.0  ;;  %v4260_v1 = vld [vmem:[#allocation4 + $0x178] sm:$0xf0] }
 0x384   : > { %v2205_v22 = vpack.c.bf16 %v2143_v20, %v2142_v9  ;;  %v2207_v47 = vpack.c.bf16 %v2147_v10, %v2146_v5  ;;  %v2020_v37 = vadd.f32 %v5561_v51, %v5508_v31  ;;  %v2021_v41 = vadd.f32 %v5563_v52, %v5510_v39 }
 0x385   : > { %v5607_v55 = vperm.slane %v5542_v27, 0  ;;  %v5610_v61 = vperm.slane %v5557_v58, 0  ;;  %v2024_v39 = vadd.f32 %v5561_v51, %v5512_v36  ;;  %v2025_v63 = vadd.f32 %v5563_v52, %v5514_v40 }
 0x386   : > { %v2340_v42 = vunpack.c.l.b16 %v2205_v22  ;;  %v2344_v43 = vunpack.c.l.b16 %v2207_v47  ;;  %v2341_v44 = vunpack.c.h.b16 %v2205_v22  ;;  %v2345_v49 = vunpack.c.h.b16 %v2207_v47 }
 0x387   : > { %v2209_v8 = vpack.c.bf16 %v2151_v17, %v2150_v14  ;;  %v2211_v4 = vpack.c.bf16 %v2155_v34, %v2154_v24  ;;  %v2094_v18 = vadd.f32 %v5566_v53, %v2020_v37  ;;  %v2095_v27 = vadd.f32 %v5569_v54, %v2021_v41  ;;  %v5633_v9 = vpop.f32.mrf.mxu0  ;;  %v5642_v14 = vpop.f32.mrf.mxu1 }
 0x388   : > { %v5612_v62 = vpack.c.b16 %v2344_v43, %v2340_v42  ;;  %v5614_v31 = vpack.c.b16 %v2345_v49, %v2341_v44  ;;  %v5625_v19 = vperm.slane %v5557_v58, 1  ;;  %v2098_v57 = vadd.f32 %v5566_v53, %v2024_v39  ;;  %v4564_v49 = vld [vmem:[#allocation4 + $0x1f4] sm:$0xf]  ;;  %v4324_v39 = vld [vmem:[#allocation4 + $0x1f8] sm:$0xf0] }
 0x389   : > { %v2099_v36 = vadd.f32 %v5569_v54, %v2025_v63  ;;  %v2028_v40 = vadd.f32 %v5561_v51, %v5520_v38  ;;  %v2158_v2 = vmax.f32 %v2094_v18, 0.0  ;;  %v2159_v15 = vmax.f32 %v2095_v27, 0.0  ;;  %v4514_v63 = vld [vmem:[#allocation4 + $0x64] sm:$0xf] }
 0x38a   : > { %2892 = vmatmul.bf16.vlgmr.msrb.gmra.mxu0 %v5612_v62  ;;  %2941 = vmatmul.bf16.vlgmr.msra.gmra.mxu1 %v5614_v31  ;;  %v4263_v6 = vor.u32 %v4548_v59, %v4260_v1  ;;  %v2029_v3 = vadd.f32 %v5563_v52, %v5522_v60  ;;  %v2162_v5 = vmax.f32 %v2098_v57, 0.0  ;;  %v2032_v38 = vadd.f32 %v5561_v51, %v5528_v0  ;;  %v4124_v59 = vld [vmem:[#allocation4 + $0x68] sm:$0xf0]  ;;  %v4530_v1 = vld [vmem:[#allocation4 + $0xe4] sm:$0xf] }
 0x38b   : > { %v1811_v21 = vpop.f32.mrf.mxu2  ;;  %v1860_v28 = vpop.f32.mrf.mxu3  ;;  %v2163_v10 = vmax.f32 %v2099_v36, 0.0  ;;  %v2213_v16 = vpack.c.bf16 %v2159_v15, %v2158_v2  ;;  %v2033_v11 = vadd.f32 %v5563_v52, %v5530_v7  ;;  %v2102_v12 = vadd.f32 %v5566_v53, %v2028_v40  ;;  %v4188_v40 = vld [vmem:[#allocation4 + $0xe8] sm:$0xf0] }
 0x38c   : > { %v2002_v58 = vadd.f32 %v5604_v50, %v1811_v21  ;;  %v2003_v20 = vadd.f32 %v5607_v55, %v1860_v28  ;;  %3080 = vmatpush.bf16.msra.mxu0 %v4263_v6  ;;  %v2103_v22 = vadd.f32 %v5569_v54, %v2029_v3  ;;  %v2348_v47 = vunpack.c.l.b16 %v2209_v8 }
 0x38d   : > { %v2215_v30 = vpack.c.bf16 %v2163_v10, %v2162_v5  ;;  %v2352_v24 = vunpack.c.l.b16 %v2211_v4  ;;  %v2349_v25 = vunpack.c.h.b16 %v2209_v8  ;;  %v2353_v26 = vunpack.c.h.b16 %v2211_v4 }
 0x38e   : > { %v2076_v60 = vadd.f32 %v5610_v61, %v2002_v58  ;;  %v2077_v17 = vadd.f32 %v5625_v19, %v2003_v20  ;;  %v5648_v34 = vadd.f32 %v5566_v53, %v2032_v38  ;;  %v5651_v7 = vadd.f32 %v5569_v54, %v2033_v11 }
 0x38f   : > { %v2166_v35 = vmax.f32 %v2102_v12, 0.0  ;;  %v2167_v37 = vmax.f32 %v2103_v22, 0.0  ;;  %v2356_v41 = vunpack.c.l.b16 %v2213_v16  ;;  %v2360_v42 = vunpack.c.l.b16 %v2215_v30  ;;  %v5667_v5 = vpop.f32.mrf.mxu0 }
 0x390   : > { %v2140_v33 = vmax.f32 %v2076_v60, 0.0  ;;  %v2141_v0 = vmax.f32 %v2077_v17, 0.0  ;;  %v2357_v43 = vunpack.c.h.b16 %v2213_v16  ;;  %v2361_v44 = vunpack.c.h.b16 %v2215_v30  ;;  %v5682_v17 = vpop.f32.mrf.mxu1 }
 0x391   : > { %v5655_v27 = vpack.c.b16 %v2352_v24, %v2348_v47  ;;  %v5657_v57 = vpack.c.b16 %v2353_v26, %v2349_v25  ;;  %v4327_v36 = vor.u32 %v4564_v49, %v4324_v39  ;;  %v2170_v2 = vmax.f32 %v5648_v34, 0.0 }
 0x392   : > { %v5653_v18 = vpack.c.bf16 %v2141_v0, %v2140_v33  ;;  %v2036_v15 = vadd.f32 %v5561_v51, %v5532_v23  ;;  %v4127_v6 = vor.u32 %v4514_v63, %v4124_v59  ;;  %v4191_v3 = vor.u32 %v4530_v1, %v4188_v40 }
 0x393   : > { %v1813_v8 = vpop.f32.mrf.mxu2  ;;  %v1862_v4 = vpop.f32.mrf.mxu3  ;;  %3129 = vmatpush.bf16.msrb.mxu1 %v4327_v36  ;;  %v2171_v58 = vmax.f32 %v5651_v7, 0.0  ;;  %v2037_v20 = vadd.f32 %v5563_v52, %v5534_v56  ;;  %v5671_v38 = vpack.c.b16 %v2360_v42, %v2356_v41  ;;  %v5673_v11 = vpack.c.b16 %v2361_v44, %v2357_v43 }
 0x394   : > { %v2006_v21 = vadd.f32 %v5604_v50, %v1813_v8  ;;  %v2007_v28 = vadd.f32 %v5607_v55, %v1862_v4  ;;  %v2338_v23 = vunpack.c.l.b16 %v5653_v18  ;;  %2983 = vmatpush.bf16.msrb.mxu2 %v4127_v6  ;;  %3032 = vmatpush.bf16.msrb.mxu3 %v4191_v3  ;;  %v5676_v12 = vpack.c.bf16 %v2167_v37, %v2166_v35  ;;  %v4252_v35 = vld [vmem:[#allocation4 + $0x168] sm:$0xf0] }
 0x395   : > { %v2040_v60 = vadd.f32 %v5561_v51, %v5544_v29  ;;  %v2041_v56 = vadd.f32 %v5563_v52, %v5546_v32  ;;  %v2339_v30 = vunpack.c.h.b16 %v5653_v18  ;;  %v2110_v24 = vadd.f32 %v5566_v53, %v2036_v15  ;;  %v4546_v32 = vld [vmem:[#allocation4 + $0x164] sm:$0xf] }
 0x396   : > { %v2080_v10 = vadd.f32 %v5610_v61, %v2006_v21  ;;  %v2081_v16 = vadd.f32 %v5625_v19, %v2007_v28  ;;  %v2111_v25 = vadd.f32 %v5569_v54, %v2037_v20  ;;  %v2044_v29 = vadd.f32 %v5561_v51, %v5548_v46 }
 0x397   : > { %v2114_v26 = vadd.f32 %v5566_v53, %v2040_v60  ;;  %v2115_v33 = vadd.f32 %v5569_v54, %v2041_v56  ;;  %v2174_v37 = vmax.f32 %v2110_v24, 0.0  ;;  %v2045_v41 = vadd.f32 %v5563_v52, %v5559_v48 }
 0x398   : > { %v2144_v22 = vmax.f32 %v2080_v10, 0.0  ;;  %v2145_v47 = vmax.f32 %v2081_v16, 0.0  ;;  %v2048_v42 = vadd.f32 %v5561_v51, %v5595_v45  ;;  %v4255_v49 = vor.u32 %v4546_v32, %v4252_v35  ;;  %v1944_v16 = vpop.f32.mrf.mxu0  ;;  %v4512_v32 = vld [vmem:[#allocation4 + $0x54] sm:$0xf] }
 0x399   : > { %v2175_v39 = vmax.f32 %v2111_v25, 0.0  ;;  %v2178_v63 = vmax.f32 %v2114_v26, 0.0  ;;  %v2179_v46 = vmax.f32 %v2115_v33, 0.0  ;;  %v2049_v48 = vadd.f32 %v5563_v52, %v5597_v13  ;;  %v1993_v25 = vpop.f32.mrf.mxu1 }
 0x39a   : > { %v2206_v0 = vpack.c.bf16 %v2145_v47, %v2144_v22  ;;  %2897 = vmatmul.bf16.gmra.mxu0 %v5655_v27  ;;  %2946 = vmatmul.bf16.gmra.mxu1 %v5657_v57  ;;  %v2118_v45 = vadd.f32 %v5566_v53, %v2044_v29  ;;  %v2119_v13 = vadd.f32 %v5569_v54, %v2045_v41  ;;  %v4562_v29 = vld [vmem:[#allocation4 + $0x1e4] sm:$0xf] }
 0x39b   : > { %v1816_v43 = vpop.f32.mrf.mxu2  ;;  %v1865_v44 = vpop.f32.mrf.mxu3  ;;  %3081 = vmatpush.bf16.msra.mxu0 %v4255_v49  ;;  %v2221_v59 = vpack.c.bf16 %v2175_v39, %v2174_v37  ;;  %v2223_v1 = vpack.c.bf16 %v2179_v46, %v2178_v63  ;;  %v2123_v47 = vadd.f32 %v5569_v54, %v2049_v48  ;;  %v5723_v33 = vpack.c.bf16 %v2171_v58, %v2170_v2  ;;  %v4528_v49 = vld [vmem:[#allocation4 + $0xd4] sm:$0xf]  ;;  %v4180_v39 = vld [vmem:[#allocation4 + $0xd8] sm:$0xf0] }
 0x39c   : > { %v2342_v18 = vunpack.c.l.b16 %v2206_v0  ;;  %v2343_v8 = vunpack.c.h.b16 %v2206_v0  ;;  %v2010_v4 = vadd.f32 %v5604_v50, %v1816_v43  ;;  %v2011_v36 = vadd.f32 %v5607_v55, %v1865_v44  ;;  %v4316_v0 = vld [vmem:[#allocation4 + $0x1e8] sm:$0xf0]  ;;  %v4116_v44 = vld [vmem:[#allocation4 + $0x58] sm:$0xf0] }
 0x39d   : > { %v2372_v6 = vunpack.c.l.b16 %v2221_v59  ;;  %v2376_v3 = vunpack.c.l.b16 %v2223_v1  ;;  %v2373_v20 = vunpack.c.h.b16 %v2221_v59  ;;  %v2377_v10 = vunpack.c.h.b16 %v2223_v1 }
 0x39e   : > { %v5702_v40 = vpack.c.b16 %v2342_v18, %v2338_v23  ;;  %v5704_v21 = vpack.c.b16 %v2343_v8, %v2339_v30  ;;  %v2084_v28 = vadd.f32 %v5610_v61, %v2010_v4  ;;  %v2085_v15 = vadd.f32 %v5625_v19, %v2011_v36 }
 0x39f   : > { %v2122_v23 = vadd.f32 %v5566_v53, %v2048_v42  ;;  %v5712_v30 = vpack.c.b16 %v2376_v3, %v2372_v6  ;;  %v5714_v22 = vpack.c.b16 %v2377_v10, %v2373_v20  ;;  %v2182_v24 = vmax.f32 %v2118_v45, 0.0 }
 0x3a0   : > { %v2148_v60 = vmax.f32 %v2084_v28, 0.0  ;;  %v2149_v56 = vmax.f32 %v2085_v15, 0.0  ;;  %2794 = vmatmul.bf16.vlgmr.msra.gmra.mxu2 %v5702_v40  ;;  %2843 = vmatmul.bf16.vlgmr.msra.gmra.mxu3 %v5704_v21  ;;  %v2052_v35 = vadd.f32 %v5561_v51, %v5633_v9  ;;  %v2053_v37 = vadd.f32 %v5563_v52, %v5642_v14 }
 0x3a1   : > { %v4319_v43 = vor.u32 %v4562_v29, %v4316_v0  ;;  %v2056_v34 = vadd.f32 %v5561_v51, %v5667_v5  ;;  %v2057_v7 = vadd.f32 %v5563_v52, %v5682_v17  ;;  %v5734_v2 = vadd.f32 %v5561_v51, %v1944_v16 }
 0x3a2   : > { %v5717_v26 = vpack.c.bf16 %v2149_v56, %v2148_v60  ;;  %v2061_v63 = vadd.f32 %v5563_v52, %v1993_v25  ;;  %v4119_v46 = vor.u32 %v4512_v32, %v4116_v44  ;;  %v4183_v18 = vor.u32 %v4528_v49, %v4180_v39 }
 0x3a3   : > { %v1818_v41 = vpop.f32.mrf.mxu2  ;;  %v1867_v42 = vpop.f32.mrf.mxu3  ;;  %3130 = vmatpush.bf16.msrb.mxu1 %v4319_v43  ;;  %v2183_v8 = vmax.f32 %v2119_v13, 0.0  ;;  %v2186_v4 = vmax.f32 %v2122_v23, 0.0  ;;  %v2187_v36 = vmax.f32 %v2123_v47, 0.0  ;;  %v2126_v59 = vadd.f32 %v5566_v53, %v2052_v35  ;;  %v4544_v47 = vld [vmem:[#allocation4 + $0x154] sm:$0xf] }
 0x3a4   : > { %v2014_v9 = vadd.f32 %v5604_v50, %v1818_v41  ;;  %v2015_v58 = vadd.f32 %v5607_v55, %v1867_v42  ;;  %v2346_v14 = vunpack.c.l.b16 %v5717_v26  ;;  %v2347_v1 = vunpack.c.h.b16 %v5717_v26  ;;  %2984 = vmatpush.bf16.msrb.mxu2 %v4119_v46  ;;  %3033 = vmatpush.bf16.msrb.mxu3 %v4183_v18  ;;  %v1946_v13 = vpop.f32.mrf.mxu0  ;;  %v1995_v46 = vpop.f32.mrf.mxu1 }
 0x3a5   : > { %v2225_v48 = vpack.c.bf16 %v2183_v8, %v2182_v24  ;;  %v2127_v45 = vadd.f32 %v5569_v54, %v2053_v37  ;;  %v2130_v28 = vadd.f32 %v5566_v53, %v2056_v34  ;;  %v2227_v3 = vpack.c.bf16 %v2187_v36, %v2186_v4  ;;  %v4244_v24 = vld [vmem:[#allocation4 + $0x158] sm:$0xf0] }
 0x3a6   : > { %v2088_v5 = vadd.f32 %v5610_v61, %v2014_v9  ;;  %v2089_v17 = vadd.f32 %v5625_v19, %v2015_v58  ;;  %v2131_v20 = vadd.f32 %v5569_v54, %v2057_v7  ;;  %v2190_v60 = vmax.f32 %v2126_v59, 0.0 }
 0x3a7   : > { %v2380_v10 = vunpack.c.l.b16 %v2225_v48  ;;  %v2381_v16 = vunpack.c.h.b16 %v2225_v48  ;;  %v2191_v56 = vmax.f32 %v2127_v45, 0.0  ;;  %v2384_v25 = vunpack.c.l.b16 %v2227_v3 }
 0x3a8   : > { %v2152_v15 = vmax.f32 %v2088_v5, 0.0  ;;  %v2153_v6 = vmax.f32 %v2089_v17, 0.0  ;;  %v2385_v26 = vunpack.c.h.b16 %v2227_v3  ;;  %v2194_v29 = vmax.f32 %v2130_v28, 0.0 }
 0x3a9   : > { %v4247_v35 = vor.u32 %v4544_v47, %v4244_v24  ;;  %v2195_v37 = vmax.f32 %v2131_v20, 0.0  ;;  %v2229_v41 = vpack.c.bf16 %v2191_v56, %v2190_v60  ;;  %v2064_v42 = vadd.f32 %v5561_v51, %v1946_v13  ;;  %v4308_v20 = vld [vmem:[#allocation4 + $0x1d8] sm:$0xf0]  ;;  %v4172_v47 = vld [vmem:[#allocation4 + $0xc8] sm:$0xf0] }
 0x3aa   : > { %v2210_v23 = vpack.c.bf16 %v2153_v6, %v2152_v15  ;;  %2902 = vmatmul.bf16.gmra.mxu0 %v5671_v38  ;;  %2951 = vmatmul.bf16.gmra.mxu1 %v5673_v11  ;;  %v5752_v34 = vpack.c.b16 %v2384_v25, %v2380_v10  ;;  %v5754_v7 = vpack.c.b16 %v2385_v26, %v2381_v16  ;;  %v4510_v10 = vld [vmem:[#allocation4 + $0x44] sm:$0xf]  ;;  %v2364_v56 = vunpack.c.l.b16 %v5676_v12 }
 0x3ab   : > { %v1821_v0 = vpop.f32.mrf.mxu2  ;;  %v1870_v32 = vpop.f32.mrf.mxu3  ;;  %3082 = vmatpush.bf16.msra.mxu0 %v4247_v35  ;;  %v2231_v9 = vpack.c.bf16 %v2195_v37, %v2194_v29  ;;  %v2388_v58 = vunpack.c.l.b16 %v2229_v41  ;;  %v2389_v17 = vunpack.c.h.b16 %v2229_v41  ;;  %v2065_v59 = vadd.f32 %v5563_v52, %v1995_v46  ;;  %v4560_v52 = vld [vmem:[#allocation4 + $0x1d4] sm:$0xf] }
 0x3ac   : > { %v2018_v43 = vadd.f32 %v5604_v50, %v1821_v0  ;;  %v2019_v44 = vadd.f32 %v5607_v55, %v1870_v32  ;;  %v2350_v49 = vunpack.c.l.b16 %v2210_v23  ;;  %v2351_v39 = vunpack.c.h.b16 %v2210_v23  ;;  %v4108_v23 = vld [vmem:[#allocation4 + $0x48] sm:$0xf0] }
 0x3ad   : > { %v2392_v5 = vunpack.c.l.b16 %v2231_v9  ;;  %v2393_v36 = vunpack.c.h.b16 %v2231_v9  ;;  %v2134_v28 = vadd.f32 %v5566_v53, %v5734_v2  ;;  %v2135_v15 = vadd.f32 %v5569_v54, %v2061_v63  ;;  %v4526_v63 = vld [vmem:[#allocation4 + $0xc4] sm:$0xf] }
 0x3ae   : > { %v2092_v18 = vadd.f32 %v5610_v61, %v2018_v43  ;;  %v2093_v8 = vadd.f32 %v5625_v19, %v2019_v44  ;;  %v5758_v4 = vpack.c.b16 %v2350_v49, %v2346_v14  ;;  %v5760_v51 = vpack.c.b16 %v2351_v39, %v2347_v1 }
 0x3af   : > { %v5768_v14 = vpack.c.b16 %v2392_v5, %v2388_v58  ;;  %v5770_v1 = vpack.c.b16 %v2393_v36, %v2389_v17  ;;  %v2138_v6 = vadd.f32 %v5566_v53, %v2064_v42  ;;  %v2139_v3 = vadd.f32 %v5569_v54, %v2065_v59  ;;  %v4236_v5 = vld [vmem:[#allocation4 + $0x148] sm:$0xf0] }
 0x3b0   : > { %v2156_v48 = vmax.f32 %v2092_v18, 0.0  ;;  %v2157_v45 = vmax.f32 %v2093_v8, 0.0  ;;  %2799 = vmatmul.bf16.gmra.mxu2 %v5758_v4  ;;  %2848 = vmatmul.bf16.gmra.mxu3 %v5760_v51  ;;  %v2368_v13 = vunpack.c.l.b16 %v5723_v33  ;;  %v4311_v2 = vor.u32 %v4560_v52, %v4308_v20  ;;  %v4542_v8 = vld [vmem:[#allocation4 + $0x144] sm:$0xf] }
 0x3b1   : > { %v2365_v53 = vunpack.c.h.b16 %v5676_v12  ;;  %v2369_v54 = vunpack.c.h.b16 %v5723_v33  ;;  %v4111_v26 = vor.u32 %v4510_v10, %v4108_v23  ;;  %v4175_v29 = vor.u32 %v4526_v63, %v4172_v47  ;;  %v4558_v47 = vld [vmem:[#allocation4 + $0x1c4] sm:$0xf] }
 0x3b2   : > { %3131 = vmatpush.bf16.msrb.mxu1 %v4311_v2  ;;  %v2198_v0 = vmax.f32 %v2134_v28, 0.0  ;;  %v2199_v32 = vmax.f32 %v2135_v15, 0.0  ;;  %v2202_v41 = vmax.f32 %v2138_v6, 0.0  ;;  %v2203_v42 = vmax.f32 %v2139_v3, 0.0 }
 0x3b3   : > { %v1823_v16 = vpop.f32.mrf.mxu2  ;;  %v1872_v60 = vpop.f32.mrf.mxu3  ;;  %v2212_v43 = vpack.c.bf16 %v2157_v45, %v2156_v48  ;;  %v5782_v44 = vpack.c.b16 %v2368_v13, %v2364_v56  ;;  %2985 = vmatpush.bf16.msrb.mxu2 %v4111_v26  ;;  %3034 = vmatpush.bf16.msrb.mxu3 %v4175_v29  ;;  %v5784_v33 = vpack.c.b16 %v2369_v54, %v2365_v53  ;;  %v4100_v29 = vld [vmem:[#allocation4 + $0x38] sm:$0xf0] }
 0x3b4   : > { %v2022_v24 = vadd.f32 %v5604_v50, %v1823_v16  ;;  %v2023_v25 = vadd.f32 %v5607_v55, %v1872_v60  ;;  %v2233_v49 = vpack.c.bf16 %v2199_v32, %v2198_v0  ;;  %v2235_v9 = vpack.c.bf16 %v2203_v42, %v2202_v41  ;;  %v4524_v0 = vld [vmem:[#allocation4 + $0xb4] sm:$0xf]  ;;  %v4164_v32 = vld [vmem:[#allocation4 + $0xb8] sm:$0xf0] }
 0x3b5   : > { %v2354_v45 = vunpack.c.l.b16 %v2212_v43  ;;  %v2355_v28 = vunpack.c.h.b16 %v2212_v43  ;;  %v4239_v15 = vor.u32 %v4542_v8, %v4236_v5  ;;  %v4167_v42 = vor.u32 %v4524_v0, %v4164_v32 }
 0x3b6   : > { %v2096_v35 = vadd.f32 %v5610_v61, %v2022_v24  ;;  %v2097_v37 = vadd.f32 %v5625_v19, %v2023_v25  ;;  %v2396_v58 = vunpack.c.l.b16 %v2233_v49  ;;  %v2397_v46 = vunpack.c.h.b16 %v2233_v49  ;;  %v4300_v24 = vld [vmem:[#allocation4 + $0x1c8] sm:$0xf0]  ;;  %v4508_v25 = vld [vmem:[#allocation4 + $0x34] sm:$0xf] }
 0x3b7   : > { %v2400_v17 = vunpack.c.l.b16 %v2235_v9  ;;  %v2401_v36 = vunpack.c.h.b16 %v2235_v9  ;;  %3083 = vmatpush.bf16.msra.mxu0 %v4239_v15  ;;  %v4303_v26 = vor.u32 %v4558_v47, %v4300_v24  ;;  %v4103_v41 = vor.u32 %v4508_v25, %v4100_v29  ;;  %3035 = vmatpush.bf16.msrb.mxu3 %v4167_v42  ;;  %v4506_v47 = vld [vmem:[#allocation4 + $0x24] sm:$0xf]  ;;  %v4156_v29 = vld [vmem:[#allocation4 + $0xa8] sm:$0xf0] }
 0x3b8   : > { %v2160_v12 = vmax.f32 %v2096_v35, 0.0  ;;  %v2161_v39 = vmax.f32 %v2097_v37, 0.0 }
 0x3b9   : > { %v5790_v10 = vpack.c.b16 %v2400_v17, %v2396_v58  ;;  %v5792_v16 = vpack.c.b16 %v2401_v36, %v2397_v46  ;;  %3132 = vmatpush.bf16.msrb.mxu1 %v4303_v26  ;;  %2986 = vmatpush.bf16.msrb.mxu2 %v4103_v41  ;;  %v4540_v46 = vld [vmem:[#allocation4 + $0x134] sm:$0xf]  ;;  %v4522_v26 = vld [vmem:[#allocation4 + $0xa4] sm:$0xf] }
 0x3ba   : > { %v2214_v18 = vpack.c.bf16 %v2161_v39, %v2160_v12  ;;  %2907 = vmatmul.bf16.gmra.mxu0 %v5782_v44  ;;  %2956 = vmatmul.bf16.gmra.mxu1 %v5784_v33 }
 0x3bb   : > { %v1826_v59 = vpop.f32.mrf.mxu2  ;;  %v1875_v48 = vpop.f32.mrf.mxu3 }
 0x3bc   : > { %v2026_v6 = vadd.f32 %v5604_v50, %v1826_v59  ;;  %v2027_v3 = vadd.f32 %v5607_v55, %v1875_v48  ;;  %v2358_v52 = vunpack.c.l.b16 %v2214_v18  ;;  %v2359_v20 = vunpack.c.h.b16 %v2214_v18  ;;  %v4228_v18 = vld [vmem:[#allocation4 + $0x138] sm:$0xf0] }
 0x3bd   : > { %v4231_v59 = vor.u32 %v4540_v46, %v4228_v18 }
 0x3be   : > { %v2100_v60 = vadd.f32 %v5610_v61, %v2026_v6  ;;  %v2101_v56 = vadd.f32 %v5625_v19, %v2027_v3  ;;  %v5796_v13 = vpack.c.b16 %v2358_v52, %v2354_v45  ;;  %v5798_v2 = vpack.c.b16 %v2359_v20, %v2355_v28 }
 0x3bf   : > { %3084 = vmatpush.bf16.msra.mxu0 %v4231_v59 }
 0x3c0   : > { %2804 = vmatmul.bf16.gmra.mxu2 %v5796_v13  ;;  %2853 = vmatmul.bf16.gmra.mxu3 %v5798_v2  ;;  %v2164_v23 = vmax.f32 %v2100_v60, 0.0  ;;  %v2165_v63 = vmax.f32 %v2101_v56, 0.0 }
 0x3c2   : > { %v2216_v12 = vpack.c.bf16 %v2165_v63, %v2164_v23  ;;  %v4556_v23 = vld [vmem:[#allocation4 + $0x1b4] sm:$0xf]  ;;  %v4292_v63 = vld [vmem:[#allocation4 + $0x1b8] sm:$0xf0] }
 0x3c3   : > { %v1828_v53 = vpop.f32.mrf.mxu2  ;;  %v1877_v54 = vpop.f32.mrf.mxu3 }
 0x3c4   : > { %v2030_v35 = vadd.f32 %v5604_v50, %v1828_v53  ;;  %v2031_v37 = vadd.f32 %v5607_v55, %v1877_v54  ;;  %v2362_v17 = vunpack.c.l.b16 %v2216_v12  ;;  %v2363_v36 = vunpack.c.h.b16 %v2216_v12  ;;  %v4092_v54 = vld [vmem:[#allocation4 + $0x28] sm:$0xf0] }
 0x3c5   : > { %v4295_v53 = vor.u32 %v4556_v23, %v4292_v63  ;;  %v4554_v23 = vld [vmem:[#allocation4 + $0x1a4] sm:$0xf]  ;;  %v4284_v63 = vld [vmem:[#allocation4 + $0x1a8] sm:$0xf0] }
 0x3c6   : > { %v2104_v43 = vadd.f32 %v5610_v61, %v2030_v35  ;;  %v2105_v49 = vadd.f32 %v5625_v19, %v2031_v37  ;;  %v4095_v35 = vor.u32 %v4506_v47, %v4092_v54  ;;  %v4159_v37 = vor.u32 %v4522_v26, %v4156_v29  ;;  %v4504_v47 = vld [vmem:[#allocation4 + $0x14] sm:$0xf]  ;;  %v4084_v54 = vld [vmem:[#allocation4 + $0x18] sm:$0xf0] }
 0x3c7   : > { %3133 = vmatpush.bf16.msrb.mxu1 %v4295_v53  ;;  %v4287_v53 = vor.u32 %v4554_v23, %v4284_v63  ;;  %v4520_v26 = vld [vmem:[#allocation4 + $0x94] sm:$0xf]  ;;  %v4148_v29 = vld [vmem:[#allocation4 + $0x98] sm:$0xf0]  ;;  %v4550_v23 = vld [vmem:[#allocation4 + $0x184] sm:$0xf] }
 0x3c8   : > { %v2168_v39 = vmax.f32 %v2104_v43, 0.0  ;;  %v2169_v9 = vmax.f32 %v2105_v49, 0.0  ;;  %2987 = vmatpush.bf16.msrb.mxu2 %v4095_v35  ;;  %3036 = vmatpush.bf16.msrb.mxu3 %v4159_v37  ;;  %v4087_v35 = vor.u32 %v4504_v47, %v4084_v54  ;;  %v4151_v37 = vor.u32 %v4520_v26, %v4148_v29  ;;  %v4268_v63 = vld [vmem:[#allocation4 + $0x188] sm:$0xf0] }
 0x3c9   : > { %v4271_v29 = vor.u32 %v4550_v23, %v4268_v63 }
 0x3ca   : > { %v2218_v58 = vpack.c.bf16 %v2169_v9, %v2168_v39  ;;  %2912 = vmatmul.bf16.gmra.mxu0 %v5712_v30  ;;  %2961 = vmatmul.bf16.gmra.mxu1 %v5714_v22  ;;  %v4538_v9 = vld [vmem:[#allocation4 + $0x124] sm:$0xf] }
 0x3cb   : > { %v1831_v8 = vpop.f32.mrf.mxu2  ;;  %v1880_v5 = vpop.f32.mrf.mxu3  ;;  %3134 = vmatpush.bf16.msrb.mxu1 %v4287_v53 }
 0x3cc   : > { %v2034_v48 = vadd.f32 %v5604_v50, %v1831_v8  ;;  %v2035_v45 = vadd.f32 %v5607_v55, %v1880_v5  ;;  %v2366_v28 = vunpack.c.l.b16 %v2218_v58  ;;  %v2367_v15 = vunpack.c.h.b16 %v2218_v58  ;;  %v4220_v58 = vld [vmem:[#allocation4 + $0x128] sm:$0xf0]  ;;  %2988 = vmatpush.bf16.msrb.mxu2 %v4087_v35  ;;  %3037 = vmatpush.bf16.msrb.mxu3 %v4151_v37  ;;  %v4518_v37 = vld [vmem:[#allocation4 + $0x84] sm:$0xf] }
 0x3ce   : > { %v2108_v6 = vadd.f32 %v5610_v61, %v2034_v48  ;;  %v2109_v3 = vadd.f32 %v5625_v19, %v2035_v45  ;;  %v5812_v52 = vpack.c.b16 %v2366_v28, %v2362_v17  ;;  %v5814_v20 = vpack.c.b16 %v2367_v15, %v2363_v36 }
 0x3cf   : > { %v4223_v17 = vor.u32 %v4538_v9, %v4220_v58  ;;  %v4536_v9 = vld [vmem:[#allocation4 + $0x114] sm:$0xf]  ;;  %v4212_v58 = vld [vmem:[#allocation4 + $0x118] sm:$0xf0] }
 0x3d0   : > { %2809 = vmatmul.bf16.gmra.mxu2 %v5812_v52  ;;  %2858 = vmatmul.bf16.gmra.mxu3 %v5814_v20  ;;  %v2172_v60 = vmax.f32 %v2108_v6, 0.0  ;;  %v2173_v56 = vmax.f32 %v2109_v3, 0.0 }
 0x3d1   : > { %3085 = vmatpush.bf16.msra.mxu0 %v4223_v17 }
 0x3d2   : > { %v2220_v43 = vpack.c.bf16 %v2173_v56, %v2172_v60 }
 0x3d3   : > { %v1833_v24 = vpop.f32.mrf.mxu2  ;;  %v1882_v25 = vpop.f32.mrf.mxu3 }
 0x3d4   : > { %v2038_v0 = vadd.f32 %v5604_v50, %v1833_v24  ;;  %v2039_v32 = vadd.f32 %v5607_v55, %v1882_v25  ;;  %v2370_v8 = vunpack.c.l.b16 %v2220_v43  ;;  %v2371_v5 = vunpack.c.h.b16 %v2220_v43 }
 0x3d6   : > { %v2112_v41 = vadd.f32 %v5610_v61, %v2038_v0  ;;  %v2113_v42 = vadd.f32 %v5625_v19, %v2039_v32 }
 0x3d8   : > { %v2176_v49 = vmax.f32 %v2112_v41, 0.0  ;;  %v2177_v12 = vmax.f32 %v2113_v42, 0.0 }
 0x3da   : > { %v2222_v39 = vpack.c.bf16 %v2177_v12, %v2176_v49  ;;  %2917 = vmatmul.bf16.gmra.mxu0 %v5752_v34  ;;  %2966 = vmatmul.bf16.gmra.mxu1 %v5754_v7 }
 0x3db   : > { %v1836_v46 = vpop.f32.mrf.mxu2  ;;  %v1885_v18 = vpop.f32.mrf.mxu3 }
 0x3dc   : > { %v2042_v36 = vadd.f32 %v5604_v50, %v1836_v46  ;;  %v2043_v59 = vadd.f32 %v5607_v55, %v1885_v18  ;;  %v2374_v48 = vunpack.c.l.b16 %v2222_v39  ;;  %v2375_v45 = vunpack.c.h.b16 %v2222_v39  ;;  %v4552_v46 = vld [vmem:[#allocation4 + $0x194] sm:$0xf] }
 0x3de   : > { %v2116_v28 = vadd.f32 %v5610_v61, %v2042_v36  ;;  %v2117_v15 = vadd.f32 %v5625_v19, %v2043_v59  ;;  %v5828_v6 = vpack.c.b16 %v2374_v48, %v2370_v8  ;;  %v5830_v3 = vpack.c.b16 %v2375_v45, %v2371_v5  ;;  %v4276_v59 = vld [vmem:[#allocation4 + $0x198] sm:$0xf0]  ;;  %v4534_v48 = vld [vmem:[#allocation4 + $0x104] sm:$0xf]  ;;  %v4204_v45 = vld [vmem:[#allocation4 + $0x108] sm:$0xf0] }
 0x3df   : > { %v4215_v36 = vor.u32 %v4536_v9, %v4212_v58  ;;  %v4279_v47 = vor.u32 %v4552_v46, %v4276_v59 }
 0x3e0   : > { %2814 = vmatmul.bf16.gmra.mxu2 %v5828_v6  ;;  %2863 = vmatmul.bf16.gmra.mxu3 %v5830_v3  ;;  %v2180_v60 = vmax.f32 %v2116_v28, 0.0  ;;  %v2181_v56 = vmax.f32 %v2117_v15, 0.0 }
 0x3e1   : > { %3086 = vmatpush.bf16.msra.mxu0 %v4215_v36  ;;  %3135 = vmatpush.bf16.msrb.mxu1 %v4279_v47 }
 0x3e2   : > { %v2224_v43 = vpack.c.bf16 %v2181_v56, %v2180_v60 }
 0x3e3   : > { %v1838_v24 = vpop.f32.mrf.mxu2  ;;  %v1887_v25 = vpop.f32.mrf.mxu3 }
 0x3e4   : > { %v2046_v0 = vadd.f32 %v5604_v50, %v1838_v24  ;;  %v2047_v32 = vadd.f32 %v5607_v55, %v1887_v25  ;;  %v2378_v5 = vunpack.c.l.b16 %v2224_v43  ;;  %v2379_v17 = vunpack.c.h.b16 %v2224_v43 }
 0x3e5   : > { %v4207_v24 = vor.u32 %v4534_v48, %v4204_v45  ;;  %3136 = vmatpush.bf16.msrb.mxu1 %v4271_v29 }
 0x3e6   : > { %v2120_v41 = vadd.f32 %v5610_v61, %v2046_v0  ;;  %v2121_v42 = vadd.f32 %v5625_v19, %v2047_v32  ;;  %v4502_v0 = vld [vmem:[#allocation4 + $0x4] sm:$0xf]  ;;  %v4076_v32 = vld [vmem:[#allocation4 + $0x8] sm:$0xf0] }
 0x3e7   : > { %3087 = vmatpush.bf16.msra.mxu0 %v4207_v24  ;;  %v4079_v35 = vor.u32 %v4502_v0, %v4076_v32 }
 0x3e8   : > { %v2184_v49 = vmax.f32 %v2120_v41, 0.0  ;;  %v2185_v12 = vmax.f32 %v2121_v42, 0.0  ;;  %v4140_v41 = vld [vmem:[#allocation4 + $0x88] sm:$0xf0] }
 0x3e9   : > { %v4143_v42 = vor.u32 %v4518_v37, %v4140_v41  ;;  %2989 = vmatpush.bf16.msrb.mxu2 %v4079_v35 }
 0x3ea   : > { %v2226_v39 = vpack.c.bf16 %v2185_v12, %v2184_v49  ;;  %2922 = vmatmul.bf16.gmra.mxu0 %v5768_v14  ;;  %2971 = vmatmul.bf16.gmra.mxu1 %v5770_v1 }
 0x3eb   : > { %v1841_v18 = vpop.f32.mrf.mxu2  ;;  %v1890_v8 = vpop.f32.mrf.mxu3  ;;  %3038 = vmatpush.bf16.msrb.mxu3 %v4143_v42 }
 0x3ec   : > { %v2050_v28 = vadd.f32 %v5604_v50, %v1841_v18  ;;  %v2051_v15 = vadd.f32 %v5607_v55, %v1890_v8  ;;  %v2382_v60 = vunpack.c.l.b16 %v2226_v39  ;;  %v2383_v56 = vunpack.c.h.b16 %v2226_v39 }
 0x3ee   : > { %v5842_v25 = vpack.c.b16 %v2382_v60, %v2378_v5  ;;  %v5844_v53 = vpack.c.b16 %v2383_v56, %v2379_v17  ;;  %v2124_v54 = vadd.f32 %v5610_v61, %v2050_v28  ;;  %v2125_v26 = vadd.f32 %v5625_v19, %v2051_v15 }
 0x3f0   : > { %2819 = vmatmul.bf16.gmra.mxu2 %v5842_v25  ;;  %2868 = vmatmul.bf16.gmra.mxu3 %v5844_v53  ;;  %v2188_v43 = vmax.f32 %v2124_v54, 0.0  ;;  %v2189_v49 = vmax.f32 %v2125_v26, 0.0 }
 0x3f2   : > { %v2228_v8 = vpack.c.bf16 %v2189_v49, %v2188_v43 }
 0x3f3   : > { %v1843_v12 = vpop.f32.mrf.mxu2  ;;  %v1892_v39 = vpop.f32.mrf.mxu3 }
 0x3f4   : > { %v2054_v9 = vadd.f32 %v5604_v50, %v1843_v12  ;;  %v2055_v58 = vadd.f32 %v5607_v55, %v1892_v39  ;;  %v2386_v45 = vunpack.c.l.b16 %v2228_v8  ;;  %v2387_v28 = vunpack.c.h.b16 %v2228_v8 }
 0x3f6   : > { %v2128_v46 = vadd.f32 %v5610_v61, %v2054_v9  ;;  %v2129_v18 = vadd.f32 %v5625_v19, %v2055_v58 }
 0x3f8   : > { %v2192_v5 = vmax.f32 %v2128_v46, 0.0  ;;  %v2193_v17 = vmax.f32 %v2129_v18, 0.0 }
 0x3fa   : > { %v2230_v36 = vpack.c.bf16 %v2193_v17, %v2192_v5  ;;  %2927 = vmatmul.bf16.gmra.mxu0 %v5790_v10  ;;  %2976 = vmatmul.bf16.gmra.mxu1 %v5792_v16 }
 0x3fb   : > { %v1846_v59 = vpop.f32.mrf.mxu2  ;;  %v1895_v48 = vpop.f32.mrf.mxu3 }
 0x3fc   : > { %v2058_v15 = vadd.f32 %v5604_v50, %v1846_v59  ;;  %v2059_v60 = vadd.f32 %v5607_v55, %v1895_v48  ;;  %v2390_v56 = vunpack.c.l.b16 %v2230_v36  ;;  %v2391_v23 = vunpack.c.h.b16 %v2230_v36  ;;  %v5883_v59 = vld [vmem:[%s6077_s13] sm:$0x3] }
 0x3fe   : > { %v5858_v63 = vpack.c.b16 %v2390_v56, %v2386_v45  ;;  %v5860_v47 = vpack.c.b16 %v2391_v23, %v2387_v28  ;;  %v2132_v24 = vadd.f32 %v5610_v61, %v2058_v15  ;;  %v2133_v54 = vadd.f32 %v5625_v19, %v2059_v60 }
 0x3ff   : > { %v5888_v28 = vperm.slane %v5883_v59, 0 }
 0x400   : > { %2824 = vmatmul.bf16.gmra.mxu2 %v5858_v63  ;;  %2873 = vmatmul.bf16.gmra.mxu3 %v5860_v47  ;;  %v2196_v0 = vmax.f32 %v2132_v24, 0.0  ;;  %v2197_v32 = vmax.f32 %v2133_v54, 0.0 }
 0x402   : > { %v2232_v12 = vpack.c.bf16 %v2197_v32, %v2196_v0  ;;  %v4580_v0 = vld [vmem:[#allocation6 + $0x70] sm:$0xff] }
 0x403   : > { %v1848_v26 = vpop.f32.mrf.mxu2  ;;  %v1897_v29 = vpop.f32.mrf.mxu3 }
 0x404   : > { %v2062_v35 = vadd.f32 %v5604_v50, %v1848_v26  ;;  %v2063_v37 = vadd.f32 %v5607_v55, %v1897_v29  ;;  %v2394_v46 = vunpack.c.l.b16 %v2232_v12  ;;  %v2395_v8 = vunpack.c.h.b16 %v2232_v12  ;;  %v4572_v29 = vld [vmem:[#allocation6 + $0x30] sm:$0xff] }
 0x406   : > { %v2136_v41 = vadd.f32 %v5610_v61, %v2062_v35  ;;  %v2137_v42 = vadd.f32 %v5625_v19, %v2063_v37 }
 0x407   : > { %v2893_v43 = vpop.f32.mrf.mxu0  ;;  %v2942_v49 = vpop.f32.mrf.mxu1 }
 0x408   : > { %v2200_v39 = vmax.f32 %v2136_v41, 0.0  ;;  %v2201_v9 = vmax.f32 %v2137_v42, 0.0 }
 0x40a   : > { %v2234_v58 = vpack.c.bf16 %v2201_v9, %v2200_v39  ;;  %3088 = vmatmul.bf16.vlgmr.msra.gmra.mxu0 %v5612_v62  ;;  %3137 = vmatmul.bf16.vlgmr.msrb.gmra.mxu1 %v5614_v31  ;;  %v4573_v62 = vld [vmem:[#allocation6 + $0x38] sm:$0xff] }
 0x40b   : > { %v4581_v31 = vld [vmem:[#allocation6 + $0x78] sm:$0xff]  ;;  %3358 = vmatpush.bf16.msra.mxu2 %v4573_v62 }
 0x40c   : > { %v2398_v18 = vunpack.c.l.b16 %v2234_v58  ;;  %v2399_v50 = vunpack.c.h.b16 %v2234_v58  ;;  %3407 = vmatpush.bf16.msra.mxu3 %v4581_v31 }
 0x40e   : > { %v5872_v5 = vpack.c.b16 %v2398_v18, %v2394_v46  ;;  %v5874_v55 = vpack.c.b16 %v2399_v50, %v2395_v8 }
 0x40f   : > { %v2895_v61 = vpop.f32.mrf.mxu0  ;;  %v2944_v19 = vpop.f32.mrf.mxu1  ;;  %3359 = vmatpush.bf16.msra.mxu2 %v4572_v29 }
 0x410   : > { %2829 = vmatmul.bf16.gmra.mxu2 %v5872_v5  ;;  %2878 = vmatmul.bf16.gmra.mxu3 %v5874_v55 }
 0x411   : > { %3408 = vmatpush.bf16.msra.mxu3 %v4580_v0 }
 0x417   : > { %v2898_v17 = vpop.f32.mrf.mxu0  ;;  %v2947_v36 = vpop.f32.mrf.mxu1 }
 0x41a   : > { %3093 = vmatmul.bf16.gmra.mxu0 %v5655_v27  ;;  %3142 = vmatmul.bf16.gmra.mxu1 %v5657_v57 }
 0x41f   : > { %v2900_v48 = vpop.f32.mrf.mxu0  ;;  %v2949_v45 = vpop.f32.mrf.mxu1 }
 0x420   : > { %2990 = vmatmul.bf16.vlgmr.msrb.gmra.mxu2 %v5702_v40  ;;  %3039 = vmatmul.bf16.vlgmr.msrb.gmra.mxu3 %v5704_v21 }
 0x423   : > { %v2795_v27 = vpop.f32.mrf.mxu2  ;;  %v2844_v57 = vpop.f32.mrf.mxu3 }
 0x424   : > { %v2796_v15 = vadd.f32 %v2795_v27, %v5888_v28 }
 0x426   : > { %v2845_v60 = vadd.f32 %v2844_v57, %v2796_v15 }
 0x427   : > { %v2903_v56 = vpop.f32.mrf.mxu0  ;;  %v2952_v23 = vpop.f32.mrf.mxu1 }
 0x428   : > { %v2894_v24 = vadd.f32 %v2893_v43, %v2845_v60 }
 0x42a   : > { %v2943_v54 = vadd.f32 %v2942_v49, %v2894_v24  ;;  %3098 = vmatmul.bf16.gmra.mxu0 %v5671_v38  ;;  %3147 = vmatmul.bf16.gmra.mxu1 %v5673_v11 }
 0x42b   : > { %v2797_v26 = vpop.f32.mrf.mxu2  ;;  %v2846_v40 = vpop.f32.mrf.mxu3 }
 0x42c   : > { %v2798_v21 = vadd.f32 %v2797_v26, %v5888_v28  ;;  %v3178_v11 = vmax.f32 %v2943_v54, 0.0 }
 0x42e   : > { %v2847_v32 = vadd.f32 %v2846_v40, %v2798_v21  ;;  %v4570_v21 = vld [vmem:[#allocation6 + $0x20] sm:$0xff] }
 0x42f   : > { %v2905_v35 = vpop.f32.mrf.mxu0  ;;  %v2954_v37 = vpop.f32.mrf.mxu1 }
 0x430   : > { %v2896_v41 = vadd.f32 %v2895_v61, %v2847_v32  ;;  %2995 = vmatmul.bf16.gmra.mxu2 %v5758_v4  ;;  %3044 = vmatmul.bf16.gmra.mxu3 %v5760_v51  ;;  %v4571_v61 = vld [vmem:[#allocation6 + $0x28] sm:$0xff] }
 0x431   : > { %3360 = vmatpush.bf16.msra.mxu2 %v4571_v61 }
 0x432   : > { %v2945_v42 = vadd.f32 %v2944_v19, %v2896_v41  ;;  %v4579_v19 = vld [vmem:[#allocation6 + $0x68] sm:$0xff] }
 0x433   : > { %v2800_v38 = vpop.f32.mrf.mxu2  ;;  %v2849_v43 = vpop.f32.mrf.mxu3  ;;  %3409 = vmatpush.bf16.msra.mxu3 %v4579_v19 }
 0x434   : > { %v3180_v49 = vmax.f32 %v2945_v42, 0.0  ;;  %v2801_v12 = vadd.f32 %v2800_v38, %v5888_v28 }
 0x435   : > { %3361 = vmatpush.bf16.msra.mxu2 %v4570_v21 }
 0x436   : > { %v5897_v39 = vpack.c.bf16 %v3180_v49, %v3178_v11  ;;  %v2850_v9 = vadd.f32 %v2849_v43, %v2801_v12 }
 0x437   : > { %v2908_v58 = vpop.f32.mrf.mxu0  ;;  %v2957_v46 = vpop.f32.mrf.mxu1 }
 0x438   : > { %v2899_v18 = vadd.f32 %v2898_v17, %v2850_v9 }
 0x43a   : > { %v2948_v8 = vadd.f32 %v2947_v36, %v2899_v18  ;;  %3103 = vmatmul.bf16.gmra.mxu0 %v5782_v44  ;;  %3152 = vmatmul.bf16.gmra.mxu1 %v5784_v33  ;;  %v4577_v18 = vld [vmem:[#allocation6 + $0x58] sm:$0xff] }
 0x43b   : > { %v2802_v4 = vpop.f32.mrf.mxu2  ;;  %v2851_v51 = vpop.f32.mrf.mxu3 }
 0x43c   : > { %v2803_v50 = vadd.f32 %v2802_v4, %v5888_v28  ;;  %v3182_v11 = vmax.f32 %v2948_v8, 0.0 }
 0x43e   : > { %v2852_v62 = vadd.f32 %v2851_v51, %v2803_v50 }
 0x43f   : > { %v2910_v31 = vpop.f32.mrf.mxu0  ;;  %v2959_v27 = vpop.f32.mrf.mxu1 }
 0x440   : > { %v2901_v57 = vadd.f32 %v2900_v48, %v2852_v62  ;;  %3000 = vmatmul.bf16.gmra.mxu2 %v5796_v13  ;;  %3049 = vmatmul.bf16.gmra.mxu3 %v5798_v2  ;;  %v4578_v2 = vld [vmem:[#allocation6 + $0x60] sm:$0xff] }
 0x441   : > { %3410 = vmatpush.bf16.msra.mxu3 %v4578_v2 }
 0x442   : > { %v2950_v17 = vadd.f32 %v2949_v45, %v2901_v57 }
 0x443   : > { %v2805_v44 = vpop.f32.mrf.mxu2  ;;  %v2854_v36 = vpop.f32.mrf.mxu3 }
 0x444   : > { %v2806_v33 = vadd.f32 %v2805_v44, %v5888_v28  ;;  %v3184_v49 = vmax.f32 %v2950_v17, 0.0 }
 0x445   : > { %3411 = vmatpush.bf16.msra.mxu3 %v4577_v18 }
 0x446   : > { %v2855_v15 = vadd.f32 %v2854_v36, %v2806_v33  ;;  %v5913_v9 = vpack.c.bf16 %v3184_v49, %v3182_v11 }
 0x447   : > { %v2913_v60 = vpop.f32.mrf.mxu0  ;;  %v2962_v24 = vpop.f32.mrf.mxu1 }
 0x448   : > { %v2904_v54 = vadd.f32 %v2903_v56, %v2855_v15  ;;  %v4576_v15 = vld [vmem:[#allocation6 + $0x50] sm:$0xff] }
 0x449   : > { %3412 = vmatpush.bf16.msra.mxu3 %v4576_v15 }
 0x44a   : > { %v2953_v26 = vadd.f32 %v2952_v23, %v2904_v54  ;;  %3108 = vmatmul.bf16.gmra.mxu0 %v5712_v30  ;;  %3157 = vmatmul.bf16.gmra.mxu1 %v5714_v22 }
 0x44b   : > { %v2807_v40 = vpop.f32.mrf.mxu2  ;;  %v2856_v48 = vpop.f32.mrf.mxu3 }
 0x44c   : > { %v2808_v13 = vadd.f32 %v2807_v40, %v5888_v28  ;;  %v3186_v17 = vmax.f32 %v2953_v26, 0.0 }
 0x44e   : > { %v2857_v45 = vadd.f32 %v2856_v48, %v2808_v13 }
 0x44f   : > { %v2915_v29 = vpop.f32.mrf.mxu0  ;;  %v2964_v0 = vpop.f32.mrf.mxu1 }
 0x450   : > { %v2906_v32 = vadd.f32 %v2905_v35, %v2857_v45  ;;  %3005 = vmatmul.bf16.gmra.mxu2 %v5812_v52  ;;  %3054 = vmatmul.bf16.gmra.mxu3 %v5814_v20 }
 0x452   : > { %v2955_v56 = vadd.f32 %v2954_v37, %v2906_v32  ;;  %v4569_v37 = vld [vmem:[#allocation6 + $0x18] sm:$0xff] }
 0x453   : > { %v2810_v30 = vpop.f32.mrf.mxu2  ;;  %v2859_v23 = vpop.f32.mrf.mxu3  ;;  %3362 = vmatpush.bf16.msra.mxu2 %v4569_v37 }
 0x454   : > { %v2811_v22 = vadd.f32 %v2810_v30, %v5888_v28  ;;  %v3188_v44 = vmax.f32 %v2955_v56, 0.0 }
 0x456   : > { %v2860_v41 = vadd.f32 %v2859_v23, %v2811_v22  ;;  %v5921_v33 = vpack.c.bf16 %v3188_v44, %v3186_v17  ;;  %v4575_v22 = vld [vmem:[#allocation6 + $0x48] sm:$0xff] }
 0x457   : > { %v2918_v42 = vpop.f32.mrf.mxu0  ;;  %v2967_v38 = vpop.f32.mrf.mxu1  ;;  %3413 = vmatpush.bf16.msra.mxu3 %v4575_v22 }
 0x458   : > { %v2909_v43 = vadd.f32 %v2908_v58, %v2860_v41 }
 0x45a   : > { %v2958_v12 = vadd.f32 %v2957_v46, %v2909_v43  ;;  %3113 = vmatmul.bf16.gmra.mxu0 %v5752_v34  ;;  %3162 = vmatmul.bf16.gmra.mxu1 %v5754_v7 }
 0x45b   : > { %v2812_v35 = vpop.f32.mrf.mxu2  ;;  %v2861_v52 = vpop.f32.mrf.mxu3 }
 0x45c   : > { %v2813_v20 = vadd.f32 %v2812_v35, %v5888_v28  ;;  %v3190_v32 = vmax.f32 %v2958_v12, 0.0 }
 0x45e   : > { %v2862_v4 = vadd.f32 %v2861_v52, %v2813_v20 }
 0x45f   : > { %v2920_v51 = vpop.f32.mrf.mxu0  ;;  %v2969_v58 = vpop.f32.mrf.mxu1 }
 0x460   : > { %v2911_v8 = vadd.f32 %v2910_v31, %v2862_v4  ;;  %3010 = vmatmul.bf16.gmra.mxu2 %v5828_v6  ;;  %3059 = vmatmul.bf16.gmra.mxu3 %v5830_v3 }
 0x462   : > { %v2960_v34 = vadd.f32 %v2959_v27, %v2911_v8  ;;  %v4568_v27 = vld [vmem:[#allocation6 + $0x10] sm:$0xff] }
 0x463   : > { %v2815_v7 = vpop.f32.mrf.mxu2  ;;  %v2864_v46 = vpop.f32.mrf.mxu3  ;;  %3363 = vmatpush.bf16.msra.mxu2 %v4568_v27 }
 0x464   : > { %v2816_v50 = vadd.f32 %v2815_v7, %v5888_v28  ;;  %v3192_v56 = vmax.f32 %v2960_v34, 0.0 }
 0x466   : > { %v2865_v61 = vadd.f32 %v2864_v46, %v2816_v50  ;;  %v5929_v23 = vpack.c.bf16 %v3192_v56, %v3190_v32 }
 0x467   : > { %v2923_v19 = vpop.f32.mrf.mxu0  ;;  %v2972_v62 = vpop.f32.mrf.mxu1 }
 0x468   : > { %v2914_v57 = vadd.f32 %v2913_v60, %v2865_v61 }
 0x46a   : > { %v2963_v36 = vadd.f32 %v2962_v24, %v2914_v57  ;;  %3118 = vmatmul.bf16.gmra.mxu0 %v5768_v14  ;;  %3167 = vmatmul.bf16.gmra.mxu1 %v5770_v1 }
 0x46b   : > { %v2817_v31 = vpop.f32.mrf.mxu2  ;;  %v2866_v6 = vpop.f32.mrf.mxu3 }
 0x46c   : > { %v2818_v3 = vadd.f32 %v2817_v31, %v5888_v28  ;;  %v3194_v37 = vmax.f32 %v2963_v36, 0.0 }
 0x46e   : > { %v2867_v54 = vadd.f32 %v2866_v6, %v2818_v3 }
 0x46f   : > { %v2925_v40 = vpop.f32.mrf.mxu0  ;;  %v2974_v60 = vpop.f32.mrf.mxu1 }
 0x470   : > { %v2916_v26 = vadd.f32 %v2915_v29, %v2867_v54  ;;  %3015 = vmatmul.bf16.gmra.mxu2 %v5842_v25  ;;  %3064 = vmatmul.bf16.gmra.mxu3 %v5844_v53 }
 0x472   : > { %v2965_v14 = vadd.f32 %v2964_v0, %v2916_v26  ;;  %v4567_v0 = vld [vmem:[#allocation6 + $0x8] sm:$0xff] }
 0x473   : > { %v2820_v1 = vpop.f32.mrf.mxu2  ;;  %v2869_v24 = vpop.f32.mrf.mxu3  ;;  %3364 = vmatpush.bf16.msra.mxu2 %v4567_v0 }
 0x474   : > { %v2821_v48 = vadd.f32 %v2820_v1, %v5888_v28  ;;  %v3196_v18 = vmax.f32 %v2965_v14, 0.0  ;;  %v5946_v14 = vperm.slane %v5883_v59, 1  ;;  %v4589_v59 = vld [vmem:[%s6080_s16 + $0x38] sm:$0xff] }
 0x475   : > { %3548 = vmatpush.bf16.msrb.mxu0 %v4589_v59 }
 0x476   : > { %v2870_v13 = vadd.f32 %v2869_v24, %v2821_v48  ;;  %v5935_v7 = vpack.c.bf16 %v3196_v18, %v3194_v37 }
 0x477   : > { %v2928_v21 = vpop.f32.mrf.mxu0  ;;  %v2977_v2 = vpop.f32.mrf.mxu1 }
 0x478   : > { %v2919_v45 = vadd.f32 %v2918_v42, %v2870_v13 }
 0x47a   : > { %v2968_v30 = vadd.f32 %v2967_v38, %v2919_v45  ;;  %3123 = vmatmul.bf16.gmra.mxu0 %v5790_v10  ;;  %3172 = vmatmul.bf16.gmra.mxu1 %v5792_v16  ;;  %v4566_v16 = vld [vmem:[#allocation6] sm:$0xff] }
 0x47b   : > { %v2822_v29 = vpop.f32.mrf.mxu2  ;;  %v2871_v25 = vpop.f32.mrf.mxu3  ;;  %3365 = vmatpush.bf16.msra.mxu2 %v4566_v16 }
 0x47c   : > { %v2823_v53 = vadd.f32 %v2822_v29, %v5888_v28  ;;  %v3198_v31 = vmax.f32 %v2968_v30, 0.0 }
 0x47e   : > { %v2872_v41 = vadd.f32 %v2871_v25, %v2823_v53 }
 0x47f   : > { %v2930_v43 = vpop.f32.mrf.mxu0  ;;  %v2979_v11 = vpop.f32.mrf.mxu1 }
 0x480   : > { %v2921_v42 = vadd.f32 %v2920_v51, %v2872_v41  ;;  %3020 = vmatmul.bf16.gmra.mxu2 %v5858_v63  ;;  %3069 = vmatmul.bf16.gmra.mxu3 %v5860_v47  ;;  %v4574_v47 = vld [vmem:[#allocation6 + $0x40] sm:$0xff] }
 0x481   : > { %3414 = vmatpush.bf16.msra.mxu3 %v4574_v47 }
 0x482   : > { %v2970_v10 = vadd.f32 %v2969_v58, %v2921_v42 }
 0x483   : > { %v2825_v38 = vpop.f32.mrf.mxu2  ;;  %v2874_v49 = vpop.f32.mrf.mxu3 }
 0x484   : > { %v2826_v12 = vadd.f32 %v2825_v38, %v5888_v28  ;;  %v3200_v6 = vmax.f32 %v2970_v10, 0.0 }
 0x486   : > { %v2875_v35 = vadd.f32 %v2874_v49, %v2826_v12  ;;  %v5941_v54 = vpack.c.bf16 %v3200_v6, %v3198_v31 }
 0x487   : > { %v3089_v20 = vpop.f32.mrf.mxu0  ;;  %v3138_v8 = vpop.f32.mrf.mxu1 }
 0x488   : > { %v2924_v52 = vadd.f32 %v2923_v19, %v2875_v35 }
 0x48a   : > { %v2973_v4 = vadd.f32 %v2972_v62, %v2924_v52 }
 0x48b   : > { %v2827_v51 = vpop.f32.mrf.mxu2  ;;  %v2876_v34 = vpop.f32.mrf.mxu3 }
 0x48c   : > { %v2828_v63 = vadd.f32 %v2827_v51, %v5888_v28  ;;  %v3202_v32 = vmax.f32 %v2973_v4, 0.0 }
 0x48e   : > { %v2877_v58 = vadd.f32 %v2876_v34, %v2828_v63  ;;  %v4588_v63 = vld [vmem:[%s6080_s16 + $0x30] sm:$0xff] }
 0x48f   : > { %v3091_v61 = vpop.f32.mrf.mxu0  ;;  %v3140_v62 = vpop.f32.mrf.mxu1  ;;  %3549 = vmatpush.bf16.msrb.mxu0 %v4588_v63 }
 0x490   : > { %v2926_v46 = vadd.f32 %v2925_v40, %v2877_v58  ;;  %3025 = vmatmul.bf16.gmra.mxu2 %v5872_v5  ;;  %3074 = vmatmul.bf16.gmra.mxu3 %v5874_v55 }
 0x492   : > { %v2975_v50 = vadd.f32 %v2974_v60, %v2926_v46 }
 0x493   : > { %v2830_v19 = vpop.f32.mrf.mxu2  ;;  %v2879_v57 = vpop.f32.mrf.mxu3 }
 0x494   : > { %v2831_v17 = vadd.f32 %v2830_v19, %v5888_v28  ;;  %v3204_v56 = vmax.f32 %v2975_v50, 0.0 }
 0x496   : > { %v2880_v44 = vadd.f32 %v2879_v57, %v2831_v17  ;;  %v5949_v29 = vpack.c.bf16 %v3204_v56, %v3202_v32 }
 0x497   : > { %v3094_v40 = vpop.f32.mrf.mxu0  ;;  %v3143_v55 = vpop.f32.mrf.mxu1 }
 0x498   : > { %v2929_v36 = vadd.f32 %v2928_v21, %v2880_v44 }
 0x49a   : > { %v2978_v3 = vadd.f32 %v2977_v2, %v2929_v36 }
 0x49b   : > { %v2832_v27 = vpop.f32.mrf.mxu2  ;;  %v2881_v15 = vpop.f32.mrf.mxu3 }
 0x49c   : > { %v2833_v5 = vadd.f32 %v2832_v27, %v5888_v28  ;;  %v3206_v52 = vmax.f32 %v2978_v3, 0.0 }
 0x49e   : > { %v2882_v60 = vadd.f32 %v2881_v15, %v2833_v5 }
 0x49f   : > { %v3096_v21 = vpop.f32.mrf.mxu0  ;;  %v3145_v2 = vpop.f32.mrf.mxu1 }
 0x4a0   : > { %v2931_v26 = vadd.f32 %v2930_v43, %v2882_v60  ;;  %3366 = vmatmul.bf16.vlgmr.msra.gmra.mxu2 %v5897_v39 }
 0x4a2   : > { %v2980_v1 = vadd.f32 %v2979_v11, %v2931_v26 }
 0x4a3   : > { %v2991_v24 = vpop.f32.mrf.mxu2  ;;  %v3040_v48 = vpop.f32.mrf.mxu3 }
 0x4a4   : > { %v2992_v13 = vadd.f32 %v2991_v24, %v5946_v14 }
 0x4a6   : > { %v3041_v45 = vadd.f32 %v3040_v48, %v2992_v13 }
 0x4a7   : > { %v3099_v22 = vpop.f32.mrf.mxu0  ;;  %v3148_v43 = vpop.f32.mrf.mxu1 }
 0x4a8   : > { %v3090_v25 = vadd.f32 %v3089_v20, %v3041_v45  ;;  %v3208_v20 = vmax.f32 %v2980_v1, 0.0 }
 0x4aa   : > { %v3139_v0 = vadd.f32 %v3138_v8, %v3090_v25  ;;  %v5957_v8 = vpack.c.bf16 %v3208_v20, %v3206_v52 }
 0x4ab   : > { %v2993_v30 = vpop.f32.mrf.mxu2  ;;  %v3042_v28 = vpop.f32.mrf.mxu3 }
 0x4ac   : > { %v2994_v39 = vadd.f32 %v2993_v30, %v5946_v14  ;;  %v3179_v16 = vmax.f32 %v3139_v0, 0.0 }
 0x4ae   : > { %v3043_v53 = vadd.f32 %v3042_v28, %v2994_v39 }
 0x4af   : > { %v3101_v37 = vpop.f32.mrf.mxu0  ;;  %v3150_v51 = vpop.f32.mrf.mxu1 }
 0x4b0   : > { %v3092_v41 = vadd.f32 %v3091_v61, %v3043_v53  ;;  %3371 = vmatmul.bf16.gmra.mxu2 %v5913_v9 }
 0x4b2   : > { %v3141_v42 = vadd.f32 %v3140_v62, %v3092_v41 }
 0x4b3   : > { %v2996_v11 = vpop.f32.mrf.mxu2  ;;  %v3045_v10 = vpop.f32.mrf.mxu3 }
 0x4b4   : > { %v3181_v38 = vmax.f32 %v3141_v42, 0.0  ;;  %v2997_v49 = vadd.f32 %v2996_v11, %v5946_v14 }
 0x4b6   : > { %v3211_v12 = vpack.c.bf16 %v3181_v38, %v3179_v16  ;;  %v3046_v35 = vadd.f32 %v3045_v10, %v2997_v49 }
 0x4b7   : > { %v3104_v62 = vpop.f32.mrf.mxu0  ;;  %v3153_v36 = vpop.f32.mrf.mxu1 }
 0x4b8   : > { %3415 = vmatmul.bf16.vlgmr.msra.gmra.mxu3 %v3211_v12  ;;  %v3095_v9 = vadd.f32 %v3094_v40, %v3046_v35 }
 0x4ba   : > { %v3144_v58 = vadd.f32 %v3143_v55, %v3095_v9 }
 0x4bb   : > { %v2998_v18 = vpop.f32.mrf.mxu2  ;;  %v3047_v4 = vpop.f32.mrf.mxu3 }
 0x4bc   : > { %v2999_v34 = vadd.f32 %v2998_v18, %v5946_v14  ;;  %v3183_v57 = vmax.f32 %v3144_v58, 0.0 }
 0x4be   : > { %v3048_v47 = vadd.f32 %v3047_v4, %v2999_v34 }
 0x4bf   : > { %v3106_v5 = vpop.f32.mrf.mxu0  ;;  %v3155_v60 = vpop.f32.mrf.mxu1 }
 0x4c0   : > { %v3097_v46 = vadd.f32 %v3096_v21, %v3048_v47  ;;  %3376 = vmatmul.bf16.gmra.mxu2 %v5921_v33  ;;  %v4587_v33 = vld [vmem:[%s6080_s16 + $0x28] sm:$0xff] }
 0x4c1   : > { %3550 = vmatpush.bf16.msrb.mxu0 %v4587_v33 }
 0x4c2   : > { %v3146_v50 = vadd.f32 %v3145_v2, %v3097_v46 }
 0x4c3   : > { %v3001_v61 = vpop.f32.mrf.mxu2  ;;  %v3050_v19 = vpop.f32.mrf.mxu3 }
 0x4c4   : > { %v3002_v17 = vadd.f32 %v3001_v61, %v5946_v14  ;;  %v3185_v44 = vmax.f32 %v3146_v50, 0.0 }
 0x4c6   : > { %v3213_v31 = vpack.c.bf16 %v3185_v44, %v3183_v57  ;;  %v3051_v6 = vadd.f32 %v3050_v19, %v3002_v17 }
 0x4c7   : > { %v3109_v56 = vpop.f32.mrf.mxu0  ;;  %v3158_v28 = vpop.f32.mrf.mxu1 }
 0x4c8   : > { %3420 = vmatmul.bf16.gmra.mxu3 %v3213_v31  ;;  %v3100_v15 = vadd.f32 %v3099_v22, %v3051_v6 }
 0x4ca   : > { %v3149_v26 = vadd.f32 %v3148_v43, %v3100_v15 }
 0x4cb   : > { %v3003_v3 = vpop.f32.mrf.mxu2  ;;  %v3052_v27 = vpop.f32.mrf.mxu3 }
 0x4cc   : > { %v3004_v40 = vadd.f32 %v3003_v3, %v5946_v14  ;;  %v3187_v21 = vmax.f32 %v3149_v26, 0.0 }
 0x4ce   : > { %v3053_v55 = vadd.f32 %v3052_v27, %v3004_v40 }
 0x4cf   : > { %v3111_v43 = vpop.f32.mrf.mxu0  ;;  %v3160_v16 = vpop.f32.mrf.mxu1 }
 0x4d0   : > { %v3102_v1 = vadd.f32 %v3101_v37, %v3053_v55  ;;  %3381 = vmatmul.bf16.gmra.mxu2 %v5929_v23  ;;  %v4586_v23 = vld [vmem:[%s6080_s16 + $0x20] sm:$0xff] }
 0x4d1   : > { %3551 = vmatpush.bf16.msrb.mxu0 %v4586_v23 }
 0x4d2   : > { %v3151_v24 = vadd.f32 %v3150_v51, %v3102_v1 }
 0x4d3   : > { %v3006_v48 = vpop.f32.mrf.mxu2  ;;  %v3055_v13 = vpop.f32.mrf.mxu3 }
 0x4d4   : > { %v3007_v2 = vadd.f32 %v3006_v48, %v5946_v14  ;;  %v3189_v45 = vmax.f32 %v3151_v24, 0.0 }
 0x4d6   : > { %v3215_v32 = vpack.c.bf16 %v3189_v45, %v3187_v21  ;;  %v3056_v30 = vadd.f32 %v3055_v13, %v3007_v2  ;;  %v4583_v45 = vld [vmem:[%s6080_s16 + $0x8] sm:$0xff] }
 0x4d7   : > { %v3114_v18 = vpop.f32.mrf.mxu0  ;;  %v3163_v9 = vpop.f32.mrf.mxu1 }
 0x4d8   : > { %3425 = vmatmul.bf16.gmra.mxu3 %v3215_v32  ;;  %v3105_v59 = vadd.f32 %v3104_v62, %v3056_v30 }
 0x4da   : > { %v3154_v22 = vadd.f32 %v3153_v36, %v3105_v59 }
 0x4db   : > { %v3008_v25 = vpop.f32.mrf.mxu2  ;;  %v3057_v39 = vpop.f32.mrf.mxu3 }
 0x4dc   : > { %v3009_v53 = vadd.f32 %v3008_v25, %v5946_v14  ;;  %v3191_v38 = vmax.f32 %v3154_v22, 0.0 }
 0x4de   : > { %v3058_v0 = vadd.f32 %v3057_v39, %v3009_v53 }
 0x4df   : > { %v3116_v62 = vpop.f32.mrf.mxu0  ;;  %v3165_v44 = vpop.f32.mrf.mxu1 }
 0x4e0   : > { %v3107_v41 = vadd.f32 %v3106_v5, %v3058_v0  ;;  %3386 = vmatmul.bf16.gmra.mxu2 %v5935_v7  ;;  %v4585_v7 = vld [vmem:[%s6080_s16 + $0x18] sm:$0xff] }
 0x4e1   : > { %3552 = vmatpush.bf16.msrb.mxu0 %v4585_v7 }
 0x4e2   : > { %v3156_v42 = vadd.f32 %v3155_v60, %v3107_v41 }
 0x4e3   : > { %v3011_v11 = vpop.f32.mrf.mxu2  ;;  %v3060_v10 = vpop.f32.mrf.mxu3 }
 0x4e4   : > { %v3012_v49 = vadd.f32 %v3011_v11, %v5946_v14  ;;  %v3193_v12 = vmax.f32 %v3156_v42, 0.0  ;;  %v4582_v11 = vld [vmem:[%s6080_s16] sm:$0xff] }
 0x4e6   : > { %v3217_v35 = vpack.c.bf16 %v3193_v12, %v3191_v38  ;;  %v3061_v52 = vadd.f32 %v3060_v10, %v3012_v49 }
 0x4e7   : > { %v3119_v40 = vpop.f32.mrf.mxu0  ;;  %v3168_v55 = vpop.f32.mrf.mxu1 }
 0x4e8   : > { %3430 = vmatmul.bf16.gmra.mxu3 %v3217_v35  ;;  %v3110_v4 = vadd.f32 %v3109_v56, %v3061_v52 }
 0x4ea   : > { %v3159_v63 = vadd.f32 %v3158_v28, %v3110_v4 }
 0x4eb   : > { %v3013_v20 = vpop.f32.mrf.mxu2  ;;  %v3062_v37 = vpop.f32.mrf.mxu3 }
 0x4ec   : > { %v3014_v51 = vadd.f32 %v3013_v20, %v5946_v14  ;;  %v3195_v61 = vmax.f32 %v3159_v63, 0.0 }
 0x4ee   : > { %v3063_v34 = vadd.f32 %v3062_v37, %v3014_v51 }
 0x4ef   : > { %v3121_v32 = vpop.f32.mrf.mxu0  ;;  %v3170_v25 = vpop.f32.mrf.mxu1 }
 0x4f0   : > { %v3112_v47 = vadd.f32 %v3111_v43, %v3063_v34  ;;  %3391 = vmatmul.bf16.gmra.mxu2 %v5941_v54  ;;  %v4584_v54 = vld [vmem:[%s6080_s16 + $0x10] sm:$0xff] }
 0x4f1   : > { %3553 = vmatpush.bf16.msrb.mxu0 %v4584_v54 }
 0x4f2   : > { %v3161_v58 = vadd.f32 %v3160_v16, %v3112_v47 }
 0x4f3   : > { %v3016_v46 = vpop.f32.mrf.mxu2  ;;  %v3065_v50 = vpop.f32.mrf.mxu3 }
 0x4f4   : > { %v3197_v19 = vmax.f32 %v3161_v58, 0.0  ;;  %v3017_v57 = vadd.f32 %v3016_v46, %v5946_v14 }
 0x4f5   : > { %3554 = vmatpush.bf16.msrb.mxu0 %v4583_v45 }
 0x4f6   : > { %v3219_v17 = vpack.c.bf16 %v3197_v19, %v3195_v61  ;;  %v3066_v36 = vadd.f32 %v3065_v50, %v3017_v57 }
 0x4f7   : > { %v3124_v10 = vpop.f32.mrf.mxu0  ;;  %v3173_v38 = vpop.f32.mrf.mxu1 }
 0x4f8   : > { %3435 = vmatmul.bf16.gmra.mxu3 %v3219_v17  ;;  %v3115_v3 = vadd.f32 %v3114_v18, %v3066_v36 }
 0x4f9   : > { %3555 = vmatpush.bf16.msrb.mxu0 %v4582_v11 }
 0x4fa   : > { %v3164_v33 = vadd.f32 %v3163_v9, %v3115_v3 }
 0x4fb   : > { %v3018_v31 = vpop.f32.mrf.mxu2  ;;  %v3067_v6 = vpop.f32.mrf.mxu3 }
 0x4fc   : > { %v3019_v27 = vadd.f32 %v3018_v31, %v5946_v14  ;;  %v3199_v24 = vmax.f32 %v3164_v33, 0.0 }
 0x4fe   : > { %v3068_v15 = vadd.f32 %v3067_v6, %v3019_v27 }
 0x4ff   : > { %v3126_v37 = vpop.f32.mrf.mxu0  ;;  %v3175_v51 = vpop.f32.mrf.mxu1 }
 0x500   : > { %v3117_v5 = vadd.f32 %v3116_v62, %v3068_v15  ;;  %3396 = vmatmul.bf16.gmra.mxu2 %v5949_v29 }
 0x502   : > { %v3166_v60 = vadd.f32 %v3165_v44, %v3117_v5 }
 0x503   : > { %v3021_v26 = vpop.f32.mrf.mxu2  ;;  %v3070_v1 = vpop.f32.mrf.mxu3 }
 0x504   : > { %v3201_v48 = vmax.f32 %v3166_v60, 0.0  ;;  %v3022_v13 = vadd.f32 %v3021_v26, %v5946_v14 }
 0x506   : > { %v3221_v21 = vpack.c.bf16 %v3201_v48, %v3199_v24  ;;  %v3071_v2 = vadd.f32 %v3070_v1, %v3022_v13 }
 0x508   : > { %3440 = vmatmul.bf16.gmra.mxu3 %v3221_v21  ;;  %v3120_v29 = vadd.f32 %v3119_v40, %v3071_v2 }
 0x50a   : > { %v3169_v59 = vadd.f32 %v3168_v55, %v3120_v29 }
 0x50b   : > { %v3023_v56 = vpop.f32.mrf.mxu2  ;;  %v3072_v30 = vpop.f32.mrf.mxu3 }
 0x50c   : > { %v3024_v28 = vadd.f32 %v3023_v56, %v5946_v14  ;;  %v3203_v41 = vmax.f32 %v3169_v59, 0.0 }
 0x50e   : > { %v3073_v39 = vadd.f32 %v3072_v30, %v3024_v28 }
 0x510   : > { %v3122_v53 = vadd.f32 %v3121_v32, %v3073_v39  ;;  %3401 = vmatmul.bf16.gmra.mxu2 %v5957_v8 }
 0x512   : > { %v3171_v23 = vadd.f32 %v3170_v25, %v3122_v53 }
 0x513   : > { %v3026_v0 = vpop.f32.mrf.mxu2  ;;  %v3075_v22 = vpop.f32.mrf.mxu3 }
 0x514   : > { %v3205_v43 = vmax.f32 %v3171_v23, 0.0  ;;  %v3027_v42 = vadd.f32 %v3026_v0, %v5946_v14 }
 0x516   : > { %v3223_v16 = vpack.c.bf16 %v3205_v43, %v3203_v41  ;;  %v3076_v49 = vadd.f32 %v3075_v22, %v3027_v42 }
 0x518   : > { %3445 = vmatmul.bf16.gmra.mxu3 %v3223_v16  ;;  %v3125_v35 = vadd.f32 %v3124_v10, %v3076_v49 }
 0x51a   : > { %v3174_v18 = vadd.f32 %v3173_v38, %v3125_v35 }
 0x51b   : > { %v3028_v12 = vpop.f32.mrf.mxu2  ;;  %v3077_v52 = vpop.f32.mrf.mxu3 }
 0x51c   : > { %v3029_v8 = vadd.f32 %v3028_v12, %v5946_v14  ;;  %v3207_v34 = vmax.f32 %v3174_v18, 0.0  ;;  %v6002_v14 = vld [vmem:[%s6079_s15] ss:$0 sm:$0xff] }
 0x51e   : > { %v3078_v20 = vadd.f32 %v3077_v52, %v3029_v8 }
 0x520   : > { %v3127_v4 = vadd.f32 %v3126_v37, %v3078_v20 }
 0x522   : > { %v3176_v7 = vadd.f32 %v3175_v51, %v3127_v4 }
 0x523   : > { %v3367_v9 = vpop.f32.mrf.mxu2 }
 0x524   : > { %v3209_v63 = vmax.f32 %v3176_v7, 0.0  ;;  %v3368_v19 = vadd.f32 %v6002_v14, %v3367_v9 }
 0x526   : > { %v3225_v47 = vpack.c.bf16 %v3209_v63, %v3207_v34 }
 0x528   : > { %3450 = vmatmul.bf16.gmra.mxu3 %v3225_v47 }
 0x52b   : > { %v3369_v58 = vpop.f32.mrf.mxu2 }
 0x52c   : > { %v3370_v57 = vadd.f32 %v6002_v14, %v3369_v58 }
 0x533   : > { %v3372_v46 = vpop.f32.mrf.mxu2 }
 0x534   : > { %v3373_v15 = vadd.f32 %v6002_v14, %v3372_v46 }
 0x53b   : > { %v3374_v50 = vpop.f32.mrf.mxu2  ;;  %v3416_v61 = vpop.f32.mrf.mxu3 }
 0x53c   : > { %v3417_v62 = vadd.f32 %v3416_v61, %v3368_v19  ;;  %v3375_v40 = vadd.f32 %v6002_v14, %v3374_v50 }
 0x53e   : > { %v3456_v31 = vmax.f32 %v3417_v62, 0.0 }
 0x543   : > { %v3377_v17 = vpop.f32.mrf.mxu2  ;;  %v3418_v44 = vpop.f32.mrf.mxu3 }
 0x544   : > { %v3419_v36 = vadd.f32 %v3418_v44, %v3370_v57  ;;  %v3378_v21 = vadd.f32 %v6002_v14, %v3377_v17 }
 0x546   : > { %v3457_v6 = vmax.f32 %v3419_v36, 0.0 }
 0x548   : > { %v3472_v3 = vpack.c.bf16 %v3457_v6, %v3456_v31 }
 0x54a   : > { %3556 = vmatmul.bf16.vlgmr.msrb.gmra.mxu0 %v3472_v3 }
 0x54b   : > { %v3379_v27 = vpop.f32.mrf.mxu2  ;;  %v3421_v54 = vpop.f32.mrf.mxu3 }
 0x54c   : > { %v3422_v33 = vadd.f32 %v3421_v54, %v3373_v15  ;;  %v3380_v2 = vadd.f32 %v6002_v14, %v3379_v27 }
 0x54e   : > { %v3458_v26 = vmax.f32 %v3422_v33, 0.0 }
 0x553   : > { %v3423_v5 = vpop.f32.mrf.mxu3  ;;  %v3382_v60 = vpop.f32.mrf.mxu2 }
 0x554   : > { %v3424_v55 = vadd.f32 %v3423_v5, %v3375_v40  ;;  %v3383_v59 = vadd.f32 %v6002_v14, %v3382_v60 }
 0x556   : > { %v3459_v1 = vmax.f32 %v3424_v55, 0.0 }
 0x558   : > { %v3473_v24 = vpack.c.bf16 %v3459_v1, %v3458_v26 }
 0x55a   : > { %3561 = vmatmul.bf16.gmra.mxu0 %v3473_v24 }
 0x55b   : > { %v3426_v48 = vpop.f32.mrf.mxu3  ;;  %v3384_v13 = vpop.f32.mrf.mxu2 }
 0x55c   : > { %v3427_v45 = vadd.f32 %v3426_v48, %v3378_v21  ;;  %v3385_v53 = vadd.f32 %v6002_v14, %v3384_v13  ;;  %v4638_v48 = vld [vmem:[%s6081_s17] ss:$0 sm:$0xff] }
 0x55e   : > { %v3460_v30 = vmax.f32 %v3427_v45, 0.0 }
 0x563   : > { %v3428_v32 = vpop.f32.mrf.mxu3  ;;  %v3387_v25 = vpop.f32.mrf.mxu2 }
 0x564   : > { %v3429_v56 = vadd.f32 %v3428_v32, %v3380_v2  ;;  %v3388_v38 = vadd.f32 %v6002_v14, %v3387_v25 }
 0x566   : > { %v3461_v29 = vmax.f32 %v3429_v56, 0.0 }
 0x568   : > { %v3474_v28 = vpack.c.bf16 %v3461_v29, %v3460_v30 }
 0x56a   : > { %3566 = vmatmul.bf16.gmra.mxu0 %v3474_v28 }
 0x56b   : > { %v3431_v39 = vpop.f32.mrf.mxu3  ;;  %v3389_v0 = vpop.f32.mrf.mxu2 }
 0x56c   : > { %v3432_v23 = vadd.f32 %v3431_v39, %v3383_v59  ;;  %v3390_v49 = vadd.f32 %v6002_v14, %v3389_v0 }
 0x56e   : > { %v3462_v43 = vmax.f32 %v3432_v23, 0.0 }
 0x573   : > { %v3433_v22 = vpop.f32.mrf.mxu3  ;;  %v3392_v16 = vpop.f32.mrf.mxu2 }
 0x574   : > { %v3434_v41 = vadd.f32 %v3433_v22, %v3385_v53  ;;  %v3393_v51 = vadd.f32 %v6002_v14, %v3392_v16 }
 0x576   : > { %v3463_v42 = vmax.f32 %v3434_v41, 0.0 }
 0x578   : > { %v3475_v11 = vpack.c.bf16 %v3463_v42, %v3462_v43 }
 0x57a   : > { %3571 = vmatmul.bf16.gmra.mxu0 %v3475_v11 }
 0x57b   : > { %v3436_v10 = vpop.f32.mrf.mxu3  ;;  %v3394_v37 = vpop.f32.mrf.mxu2 }
 0x57c   : > { %v3437_v12 = vadd.f32 %v3436_v10, %v3388_v38  ;;  %v3395_v9 = vadd.f32 %v6002_v14, %v3394_v37 }
 0x57e   : > { %v3464_v52 = vmax.f32 %v3437_v12, 0.0 }
 0x583   : > { %v3438_v35 = vpop.f32.mrf.mxu3  ;;  %v3397_v7 = vpop.f32.mrf.mxu2 }
 0x584   : > { %v3439_v8 = vadd.f32 %v3438_v35, %v3390_v49  ;;  %v3398_v57 = vadd.f32 %v6002_v14, %v3397_v7 }
 0x586   : > { %v3465_v20 = vmax.f32 %v3439_v8, 0.0 }
 0x588   : > { %v3476_v18 = vpack.c.bf16 %v3465_v20, %v3464_v52 }
 0x58a   : > { %3576 = vmatmul.bf16.gmra.mxu0 %v3476_v18 }
 0x58b   : > { %v3441_v4 = vpop.f32.mrf.mxu3  ;;  %v3399_v61 = vpop.f32.mrf.mxu2 }
 0x58c   : > { %v3442_v34 = vadd.f32 %v3441_v4, %v3393_v51  ;;  %v3400_v62 = vadd.f32 %v6002_v14, %v3399_v61 }
 0x58e   : > { %v3466_v58 = vmax.f32 %v3442_v34, 0.0 }
 0x593   : > { %v3443_v63 = vpop.f32.mrf.mxu3  ;;  %v3402_v31 = vpop.f32.mrf.mxu2 }
 0x594   : > { %v3444_v47 = vadd.f32 %v3443_v63, %v3395_v9  ;;  %v3403_v40 = vadd.f32 %v6002_v14, %v3402_v31 }
 0x596   : > { %v3467_v46 = vmax.f32 %v3444_v47, 0.0 }
 0x598   : > { %v3477_v50 = vpack.c.bf16 %v3467_v46, %v3466_v58 }
 0x59a   : > { %3581 = vmatmul.bf16.gmra.mxu0 %v3477_v50 }
 0x59b   : > { %v3446_v19 = vpop.f32.mrf.mxu3  ;;  %v3404_v15 = vpop.f32.mrf.mxu2 }
 0x59c   : > { %v3447_v17 = vadd.f32 %v3446_v19, %v3398_v57  ;;  %v3405_v33 = vadd.f32 %v6002_v14, %v3404_v15 }
 0x59e   : > { %v3468_v6 = vmax.f32 %v3447_v17, 0.0 }
 0x5a3   : > { %v3448_v44 = vpop.f32.mrf.mxu3 }
 0x5a4   : > { %v3449_v36 = vadd.f32 %v3448_v44, %v3400_v62 }
 0x5a6   : > { %v3469_v3 = vmax.f32 %v3449_v36, 0.0 }
 0x5a8   : > { %v3478_v27 = vpack.c.bf16 %v3469_v3, %v3468_v6 }
 0x5aa   : > { %3586 = vmatmul.bf16.gmra.mxu0 %v3478_v27 }
 0x5ab   : > { %v3451_v54 = vpop.f32.mrf.mxu3 }
 0x5ac   : > { %v3452_v5 = vadd.f32 %v3451_v54, %v3403_v40 }
 0x5ae   : > { %v3470_v26 = vmax.f32 %v3452_v5, 0.0 }
 0x5b3   : > { %v3453_v55 = vpop.f32.mrf.mxu3 }
 0x5b4   : > { %v3454_v60 = vadd.f32 %v3453_v55, %v3405_v33 }
 0x5b6   : > { %v3471_v1 = vmax.f32 %v3454_v60, 0.0 }
 0x5b8   : > { %v3479_v24 = vpack.c.bf16 %v3471_v1, %v3470_v26 }
 0x5ba   : > { %3591 = vmatmul.bf16.gmra.mxu0 %v3479_v24 }
 0x5c7   : > { %v3557_v14 = vpop.f32.mrf.mxu0 }
 0x5c8   : > { %v3558_v13 = vadd.f32 %v4638_v48, %v3557_v14 }
 0x5ca   : > { %3598 = vst.msk [vmem:[%s6027_s22] sm:$0xff] %vm3597_vm3, %v3558_v13 }
 0x5cf   : > { %v3559_v21 = vpop.f32.mrf.mxu0 }
 0x5d0   : > { %v3560_v2 = vadd.f32 %v4638_v48, %v3559_v21 }
 0x5d2   : > { %3599 = vst.msk [vmem:[%s6027_s22 + $0x8] sm:$0xff] %vm3597_vm3, %v3560_v2 }
 0x5d7   : > { %v3562_v45 = vpop.f32.mrf.mxu0 }
 0x5d8   : > { %v3563_v32 = vadd.f32 %v4638_v48, %v3562_v45 }
 0x5da   : > { %3600 = vst.msk [vmem:[%s6027_s22 + $0x10] sm:$0xff] %vm3597_vm3, %v3563_v32 }
 0x5df   : > { %v3564_v56 = vpop.f32.mrf.mxu0 }
 0x5e0   : > { %v3565_v30 = vadd.f32 %v4638_v48, %v3564_v56 }
 0x5e2   : > { %3601 = vst.msk [vmem:[%s6027_s22 + $0x18] sm:$0xff] %vm3597_vm3, %v3565_v30 }
 0x5e7   : > { %v3567_v29 = vpop.f32.mrf.mxu0 }
 0x5e8   : > { %v3568_v28 = vadd.f32 %v4638_v48, %v3567_v29 }
 0x5ea   : > { %3602 = vst.msk [vmem:[%s6027_s22 + $0x20] sm:$0xff] %vm3597_vm3, %v3568_v28 }
 0x5ef   : > { %v3569_v25 = vpop.f32.mrf.mxu0 }
 0x5f0   : > { %v3570_v39 = vadd.f32 %v4638_v48, %v3569_v25 }
 0x5f2   : > { %3603 = vst.msk [vmem:[%s6027_s22 + $0x28] sm:$0xff] %vm3597_vm3, %v3570_v39 }
 0x5f7   : > { %v3572_v59 = vpop.f32.mrf.mxu0 }
 0x5f8   : > { %v3573_v53 = vadd.f32 %v4638_v48, %v3572_v59 }
 0x5fa   : > { %3604 = vst.msk [vmem:[%s6027_s22 + $0x30] sm:$0xff] %vm3597_vm3, %v3573_v53 }
 0x5ff   : > { %v3574_v23 = vpop.f32.mrf.mxu0 }
 0x600   : > { %v3575_v0 = vadd.f32 %v4638_v48, %v3574_v23 }
 0x602   : > { %3605 = vst.msk [vmem:[%s6027_s22 + $0x38] sm:$0xff] %vm3597_vm3, %v3575_v0 }
 0x607   : > { %v3577_v22 = vpop.f32.mrf.mxu0 }
 0x608   : > { %v3578_v41 = vadd.f32 %v4638_v48, %v3577_v22 }
 0x60a   : > { %3606 = vst.msk [vmem:[%s6027_s22 + $0x40] sm:$0xff] %vm3597_vm3, %v3578_v41 }
 0x60f   : > { %v3579_v43 = vpop.f32.mrf.mxu0 }
 0x610   : > { %v3580_v42 = vadd.f32 %v4638_v48, %v3579_v43 }
 0x612   : > { %3607 = vst.msk [vmem:[%s6027_s22 + $0x48] sm:$0xff] %vm3597_vm3, %v3580_v42 }
 0x617   : > { %v3582_v11 = vpop.f32.mrf.mxu0 }
 0x618   : > { %v3583_v10 = vadd.f32 %v4638_v48, %v3582_v11 }
 0x61a   : > { %3608 = vst.msk [vmem:[%s6027_s22 + $0x50] sm:$0xff] %vm3597_vm3, %v3583_v10 }
 0x61f   : > { %v3584_v16 = vpop.f32.mrf.mxu0 }
 0x620   : > { %v3585_v38 = vadd.f32 %v4638_v48, %v3584_v16 }
 0x622   : > { %3609 = vst.msk [vmem:[%s6027_s22 + $0x58] sm:$0xff] %vm3597_vm3, %v3585_v38 }
 0x627   : > { %v3587_v49 = vpop.f32.mrf.mxu0 }
 0x628   : > { %v3588_v12 = vadd.f32 %v4638_v48, %v3587_v49 }
 0x62a   : > { %3610 = vst.msk [vmem:[%s6027_s22 + $0x60] sm:$0xff] %vm3597_vm3, %v3588_v12 }
 0x62f   : > { %v3589_v35 = vpop.f32.mrf.mxu0 }
 0x630   : > { %v3590_v8 = vadd.f32 %v4638_v48, %v3589_v35 }
 0x632   : > { %3611 = vst.msk [vmem:[%s6027_s22 + $0x68] sm:$0xff] %vm3597_vm3, %v3590_v8 }
 0x637   : > { %v3592_v52 = vpop.f32.mrf.mxu0 }
 0x638   : > { %v3593_v20 = vadd.f32 %v4638_v48, %v3592_v52 }
 0x63a   : > { %3612 = vst.msk [vmem:[%s6027_s22 + $0x70] sm:$0xff] %vm3597_vm3, %v3593_v20 }
 0x63f   : > { %v3594_v37 = vpop.f32.mrf.mxu0 }
 0x640   : > { %v3595_v18 = vadd.f32 %v4638_v48, %v3594_v37 }
 0x642   : > { %3613 = vst.msk [vmem:[%s6027_s22 + $0x78] sm:$0xff] %vm3597_vm3, %v3595_v18 }
 0x643 PF: > { %s30_s27 = sadd.s32 1, %s4743_s27  }
 0x644   : > { %p27_p7 = scmp.ge.s32.totalorder %s30_s27, 4  }
 0x646   :  { %29 = sbr.rel (!%p27_p7) target bundleno = 9 (0x9), region = 135 }
 0x64b   :  { %3636 = vsyncpa [#allocation3], 1 }
 0x64c   :  { %3638 = vsyncpa [#allocation3 + $0x1], 1 }
 0x64d   :  { %3639 = vsyncpa [#allocation5], 1 }

</bundles_post_ra>
